<compile_context>
chip_gen: v6e
topology: v6e:2x2x1
jax: 0.10.0
libtpu: 0.0.40
codegen_flags: <defaults>
</compile_context>

<pallas_src>
import functools

import jax
import jax.numpy as jnp
from jax.experimental import pallas as pl
from jax.experimental.pallas import tpu as pltpu


def _round_up(x, m):
    return ((x + m - 1) // m) * m


def _divisors(n):
    return [d for d in range(1, n + 1) if n % d == 0]


def _vmem_capacity_bytes():
    """Per-core VMEM capacity; conservative fallback if the query fails."""
    try:
        info = pltpu.get_tpu_info()
        cap = getattr(info, "vmem_capacity_bytes", None)
        if cap:
            return int(cap)
    except Exception:
        pass
    return 64 * 1024 * 1024  # v7x per-TC capacity (safe lower bound)


def _pick_tiles(N, H, W, Cp, Hh, Co, budget_bytes):
    """Pick (NB images, TH output rows) per grid step under a VMEM budget.

    Prefers configurations with >=2 total grid steps (v7x has 2 TensorCores),
    then the largest per-step tile (amortizes per-step overhead on v5e/v6e).
    """
    best_key, best = None, (1, _divisors(H)[0])
    for TH in _divisors(H):
        for NB in _divisors(N):
            steps = (N // NB) * (H // TH)
            cost = (
                2 * NB * TH * W * Cp * 4            # x body block, dbl-buffered, f32
                + 2 * 2 * NB * W * Cp * 4           # top+bottom halo rows, dbl-buffered
                + 2 * NB * TH * W * Co * 4          # output block, dbl-buffered, f32
                + NB * (TH + 2) * (W + 2) * Hh * 2  # assembled conv1 output, bf16
                + NB * TH * W * (Co + Hh) * 4       # f32 temporaries (acc, conv1 out)
                + 2 * 2 * (Cp * Hh + 9 * Hh * Co)   # weights, bf16, dbl-buffered
            )
            if cost > budget_bytes:
                continue
            key = (steps >= 2, NB * TH)
            if best_key is None or key > best_key:
                best_key, best = key, (NB, TH)
    return best


def _bottleneck_kernel(x_mid_ref, x_top_ref, x_bot_ref,
                       w1_ref, b1_ref, w2_ref, b2_ref, o_ref, *, use_add):
    # x_mid_ref: (NB, TH, W, Cp) f32   tile body rows
    # x_top_ref: (NB, 1,  W, Cp) f32   row above the tile (clamped at top edge)
    # x_bot_ref: (NB, 1,  W, Cp) f32   row below the tile (clamped at bottom edge)
    # w1_ref   : (Cp, Hh)     bf16     w2_ref: (9, Hh, Co) bf16
    # b1_ref   : (1, Hh)      f32      b2_ref: (1, Co)     f32
    # o_ref    : (NB, TH, W, Co)
    NB, TH, W, Cp = x_mid_ref.shape
    Hh = w1_ref.shape[1]
    Co = w2_ref.shape[2]

    w1 = w1_ref[...]
    b1 = b1_ref[...]

    def conv1(x_f32, rows):
        # 1x1 conv + folded BN + SiLU == channel matmul (bf16 MXU, f32 acc).
        xb = x_f32.astype(jnp.bfloat16).reshape(NB * rows * W, Cp)
        y = jnp.dot(xb, w1, preferred_element_type=jnp.float32) + b1
        y = y * jax.nn.sigmoid(y)                       # SiLU in f32
        return y.astype(jnp.bfloat16).reshape(NB, rows, W, Hh)

    y_mid = conv1(x_mid_ref[...], TH)
    y_top = conv1(x_top_ref[...], 1)
    y_bot = conv1(x_bot_ref[...], 1)

    # At image edges the halo row is zero padding, not real data: zero it.
    h_id = pl.program_id(1)
    y_top = jnp.where(h_id == 0, 0.0, y_top)
    y_bot = jnp.where(h_id == pl.num_programs(1) - 1, 0.0, y_bot)

    # Assemble halo'd conv1 output (NB, TH+2, W+2, Hh); left/right columns are
    # the 3x3 conv's zero padding (conv1 is never evaluated on them).
    zcol = jnp.zeros((NB, TH + 2, 1, Hh), jnp.bfloat16)
    y1 = jnp.concatenate([y_top, y_mid, y_bot], axis=1)
    y1 = jnp.concatenate([zcol, y1, zcol], axis=2)

    # conv2: 3x3 conv (pad=1, stride=1) as 9 accumulated dots (no patches
    # materialization).  f32 accumulation on the MXU.
    acc = None
    for ki in range(3):
        for kj in range(3):
            tap = y1[:, ki:ki + TH, kj:kj + W, :].reshape(NB * TH * W, Hh)
            d = jnp.dot(tap, w2_ref[ki * 3 + kj],
                        preferred_element_type=jnp.float32)
            acc = d if acc is None else acc + d

    y2 = acc + b2_ref[...]
    y2 = y2 * jax.nn.sigmoid(y2)                        # SiLU in f32
    y2 = y2.reshape(NB, TH, W, Co)

    if use_add:
        # Cin == Cout => padded Cp == Co; padded channels of x are zero.
        # Re-read the ref here instead of keeping an f32 copy live across
        # both convs.
        y2 = y2 + x_mid_ref[...]

    o_ref[...] = y2.astype(o_ref.dtype)


def bottleneck_pallas(x_nhwc, w1, b1, w2, b2, *, use_add):
    """x_nhwc: (N,H,W,Cin) f32; w1: (Cin,Chid); b1: (Chid,);
    w2: (3,3,Chid,Cout) [HWIO]; b2: (Cout,). Returns (N,H,W,Cout)."""
    N, H, W, Cin = x_nhwc.shape
    Chid = w1.shape[1]
    Cout = w2.shape[3]
    if use_add and Cin != Cout:
        raise ValueError("residual add requires in_channels == out_channels")

    # lane-dense channel padding (no spatial pre-pad copy of the input)
    Cp = _round_up(Cin, 128)
    Hh = _round_up(Chid, 128)
    Co = _round_up(Cout, 128)

    x_p = x_nhwc if Cp == Cin else jnp.pad(
        x_nhwc, ((0, 0), (0, 0), (0, 0), (0, Cp - Cin)))

    w1_p = jnp.pad(w1, ((0, Cp - Cin), (0, Hh - Chid))).astype(jnp.bfloat16)
    b1_p = jnp.pad(b1.reshape(1, -1), ((0, 0), (0, Hh - Chid))).astype(jnp.float32)
    w2_p = jnp.pad(w2, ((0, 0), (0, 0), (0, Hh - Chid), (0, Co - Cout)))
    w2_p = w2_p.reshape(9, Hh, Co).astype(jnp.bfloat16)
    b2_p = jnp.pad(b2.reshape(1, -1), ((0, 0), (0, Co - Cout))).astype(jnp.float32)

    # generation-aware VMEM budget and tile selection
    vmem_cap = _vmem_capacity_bytes()
    vmem_limit = min(int(vmem_cap * 0.75), 100 * 1024 * 1024)
    NB, TH = _pick_tiles(N, H, W, Cp, Hh, Co, int(vmem_limit * 0.8))
    grid = (N // NB, H // TH)

    kernel = functools.partial(_bottleneck_kernel, use_add=use_add)

    out = pl.pallas_call(
        kernel,
        out_shape=jax.ShapeDtypeStruct((N, H, W, Co), x_nhwc.dtype),
        grid_spec=pltpu.PrefetchScalarGridSpec(
            num_scalar_prefetch=0,
            grid=grid,
            in_specs=[
                # tile body rows [h*TH, h*TH+TH)
                pl.BlockSpec((NB, TH, W, Cp), lambda n, h: (n, h, 0, 0)),
                # halo row above the tile (clamped at the top edge; the kernel
                # zeroes its contribution there)
                pl.BlockSpec((NB, 1, W, Cp),
                             lambda n, h: (n, jnp.maximum(h * TH - 1, 0), 0, 0)),
                # halo row below the tile (clamped at the bottom edge)
                pl.BlockSpec((NB, 1, W, Cp),
                             lambda n, h: (n, jnp.minimum((h + 1) * TH, H - 1), 0, 0)),
                pl.BlockSpec((Cp, Hh), lambda n, h: (0, 0)),
                pl.BlockSpec((1, Hh), lambda n, h: (0, 0)),
                pl.BlockSpec((9, Hh, Co), lambda n, h: (0, 0, 0)),
                pl.BlockSpec((1, Co), lambda n, h: (0, 0)),
            ],
            out_specs=pl.BlockSpec((NB, TH, W, Co), lambda n, h: (n, h, 0, 0)),
        ),
        compiler_params=pltpu.CompilerParams(
            dimension_semantics=("parallel", "parallel"),
            vmem_limit_bytes=vmem_limit),
    )(x_p, x_p, x_p, w1_p, b1_p, w2_p, b2_p)

    # avoid an extra HBM pass when the channel count is already lane-dense
    return out if Co == Cout else out[..., :Cout]


# ----------------------------- reference (pure JAX) ---------------------------
def _silu(x):
    return x * jax.nn.sigmoid(x)


def _ref_forward(x_nhwc, w1, b1, w2, b2, use_add):
    # Mirrors the kernel's numerics: bf16 matmul operands, f32 accumulation,
    # f32 bias/SiLU.
    xb = x_nhwc.astype(jnp.bfloat16)
    w1_hwio = w1.reshape(1, 1, w1.shape[0], w1.shape[1]).astype(jnp.bfloat16)
    y1 = jax.lax.conv_general_dilated(
        xb, w1_hwio, window_strides=(1, 1), padding="SAME",
        dimension_numbers=("NHWC", "HWIO", "NHWC"),
        preferred_element_type=jnp.float32)
    y1 = _silu(y1 + b1.reshape(1, 1, 1, -1))

    y2 = jax.lax.conv_general_dilated(
        y1.astype(jnp.bfloat16), w2.astype(jnp.bfloat16),
        window_strides=(1, 1), padding="SAME",
        dimension_numbers=("NHWC", "HWIO", "NHWC"),
        preferred_element_type=jnp.float32)
    y2 = _silu(y2 + b2.reshape(1, 1, 1, -1))
    if use_add:
        y2 = y2 + x_nhwc
    return y2


# ----------------------------- parameter setup --------------------------------
def _fold_bn(w, gamma, beta, mean, var, eps=1e-3):
    """Fold inference-mode BN into conv. w has output-channel as its LAST axis."""
    scale = gamma / jnp.sqrt(var + eps)
    w_eff = w * scale  # broadcast over last axis (output channels)
    b_eff = beta - mean * scale
    return w_eff, b_eff


if __name__ == "__main__":
    key = jax.random.PRNGKey(0)
    N, Cin, H, W = 2, 4, 16, 16
    Cout = 4                      # in == out -> shortcut add is active
    expansion = 0.5
    Chid = int(Cout * expansion)  # 2
    use_add = True and (Cin == Cout)

    keys = jax.random.split(key, 11)

    # conv1 (1x1, Cin -> Chid), no conv bias; BN params
    w1_raw = jax.random.normal(keys[0], (Cin, Chid), jnp.float32) * 0.2
    g1 = 1.0 + 0.1 * jax.random.normal(keys[1], (Chid,), jnp.float32)
    be1 = 0.1 * jax.random.normal(keys[2], (Chid,), jnp.float32)
    mu1 = 0.1 * jax.random.normal(keys[3], (Chid,), jnp.float32)
    var1 = jnp.abs(jax.random.normal(keys[4], (Chid,), jnp.float32)) + 0.5

    # conv2 (3x3, Chid -> Cout), no conv bias; BN params
    w2_raw = jax.random.normal(keys[5], (3, 3, Chid, Cout), jnp.float32) * 0.2
    g2 = 1.0 + 0.1 * jax.random.normal(keys[6], (Cout,), jnp.float32)
    be2 = 0.1 * jax.random.normal(keys[7], (Cout,), jnp.float32)
    mu2 = 0.1 * jax.random.normal(keys[8], (Cout,), jnp.float32)
    var2 = jnp.abs(jax.random.normal(keys[9], (Cout,), jnp.float32)) + 0.5

    # fold BN into conv weights/bias (eps=1e-3, matching BaseConv)
    w1_eff, b1_eff = _fold_bn(w1_raw, g1, be1, mu1, var1)
    w2_eff, b2_eff = _fold_bn(w2_raw, g2, be2, mu2, var2)

    # input (NCHW like PyTorch), transpose to NHWC for the kernel
    x_nchw = jax.random.normal(keys[10], (N, Cin, H, W), jnp.float32)
    x_nhwc = jnp.transpose(x_nchw, (0, 2, 3, 1))

    out = bottleneck_pallas(x_nhwc, w1_eff, b1_eff, w2_eff, b2_eff,
                            use_add=use_add)
    out = jax.block_until_ready(out)

    ref = _ref_forward(x_nhwc, w1_eff, b1_eff, w2_eff, b2_eff, use_add)
    ref = jax.block_until_ready(ref)

    assert out.shape == (N, H, W, Cout)
    max_err = float(jnp.max(jnp.abs(out - ref)))
    assert jnp.allclose(out, ref, atol=2e-3, rtol=2e-3), max_err

    # back to NCHW if the caller wants PyTorch layout
    _ = jnp.transpose(out, (0, 3, 1, 2))

    print("KERNEL_OK")
</pallas_src>

<mosaic_0001>
module attributes {stable_mosaic.version = 11 : i64} {
  func.func @_bottleneck_kernel(%arg0: i32, %arg1: i32, %arg2: memref<2x8x16x128xf32, #tpu.memory_space<vmem>>, %arg3: memref<2x1x16x128xf32, #tpu.memory_space<vmem>>, %arg4: memref<2x1x16x128xf32, #tpu.memory_space<vmem>>, %arg5: memref<128x128xbf16, #tpu.memory_space<vmem>>, %arg6: memref<1x128xf32, #tpu.memory_space<vmem>>, %arg7: memref<9x128x128xbf16, #tpu.memory_space<vmem>>, %arg8: memref<1x128xf32, #tpu.memory_space<vmem>>, %arg9: memref<2x8x16x128xf32, #tpu.memory_space<vmem>>) attributes {dimension_semantics = [#tpu.dimension_semantics<parallel>, #tpu.dimension_semantics<parallel>], iteration_bounds = array<i64: 1, 2>, scalar_prefetch = 0 : i64, scratch_operands = 0 : i64, tpu.core_type = #tpu.core_type<tc>, window_params = [{transform_indices = @transform_0, window_bounds = array<i64: 2, 8, 16, 128>}, {transform_indices = @transform_1, window_bounds = array<i64: 2, 1, 16, 128>}, {transform_indices = @transform_2, window_bounds = array<i64: 2, 1, 16, 128>}, {pipeline_mode = #tpu.pipeline_mode<synchronous>, transform_indices = @transform_3, window_bounds = array<i64: 128, 128>}, {pipeline_mode = #tpu.pipeline_mode<synchronous>, transform_indices = @transform_4, window_bounds = array<i64: 1, 128>}, {pipeline_mode = #tpu.pipeline_mode<synchronous>, transform_indices = @transform_5, window_bounds = array<i64: 9, 128, 128>}, {pipeline_mode = #tpu.pipeline_mode<synchronous>, transform_indices = @transform_6, window_bounds = array<i64: 1, 128>}, {transform_indices = @transform_7, window_bounds = array<i64: 2, 8, 16, 128>}]} {
    %c0 = arith.constant 0 : index
    %c0_0 = arith.constant 0 : index
    %0 = vector.load %arg5[%c0, %c0_0] : memref<128x128xbf16, #tpu.memory_space<vmem>>, vector<128x128xbf16>
    %c0_1 = arith.constant 0 : index
    %c0_2 = arith.constant 0 : index
    %1 = vector.load %arg6[%c0_1, %c0_2] : memref<1x128xf32, #tpu.memory_space<vmem>>, vector<1x128xf32>
    %c0_3 = arith.constant 0 : index
    %c0_4 = arith.constant 0 : index
    %c0_5 = arith.constant 0 : index
    %c0_6 = arith.constant 0 : index
    %2 = vector.load %arg2[%c0_3, %c0_4, %c0_5, %c0_6] : memref<2x8x16x128xf32, #tpu.memory_space<vmem>>, vector<2x8x16x128xf32>
    %3 = arith.truncf %2 : vector<2x8x16x128xf32> to vector<2x8x16x128xbf16>
    %4 = vector.shape_cast %3 : vector<2x8x16x128xbf16> to vector<256x128xbf16>
    %cst = arith.constant dense<0.000000e+00> : vector<256x128xf32>
    %5 = tpu.matmul %4, %0, %cst {dimension_numbers = #tpu.dot_dimension_numbers<[1], [0], [0], [1], [0, 0, 1, 1], [], []>} : vector<256x128xbf16>, vector<128x128xbf16>, vector<256x128xf32> -> vector<256x128xf32>
    %6 = vector.broadcast %1 : vector<1x128xf32> to vector<256x128xf32>
    %7 = arith.addf %5, %6 : vector<256x128xf32>
    %8 = arith.negf %7 : vector<256x128xf32>
    %9 = math.exp %8 : vector<256x128xf32>
    %cst_7 = arith.constant 1.000000e+00 : f32
    %10 = vector.broadcast %cst_7 : f32 to vector<256x128xf32>
    %11 = arith.addf %10, %9 : vector<256x128xf32>
    %12 = arith.divf %10, %11 : vector<256x128xf32>
    %13 = arith.mulf %7, %12 : vector<256x128xf32>
    %14 = arith.truncf %13 : vector<256x128xf32> to vector<256x128xbf16>
    %15 = vector.shape_cast %14 : vector<256x128xbf16> to vector<2x8x16x128xbf16>
    %c0_8 = arith.constant 0 : index
    %c0_9 = arith.constant 0 : index
    %c0_10 = arith.constant 0 : index
    %c0_11 = arith.constant 0 : index
    %16 = vector.load %arg3[%c0_8, %c0_9, %c0_10, %c0_11] : memref<2x1x16x128xf32, #tpu.memory_space<vmem>>, vector<2x1x16x128xf32>
    %17 = arith.truncf %16 : vector<2x1x16x128xf32> to vector<2x1x16x128xbf16>
    %18 = vector.shape_cast %17 : vector<2x1x16x128xbf16> to vector<32x128xbf16>
    %cst_12 = arith.constant dense<0.000000e+00> : vector<32x128xf32>
    %19 = tpu.matmul %18, %0, %cst_12 {dimension_numbers = #tpu.dot_dimension_numbers<[1], [0], [0], [1], [0, 0, 1, 1], [], []>} : vector<32x128xbf16>, vector<128x128xbf16>, vector<32x128xf32> -> vector<32x128xf32>
    %20 = vector.broadcast %1 : vector<1x128xf32> to vector<32x128xf32>
    %21 = arith.addf %19, %20 : vector<32x128xf32>
    %22 = arith.negf %21 : vector<32x128xf32>
    %23 = math.exp %22 : vector<32x128xf32>
    %cst_13 = arith.constant 1.000000e+00 : f32
    %24 = vector.broadcast %cst_13 : f32 to vector<32x128xf32>
    %25 = arith.addf %24, %23 : vector<32x128xf32>
    %26 = arith.divf %24, %25 : vector<32x128xf32>
    %27 = arith.mulf %21, %26 : vector<32x128xf32>
    %28 = arith.truncf %27 : vector<32x128xf32> to vector<32x128xbf16>
    %29 = vector.shape_cast %28 : vector<32x128xbf16> to vector<2x1x16x128xbf16>
    %c0_14 = arith.constant 0 : index
    %c0_15 = arith.constant 0 : index
    %c0_16 = arith.constant 0 : index
    %c0_17 = arith.constant 0 : index
    %30 = vector.load %arg4[%c0_14, %c0_15, %c0_16, %c0_17] : memref<2x1x16x128xf32, #tpu.memory_space<vmem>>, vector<2x1x16x128xf32>
    %31 = arith.truncf %30 : vector<2x1x16x128xf32> to vector<2x1x16x128xbf16>
    %32 = vector.shape_cast %31 : vector<2x1x16x128xbf16> to vector<32x128xbf16>
    %cst_18 = arith.constant dense<0.000000e+00> : vector<32x128xf32>
    %33 = tpu.matmul %32, %0, %cst_18 {dimension_numbers = #tpu.dot_dimension_numbers<[1], [0], [0], [1], [0, 0, 1, 1], [], []>} : vector<32x128xbf16>, vector<128x128xbf16>, vector<32x128xf32> -> vector<32x128xf32>
    %34 = vector.broadcast %1 : vector<1x128xf32> to vector<32x128xf32>
    %35 = arith.addf %33, %34 : vector<32x128xf32>
    %36 = arith.negf %35 : vector<32x128xf32>
    %37 = math.exp %36 : vector<32x128xf32>
    %cst_19 = arith.constant 1.000000e+00 : f32
    %38 = vector.broadcast %cst_19 : f32 to vector<32x128xf32>
    %39 = arith.addf %38, %37 : vector<32x128xf32>
    %40 = arith.divf %38, %39 : vector<32x128xf32>
    %41 = arith.mulf %35, %40 : vector<32x128xf32>
    %42 = arith.truncf %41 : vector<32x128xf32> to vector<32x128xbf16>
    %43 = vector.shape_cast %42 : vector<32x128xbf16> to vector<2x1x16x128xbf16>
    %c0_i32 = arith.constant 0 : i32
    %44 = arith.cmpi eq, %arg1, %c0_i32 : i32
    %cst_20 = arith.constant 0.000000e+00 : f32
    %45 = arith.truncf %cst_20 : f32 to bf16
    %46 = vector.broadcast %45 : bf16 to vector<2x1x16x128xbf16>
    %47 = arith.select %44, %46, %29 : vector<2x1x16x128xbf16>
    %c1_i32 = arith.constant 1 : i32
    %48 = arith.cmpi eq, %arg1, %c1_i32 : i32
    %cst_21 = arith.constant 0.000000e+00 : f32
    %49 = arith.truncf %cst_21 : f32 to bf16
    %50 = vector.broadcast %49 : bf16 to vector<2x1x16x128xbf16>
    %51 = arith.select %48, %50, %43 : vector<2x1x16x128xbf16>
    %cst_22 = arith.constant 0.000000e+00 : bf16
    %52 = vector.broadcast %cst_22 : bf16 to vector<2x10x1x128xbf16>
    %53 = tpu.concatenate %47, %15, %51 in 1 : vector<2x1x16x128xbf16>, vector<2x8x16x128xbf16>, vector<2x1x16x128xbf16> -> vector<2x10x16x128xbf16>
    %54 = tpu.concatenate %52, %53, %52 in 2 : vector<2x10x1x128xbf16>, vector<2x10x16x128xbf16>, vector<2x10x1x128xbf16> -> vector<2x10x18x128xbf16>
    %55 = vector.extract_strided_slice %54 {offsets = [0, 0, 0, 0], sizes = [2, 8, 16, 128], strides = [1, 1, 1, 1]} : vector<2x10x18x128xbf16> to vector<2x8x16x128xbf16>
    %56 = vector.shape_cast %55 : vector<2x8x16x128xbf16> to vector<256x128xbf16>
    %c0_23 = arith.constant 0 : index
    %c0_24 = arith.constant 0 : index
    %c0_25 = arith.constant 0 : index
    %57 = vector.load %arg7[%c0_23, %c0_24, %c0_25] : memref<9x128x128xbf16, #tpu.memory_space<vmem>>, vector<1x128x128xbf16>
    %58 = vector.shape_cast %57 : vector<1x128x128xbf16> to vector<128x128xbf16>
    %cst_26 = arith.constant dense<0.000000e+00> : vector<256x128xf32>
    %59 = tpu.matmul %56, %58, %cst_26 {dimension_numbers = #tpu.dot_dimension_numbers<[1], [0], [0], [1], [0, 0, 1, 1], [], []>} : vector<256x128xbf16>, vector<128x128xbf16>, vector<256x128xf32> -> vector<256x128xf32>
    %60 = vector.extract_strided_slice %54 {offsets = [0, 0, 1, 0], sizes = [2, 8, 16, 128], strides = [1, 1, 1, 1]} : vector<2x10x18x128xbf16> to vector<2x8x16x128xbf16>
    %61 = vector.shape_cast %60 : vector<2x8x16x128xbf16> to vector<256x128xbf16>
    %c1 = arith.constant 1 : index
    %c0_27 = arith.constant 0 : index
    %c0_28 = arith.constant 0 : index
    %62 = vector.load %arg7[%c1, %c0_27, %c0_28] : memref<9x128x128xbf16, #tpu.memory_space<vmem>>, vector<1x128x128xbf16>
    %63 = vector.shape_cast %62 : vector<1x128x128xbf16> to vector<128x128xbf16>
    %cst_29 = arith.constant dense<0.000000e+00> : vector<256x128xf32>
    %64 = tpu.matmul %61, %63, %cst_29 {dimension_numbers = #tpu.dot_dimension_numbers<[1], [0], [0], [1], [0, 0, 1, 1], [], []>} : vector<256x128xbf16>, vector<128x128xbf16>, vector<256x128xf32> -> vector<256x128xf32>
    %65 = arith.addf %59, %64 : vector<256x128xf32>
    %66 = vector.extract_strided_slice %54 {offsets = [0, 0, 2, 0], sizes = [2, 8, 16, 128], strides = [1, 1, 1, 1]} : vector<2x10x18x128xbf16> to vector<2x8x16x128xbf16>
    %67 = vector.shape_cast %66 : vector<2x8x16x128xbf16> to vector<256x128xbf16>
    %c2 = arith.constant 2 : index
    %c0_30 = arith.constant 0 : index
    %c0_31 = arith.constant 0 : index
    %68 = vector.load %arg7[%c2, %c0_30, %c0_31] : memref<9x128x128xbf16, #tpu.memory_space<vmem>>, vector<1x128x128xbf16>
    %69 = vector.shape_cast %68 : vector<1x128x128xbf16> to vector<128x128xbf16>
    %cst_32 = arith.constant dense<0.000000e+00> : vector<256x128xf32>
    %70 = tpu.matmul %67, %69, %cst_32 {dimension_numbers = #tpu.dot_dimension_numbers<[1], [0], [0], [1], [0, 0, 1, 1], [], []>} : vector<256x128xbf16>, vector<128x128xbf16>, vector<256x128xf32> -> vector<256x128xf32>
    %71 = arith.addf %65, %70 : vector<256x128xf32>
    %72 = vector.extract_strided_slice %54 {offsets = [0, 1, 0, 0], sizes = [2, 8, 16, 128], strides = [1, 1, 1, 1]} : vector<2x10x18x128xbf16> to vector<2x8x16x128xbf16>
    %73 = vector.shape_cast %72 : vector<2x8x16x128xbf16> to vector<256x128xbf16>
    %c3 = arith.constant 3 : index
    %c0_33 = arith.constant 0 : index
    %c0_34 = arith.constant 0 : index
    %74 = vector.load %arg7[%c3, %c0_33, %c0_34] : memref<9x128x128xbf16, #tpu.memory_space<vmem>>, vector<1x128x128xbf16>
    %75 = vector.shape_cast %74 : vector<1x128x128xbf16> to vector<128x128xbf16>
    %cst_35 = arith.constant dense<0.000000e+00> : vector<256x128xf32>
    %76 = tpu.matmul %73, %75, %cst_35 {dimension_numbers = #tpu.dot_dimension_numbers<[1], [0], [0], [1], [0, 0, 1, 1], [], []>} : vector<256x128xbf16>, vector<128x128xbf16>, vector<256x128xf32> -> vector<256x128xf32>
    %77 = arith.addf %71, %76 : vector<256x128xf32>
    %78 = vector.extract_strided_slice %54 {offsets = [0, 1, 1, 0], sizes = [2, 8, 16, 128], strides = [1, 1, 1, 1]} : vector<2x10x18x128xbf16> to vector<2x8x16x128xbf16>
    %79 = vector.shape_cast %78 : vector<2x8x16x128xbf16> to vector<256x128xbf16>
    %c4 = arith.constant 4 : index
    %c0_36 = arith.constant 0 : index
    %c0_37 = arith.constant 0 : index
    %80 = vector.load %arg7[%c4, %c0_36, %c0_37] : memref<9x128x128xbf16, #tpu.memory_space<vmem>>, vector<1x128x128xbf16>
    %81 = vector.shape_cast %80 : vector<1x128x128xbf16> to vector<128x128xbf16>
    %cst_38 = arith.constant dense<0.000000e+00> : vector<256x128xf32>
    %82 = tpu.matmul %79, %81, %cst_38 {dimension_numbers = #tpu.dot_dimension_numbers<[1], [0], [0], [1], [0, 0, 1, 1], [], []>} : vector<256x128xbf16>, vector<128x128xbf16>, vector<256x128xf32> -> vector<256x128xf32>
    %83 = arith.addf %77, %82 : vector<256x128xf32>
    %84 = vector.extract_strided_slice %54 {offsets = [0, 1, 2, 0], sizes = [2, 8, 16, 128], strides = [1, 1, 1, 1]} : vector<2x10x18x128xbf16> to vector<2x8x16x128xbf16>
    %85 = vector.shape_cast %84 : vector<2x8x16x128xbf16> to vector<256x128xbf16>
    %c5 = arith.constant 5 : index
    %c0_39 = arith.constant 0 : index
    %c0_40 = arith.constant 0 : index
    %86 = vector.load %arg7[%c5, %c0_39, %c0_40] : memref<9x128x128xbf16, #tpu.memory_space<vmem>>, vector<1x128x128xbf16>
    %87 = vector.shape_cast %86 : vector<1x128x128xbf16> to vector<128x128xbf16>
    %cst_41 = arith.constant dense<0.000000e+00> : vector<256x128xf32>
    %88 = tpu.matmul %85, %87, %cst_41 {dimension_numbers = #tpu.dot_dimension_numbers<[1], [0], [0], [1], [0, 0, 1, 1], [], []>} : vector<256x128xbf16>, vector<128x128xbf16>, vector<256x128xf32> -> vector<256x128xf32>
    %89 = arith.addf %83, %88 : vector<256x128xf32>
    %90 = vector.extract_strided_slice %54 {offsets = [0, 2, 0, 0], sizes = [2, 8, 16, 128], strides = [1, 1, 1, 1]} : vector<2x10x18x128xbf16> to vector<2x8x16x128xbf16>
    %91 = vector.shape_cast %90 : vector<2x8x16x128xbf16> to vector<256x128xbf16>
    %c6 = arith.constant 6 : index
    %c0_42 = arith.constant 0 : index
    %c0_43 = arith.constant 0 : index
    %92 = vector.load %arg7[%c6, %c0_42, %c0_43] : memref<9x128x128xbf16, #tpu.memory_space<vmem>>, vector<1x128x128xbf16>
    %93 = vector.shape_cast %92 : vector<1x128x128xbf16> to vector<128x128xbf16>
    %cst_44 = arith.constant dense<0.000000e+00> : vector<256x128xf32>
    %94 = tpu.matmul %91, %93, %cst_44 {dimension_numbers = #tpu.dot_dimension_numbers<[1], [0], [0], [1], [0, 0, 1, 1], [], []>} : vector<256x128xbf16>, vector<128x128xbf16>, vector<256x128xf32> -> vector<256x128xf32>
    %95 = arith.addf %89, %94 : vector<256x128xf32>
    %96 = vector.extract_strided_slice %54 {offsets = [0, 2, 1, 0], sizes = [2, 8, 16, 128], strides = [1, 1, 1, 1]} : vector<2x10x18x128xbf16> to vector<2x8x16x128xbf16>
    %97 = vector.shape_cast %96 : vector<2x8x16x128xbf16> to vector<256x128xbf16>
    %c7 = arith.constant 7 : index
    %c0_45 = arith.constant 0 : index
    %c0_46 = arith.constant 0 : index
    %98 = vector.load %arg7[%c7, %c0_45, %c0_46] : memref<9x128x128xbf16, #tpu.memory_space<vmem>>, vector<1x128x128xbf16>
    %99 = vector.shape_cast %98 : vector<1x128x128xbf16> to vector<128x128xbf16>
    %cst_47 = arith.constant dense<0.000000e+00> : vector<256x128xf32>
    %100 = tpu.matmul %97, %99, %cst_47 {dimension_numbers = #tpu.dot_dimension_numbers<[1], [0], [0], [1], [0, 0, 1, 1], [], []>} : vector<256x128xbf16>, vector<128x128xbf16>, vector<256x128xf32> -> vector<256x128xf32>
    %101 = arith.addf %95, %100 : vector<256x128xf32>
    %102 = vector.extract_strided_slice %54 {offsets = [0, 2, 2, 0], sizes = [2, 8, 16, 128], strides = [1, 1, 1, 1]} : vector<2x10x18x128xbf16> to vector<2x8x16x128xbf16>
    %103 = vector.shape_cast %102 : vector<2x8x16x128xbf16> to vector<256x128xbf16>
    %c8 = arith.constant 8 : index
    %c0_48 = arith.constant 0 : index
    %c0_49 = arith.constant 0 : index
    %104 = vector.load %arg7[%c8, %c0_48, %c0_49] : memref<9x128x128xbf16, #tpu.memory_space<vmem>>, vector<1x128x128xbf16>
    %105 = vector.shape_cast %104 : vector<1x128x128xbf16> to vector<128x128xbf16>
    %cst_50 = arith.constant dense<0.000000e+00> : vector<256x128xf32>
    %106 = tpu.matmul %103, %105, %cst_50 {dimension_numbers = #tpu.dot_dimension_numbers<[1], [0], [0], [1], [0, 0, 1, 1], [], []>} : vector<256x128xbf16>, vector<128x128xbf16>, vector<256x128xf32> -> vector<256x128xf32>
    %107 = arith.addf %101, %106 : vector<256x128xf32>
    %c0_51 = arith.constant 0 : index
    %c0_52 = arith.constant 0 : index
    %108 = vector.load %arg8[%c0_51, %c0_52] : memref<1x128xf32, #tpu.memory_space<vmem>>, vector<1x128xf32>
    %109 = vector.broadcast %108 : vector<1x128xf32> to vector<256x128xf32>
    %110 = arith.addf %107, %109 : vector<256x128xf32>
    %111 = arith.negf %110 : vector<256x128xf32>
    %112 = math.exp %111 : vector<256x128xf32>
    %cst_53 = arith.constant 1.000000e+00 : f32
    %113 = vector.broadcast %cst_53 : f32 to vector<256x128xf32>
    %114 = arith.addf %113, %112 : vector<256x128xf32>
    %115 = arith.divf %113, %114 : vector<256x128xf32>
    %116 = arith.mulf %110, %115 : vector<256x128xf32>
    %117 = vector.shape_cast %116 : vector<256x128xf32> to vector<2x8x16x128xf32>
    %c0_54 = arith.constant 0 : index
    %c0_55 = arith.constant 0 : index
    %c0_56 = arith.constant 0 : index
    %c0_57 = arith.constant 0 : index
    %118 = vector.load %arg2[%c0_54, %c0_55, %c0_56, %c0_57] : memref<2x8x16x128xf32, #tpu.memory_space<vmem>>, vector<2x8x16x128xf32>
    %119 = arith.addf %117, %118 : vector<2x8x16x128xf32>
    %c0_58 = arith.constant 0 : index
    %c0_59 = arith.constant 0 : index
    %c0_60 = arith.constant 0 : index
    %c0_61 = arith.constant 0 : index
    %120 = vector.load %arg9[%c0_58, %c0_59, %c0_60, %c0_61] : memref<2x8x16x128xf32, #tpu.memory_space<vmem>>, vector<2x8x16x128xf32>
    tpu.vector_store %arg9[%c0_58, %c0_59, %c0_60, %c0_61], %119 {strides = array<i32>} : memref<2x8x16x128xf32, #tpu.memory_space<vmem>>, vector<2x8x16x128xf32>,
    return
  }
  func.func @transform_0(%arg0: i32, %arg1: i32) -> (i32, i32, i32, i32) {
    %c0_i32 = arith.constant 0 : i32
    %c0_i32_0 = arith.constant 0 : i32
    %c0_i32_1 = arith.constant 0 : i32
    return %arg0, %arg1, %c0_i32, %c0_i32_0 : i32, i32, i32, i32
  }
  func.func @transform_1(%arg0: i32, %arg1: i32) -> (i32, i32, i32, i32) {
    %c8_i32 = arith.constant 8 : i32
    %0 = arith.muli %arg1, %c8_i32 : i32
    %c1_i32 = arith.constant 1 : i32
    %1 = arith.subi %0, %c1_i32 : i32
    %c0_i32 = arith.constant 0 : i32
    %2 = arith.maxsi %1, %c0_i32 : i32
    %c0_i32_0 = arith.constant 0 : i32
    %c0_i32_1 = arith.constant 0 : i32
    %c0_i32_2 = arith.constant 0 : i32
    return %arg0, %2, %c0_i32_0, %c0_i32_1 : i32, i32, i32, i32
  }
  func.func @transform_2(%arg0: i32, %arg1: i32) -> (i32, i32, i32, i32) {
    %c1_i32 = arith.constant 1 : i32
    %0 = arith.addi %arg1, %c1_i32 : i32
    %c8_i32 = arith.constant 8 : i32
    %1 = arith.muli %0, %c8_i32 : i32
    %c15_i32 = arith.constant 15 : i32
    %2 = arith.minsi %1, %c15_i32 : i32
    %c0_i32 = arith.constant 0 : i32
    %c0_i32_0 = arith.constant 0 : i32
    %c0_i32_1 = arith.constant 0 : i32
    return %arg0, %2, %c0_i32, %c0_i32_0 : i32, i32, i32, i32
  }
  func.func @transform_3(%arg0: i32, %arg1: i32) -> (i32, i32) {
    %c0_i32 = arith.constant 0 : i32
    %c0_i32_0 = arith.constant 0 : i32
    %c0_i32_1 = arith.constant 0 : i32
    return %c0_i32, %c0_i32_0 : i32, i32
  }
  func.func @transform_4(%arg0: i32, %arg1: i32) -> (i32, i32) {
    %c0_i32 = arith.constant 0 : i32
    %c0_i32_0 = arith.constant 0 : i32
    %c0_i32_1 = arith.constant 0 : i32
    return %c0_i32, %c0_i32_0 : i32, i32
  }
  func.func @transform_5(%arg0: i32, %arg1: i32) -> (i32, i32, i32) {
    %c0_i32 = arith.constant 0 : i32
    %c0_i32_0 = arith.constant 0 : i32
    %c0_i32_1 = arith.constant 0 : i32
    %c0_i32_2 = arith.constant 0 : i32
    return %c0_i32, %c0_i32_0, %c0_i32_1 : i32, i32, i32
  }
  func.func @transform_6(%arg0: i32, %arg1: i32) -> (i32, i32) {
    %c0_i32 = arith.constant 0 : i32
    %c0_i32_0 = arith.constant 0 : i32
    %c0_i32_1 = arith.constant 0 : i32
    return %c0_i32, %c0_i32_0 : i32, i32
  }
  func.func @transform_7(%arg0: i32, %arg1: i32) -> (i32, i32, i32, i32) {
    %c0_i32 = arith.constant 0 : i32
    %c0_i32_0 = arith.constant 0 : i32
    %c0_i32_1 = arith.constant 0 : i32
    return %arg0, %arg1, %c0_i32, %c0_i32_0 : i32, i32, i32, i32
  }
}

</mosaic_0001>

<bundles_post_ra>
// kernel: tpu_custom_call.1
= control target key start
LH: loop header
LB: loop body
LE: loop exit
PB: predicated region body
PF: predicated region fallthrough
CT: control target
= control target key end

     0   :  { %s8735_s0 = inlined_call_operand.hbm [shape: f32[2,16,16,128], index: 0, kind: input, shape index: {}]   ;;  %s8736_s1 = inlined_call_operand.hbm [shape: f32[2,16,16,128], index: 1, kind: input, shape index: {}]   ;;  %s8737_s2 = inlined_call_operand.hbm [shape: f32[2,16,16,128], index: 2, kind: input, shape index: {}]   ;;  %s8738_s3 = inlined_call_operand.hbm [shape: bf16[128,128], index: 3, kind: input, shape index: {}]   ;;  %s8739_s4 = inlined_call_operand.vmem [shape: f32[1,128], index: 4, kind: input, shape index: {}]   ;;  %s8740_s5 = inlined_call_operand.hbm [shape: bf16[9,128,128], index: 5, kind: input, shape index: {}]   ;;  %s8741_s6 = inlined_call_operand.vmem [shape: f32[1,128], index: 6, kind: input, shape index: {}]   ;;  %s8742_s7 = inlined_call_operand.hbm [shape: f32[2,16,16,128], index: 7, kind: output, shape index: {}]  }
   0x1   :  { %8764 = sst [smem:[#allocation96_spill]] %s8738_s3 }
   0x2   :  { %8765 = sst [smem:[#allocation97_spill]] %s8739_s4 }
   0x3   :  { %8766 = sst [smem:[#allocation98_spill]] %s8740_s5 }
   0x4   :  { %8767 = sst [smem:[#allocation99_spill]] %s8741_s6 }
   0x5   :  { %8768 = sst [smem:[#allocation100_spill]] %s8742_s7 }
   0x6   :  { %12 = vsyncpa [#allocation3], 0 }
   0x7   :  { %14 = vsyncpa [#allocation3 + $0x1], 0 }
   0x8   :  { %15 = vsyncpa [#allocation6], 0 }
   0x9   :  { %17 = vsyncpa [#allocation6 + $0x1], 0 }
   0xa   :  { %18 = vsyncpa [#allocation9], 0 }
   0xb   :  { %19 = vsyncpa [#allocation4], 0 }
   0xc   :  { %21 = vsyncpa [#allocation4 + $0x1], 0  ;;  %s6462_s24 = smov 0   ;;  %s6464_s25 = smov 0  }
   0xd   :  { %s6466_s26 = smov 0   ;;  %s6468_s27 = smov 0  }
   0xe   :  { %s6470_s28 = smov 0   ;;  %s6472_s29 = smov 0  }
   0xf   :  { %s6474_s30 = smov 0   ;;  %s6476_s8 = smov 0  }
  0x10   :  { %s6478_s9 = smov 0   ;;  %s6480_s10 = smov 0  }
  0x11   :  { %s6482_s11 = smov 0   ;;  %s6484_s12 = smov 0  }
  0x12 LB: > { %8769 = sst [smem:[#allocation28_spill]] %s6351_s25  ;;  %s6523_s13 = sadd.s32 4294967295, %s6391_s12   ;;  %s6391_s12 = sphi %s6484_s12, %s27_s12   ;;  %s6387_s11 = sphi %s6482_s11, %s8940_s11   ;;  %s6383_s10 = sphi %s6480_s10, %s8939_s10   ;;  %s6379_s9 = sphi %s6478_s9, %s8938_s9   ;;  %s6375_s8 = sphi %s6476_s8, %s8947_s8   ;;  %s6371_s30 = sphi %s6474_s30, %s8946_s30   ;;  %s6367_s29 = sphi %s6472_s29, %s8945_s29   ;;  %s6363_s28 = sphi %s6470_s28, %s8944_s28   ;;  %s6359_s27 = sphi %s6468_s27, %s8943_s27   ;;  %s6355_s26 = sphi %s6466_s26, %s8942_s26   ;;  %s6351_s25 = sphi %s6464_s25, %s8941_s25   ;;  %s6347_s24 = sphi %s6462_s24, %s8934_s24  }
  0x13   : > { %8770 = sst [smem:[#allocation29_spill]] %s6371_s30  ;;  %s36_s15 = sadd.s32 1, %s6387_s11 }
  0x14   : > { %8771 = sst [smem:[#allocation30_spill]] %s6379_s9  ;;  %s48_s16 = sadd.s32 1, %s6379_s9 }
  0x15   : > { %8772 = sst [smem:[#allocation31_spill]] %s6383_s10  ;;  %p37_p0 = scmp.ge.s32.totalorder %s36_s15, 2 }
  0x16   : > { %8773 = sst [smem:[#allocation32_spill]] %s6387_s11  ;;  %p55_p1 = scmp.ne.s32.totalorder %s6379_s9, %s6375_s8 }
  0x17   : > { %p56_p2 = scmp.eq.s32.totalorder %s6391_s12, 0  ;;  %p8744_p3 = scmp.ne.s32.totalorder %s6375_s8, %s6371_s30 }
  0x18   : > { %s8949_s15 = smov (%p37_p0, %s36_s15), 0  ;;  %p8758_p5 = scmp.eq.s32.totalorder %s6523_s13, 0 }
  0x19   : > { %8774 = sst [smem:[#allocation33_spill]] %s8949_s15  ;;  %p6540_p4 = por %p56_p2, %p55_p1 }
  0x1a   : > { %s44_s18 = ssub.s32 %s6387_s11, %s8949_s15  ;;  %s4636_s19 = sshll.u32 %s6387_s11, 3 }
  0x1b   : > { %p46_p6 = scmp.eq.s32.totalorder %s44_s18, 0  ;;  %p6553_p7 = por %p8758_p5, %p8744_p3 }
  0x1c   : > { %s4637_s21 = sadd.s32 4294967295, %s4636_s19  ;;  %s4638_s22 = sshll.u32 %s8949_s15, 3 }
  0x1d   : > { %s8776_s20 = scalar_select %p6553_p7, 1, 0 }
  0x1e   : > { %s6559_s23 = scalar_select %p46_p6, %s6379_s9, %s48_s16  }
  0x1f   : > { %p73_p8 = scmp.gt.s32.totalorder %s4637_s21, 0  ;;  %s4639_s14 = sadd.s32 4294967295, %s4638_s22 }
  0x20   : > { %8777 = sst [smem:[#allocation34_spill]] %s6559_s23  ;;  %p77_p9 = scmp.gt.s32.totalorder %s4639_s14, 0 }
  0x21   : > { %s84_s7 = sadd.s32 1, %s6367_s29  ;;  %s8951_s21 = smov (!%p73_p8, %s4637_s21), 0 }
  0x22   : > { %s8953_s14 = smov (!%p77_p9, %s4639_s14), 0  ;;  %p91_p10 = scmp.ne.s32.totalorder %s6367_s29, %s6363_s28 }
  0x23   : > { %p97_p11 = scmp.ne.s32.totalorder %s6363_s28, %s6359_s27  ;;  %s80_s18 = ssub.s32 %s8951_s21, %s8953_s14 }
  0x24   : > { %s4833_s16 = sadd.s32 8, %s4636_s19  ;;  %p82_p12 = scmp.eq.s32.totalorder %s80_s18, 0 }
  0x25   : > { %p6571_p13 = por %p91_p10, %p56_p2  ;;  %p6577_p0 = por %p97_p11, %p8758_p5 }
  0x26   : > { %p109_p6 = scmp.lt.s32.totalorder %s4833_s16, 15  ;;  %s4835_s14 = sadd.s32 8, %s4638_s22 }
  0x27   : > { %s8778_s15 = scalar_select %p6571_p13, 1, 0 }
  0x28   : > { %s8779_s23 = scalar_select %p6577_p0, 1, 0 }
  0x29   : > { %s6582_s27 = scalar_select %p82_p12, %s6367_s29, %s84_s7  }
  0x2a   : > { %s8955_s16 = smov (!%p109_p6, %s4833_s16), 15  ;;  %s120_s19 = sadd.s32 1, %s6355_s26 }
  0x2b   : > { %8780 = sst [smem:[#allocation35_spill]] %s6582_s27  ;;  %p113_p8 = scmp.lt.s32.totalorder %s4835_s14, 15 }
  0x2c   : > { %p127_p9 = scmp.ne.s32.totalorder %s6355_s26, %s6351_s25  ;;  %p133_p10 = scmp.ne.s32.totalorder %s6351_s25, %s6347_s24 }
  0x2d   : > { %p243_p11 = scmp.eq.s32.totalorder %s6523_s13, 1  ;;  %s8957_s14 = smov (!%p113_p8, %s4835_s14), 15 }
  0x2e   : > { %p6594_p3 = por %p127_p9, %p56_p2  ;;  %p6600_p12 = por %p133_p10, %p8758_p5 }
  0x2f   : > { %s116_s22 = ssub.s32 %s8955_s16, %s8957_s14  ;;  %p6608_p6 = por %p243_p11, %p55_p1 }
  0x30   : > { %s8782_s7 = scalar_select %p6600_p12, 1, 0 }
  0x31   : > { %s8784_s27 = scalar_select %p6608_p6, 1, 0 }
  0x32   : > { %8783 = sst [smem:[#allocation36_spill]] %s8782_s7  ;;  %p118_p0 = scmp.eq.s32.totalorder %s116_s22, 0 }
  0x33   : > { %8785 = sst [smem:[#allocation37_spill]] %s8784_s27  ;;  %s8786_s24 = sadd.s32 4294967294, %s6391_s12  }
  0x34   : > { %p249_p8 = scmp.eq.s32.totalorder %s8786_s24, 1  ;;  %p4642_p7 = scmp.ge.s32.totalorder %s6391_s12, 1 }
  0x35   : > { %p256_p13 = scmp.lt.s32.totalorder %s6391_s12, 3  ;;  %p8788_p2 = scmp.ne.s32.totalorder %s6375_s8, %s6371_s30 }
  0x36   : > { %s6617_s6 = scalar_select %p118_p0, %s6355_s26, %s120_s19  }
  0x37   : > { %p6622_p9 = por %p249_p8, %p8788_p2  ;;  %p6626_p10 = pnand %p4642_p7, %p256_p13 }
  0x38   : > { %8787 = sst [smem:[#allocation38_spill]] %s6617_s6  ;;  %s6393_s14 = smov [#allocation8]  }
  0x39   : > { %s8789_s10 = scalar_select %p6622_p9, 1, 0 }
  0x3a   : > { %p5683_p1 = pneg %p6626_p10  ;;  %s268_s22 = sshll.u32 %s6393_s14, 4  ;;  %s269_s22 = int_to_ptr.vmem [resolvable:$true] %s268_s22 }
  0x3b   : > { %8790 = sst [smem:[#allocation39_spill]] %s8789_s10  ;;  %s6394_s19 = smov [#allocation10]  }
  0x3c   : > { %p6634_p11 = pnand %p5683_p1, %p8758_p5  ;;  %s284_s6 = sshll.u32 %s6394_s19, 4  ;;  %s285_s6 = int_to_ptr.vmem [resolvable:$true] %s284_s6 }
  0x3d   : > { %s6236_s10 = scalar_lea.vmem %s269_s22, 1024  ;;  %p6244_p2 = scmp.lt.s32.totalorder %s269_s22, %s269_s22 }
  0x3e   : > { %p6227_p7 = pneg %p6634_p11  ;;  %p6237_p13 = scmp.ne.s32.totalorder %s269_s22, %s6236_s10 }
  0x3f   : > { %p6245_p9 = scmp.lt.s32.totalorder %s6236_s10, %s6236_s10 }
  0x40   : > { %p6239_p0 = pnand %p6237_p13, %p6227_p7 }
  0x41   : > { %p6246_p6 = por %p6245_p9, %p6244_p2 }
  0x42   : > { %p6240_p8 = pneg %p6239_p0 }
  0x44   : > { %p6247_p12 = pnand %p6246_p6, %p6240_p8 }
  0x46   : > { %6250 = shalt.err (!%p6247_p12)
}
  0x47   : > { %s6395_s14 = smov 64   ;;  %s6396_s30 = smov 4  }
  0x48   : > { %s8793_s3 = sld [smem:[#allocation96_spill]]  ;;  %s6262_s7 = scalar_lea.vmem %s285_s6, 9216 }
  0x49   : > { %p6263_p1 = scmp.ne.s32.totalorder %s285_s6, %s6262_s7  ;;  %p6270_p5 = scmp.lt.s32.totalorder %s285_s6, %s285_s6 }
  0x4a   : > { %p6271_p9 = scmp.lt.s32.totalorder %s6262_s7, %s6262_s7 }
  0x4b   : > { %p6265_p13 = pnand %p6263_p1, %p6227_p7 }
  0x4c   : > { %p6272_p6 = por %p6271_p9, %p6270_p5 }
  0x4d   : > { %p6266_p0 = pneg %p6265_p13 }
  0x4e   : > { %5686 = dma.hbm_to_vmem [thread:$0]  (!%p6634_p11), %s8793_s3, 1024, %s269_s22, [#allocation9], %s6395_s14, %s6395_s14, %s6396_s30  }
  0x4f   : > { %p6273_p12 = pnand %p6272_p6, %p6266_p0 }
  0x51   : > { %6276 = shalt.err (!%p6273_p12)
}
  0x52   : > { %s8794_s5 = sld [smem:[#allocation98_spill]]  ;;  %p4645_p8 = scmp.ge.s32.totalorder %s6391_s12, 2 }
  0x54   : > { %297 = sbr.rel (%p4645_p8) target bundleno = 131 (0x83), region = 32 }
  0x58   : > { %5689 = dma.hbm_to_vmem [thread:$0]  (!%p6634_p11), %s8794_s5, 9216, %s285_s6, [#allocation9], %s6395_s14, %s6395_s14, %s6396_s30  }
  0x59   : > { %s301_s27 = sand.u32 1, %s6379_s9   ;;  %s4837_s7 = sshll.u32 %s6387_s11, 11 }
  0x5a   : > { %s4646_s22 = sshll.u32 %s301_s27, 8  ;;  %s315_s6 = scalar_lea.hbm %s8735_s0, %s4837_s7 }
  0x5b   : > { %s5644_s25 = scalar_select %p6540_p4, [#allocation0], [#allocation20] }
  0x5c   : > { %s305_s30 = scalar_lea.vmem [#allocation2], %s4646_s22  ;;  %s6397_s3 = smov 4096  }
  0x5d   : > { %s328_s14 = sshll.u32 %s305_s30, 4  ;;  %s320_s10 = sld [smem:[%s5644_s25]]   ;;  %s329_s14 = int_to_ptr.vmem [resolvable:$true] %s328_s14 }
  0x5e   : > { %5645 = sst [smem:[#allocation13]] (%p6540_p4), %s6397_s3  ;;  %s6398_s5 = smov 2048  }
  0x5f   : > { %5646 = sst [smem:[#allocation13 + $0x1]] (%p6540_p4), %s6398_s5  ;;  %s6399_s11 = smov 16  }
  0x60   : > { %5647 = sst [smem:[#allocation13 + $0x2]] (%p6540_p4), %s6399_s11  ;;  %s6400_s9 = smov 128  }
  0x61   : > { %5648 = sst [smem:[#allocation13 + $0x3]] (%p6540_p4), %s6400_s9  ;;  %s6401_s22 = smov 8  }
  0x62   : > { %5649 = sst [smem:[#allocation13 + $0x4]] (%p6540_p4), %s6400_s9  ;;  %s302_s19 = scalar_lea.sflag [#allocation3], %s301_s27 }
  0x63   : > { %s4650_s7 = sshll.u32 %s320_s10, 26  ;;  %5650 = sst [smem:[#allocation13 + $0x5]] (%p6540_p4), %s6401_s22 }
  0x64   : > { %s4651_s24 = sadd.s32 134217728, %s4650_s7  ;;  %s6402_s25 = smov 131072  }
  0x65   : > { %5651 = dma.general (%p6540_p4), %s315_s6, 4096, %s329_s14, %s302_s19, %s6402_s25, [#allocation13], %s4651_s24, 0  }
  0x66   : > { %s351_s3 = sand.u32 1, %s6391_s12   ;;  %s353_s5 = sand.u32 1, %s6367_s29  }
  0x67   : > { %s4652_s9 = sshll.u32 %s353_s5, 5  ;;  %s4838_s11 = sshll.u32 %s8951_s21, 8 }
  0x68   : > { %s368_s27 = scalar_lea.hbm %s8736_s1, %s4838_s11  ;;  %p8795_p5 = scmp.ne.s32.totalorder %s8778_s15, 0 }
  0x69   : > { %s355_s6 = scalar_lea.vmem [#allocation5], %s4652_s9  ;;  %s6403_s22 = smov 4096  }
  0x6a   : > { %s5652_s17 = scalar_select %p8795_p5, [#allocation0], [#allocation21] }
  0x6b   : > { %s381_s14 = sshll.u32 %s355_s6, 4  ;;  %5653 = sst [smem:[#allocation15]] (%p8795_p5), %s6403_s22  ;;  %s382_s14 = int_to_ptr.vmem [resolvable:$true] %s381_s14 }
  0x6c   : > { %s373_s7 = sld [smem:[%s5652_s17]]   ;;  %s6404_s24 = smov 256  }
  0x6d   : > { %5654 = sst [smem:[#allocation15 + $0x1]] (%p8795_p5), %s6404_s24  ;;  %s6405_s19 = smov 2  }
  0x6e   : > { %5655 = sst [smem:[#allocation15 + $0x2]] (%p8795_p5), %s6405_s19  ;;  %s6406_s21 = smov 128  }
  0x6f   : > { %5656 = sst [smem:[#allocation15 + $0x3]] (%p8795_p5), %s6406_s21  ;;  %s6407_s5 = smov 8  }
  0x70   : > { %5657 = sst [smem:[#allocation15 + $0x4]] (%p8795_p5), %s6406_s21  ;;  %s6700_s11 = scalar_lea.sflag [#allocation6], %s351_s3 }
  0x71   : > { %5658 = sst [smem:[#allocation15 + $0x5]] (%p8795_p5), %s6407_s5  ;;  %s6408_s30 = smov 131072  }
  0x72   : > { %s4657_s25 = sshll.u32 %s373_s7, 26 }
  0x73   : > { %s4658_s9 = sadd.s32 134217728, %s4657_s25 }
  0x74   : > { %5659 = dma.general (%p8795_p5), %s368_s27, 512, %s382_s14, %s6700_s11, %s6408_s30, [#allocation15], %s4658_s9, 0  }
  0x75   : > { %s406_s10 = sand.u32 1, %s6355_s26   ;;  %s4841_s6 = sshll.u32 %s8955_s16, 8 }
  0x76   : > { %s4659_s17 = sshll.u32 %s406_s10, 5  ;;  %s421_s24 = scalar_lea.hbm %s8737_s2, %s4841_s6 }
  0x77   : > { %s5660_s7 = scalar_select %p6594_p3, [#allocation0], [#allocation22] }
  0x78   : > { %s6409_s15 = smov 4096   ;;  %s408_s14 = scalar_lea.vmem [#allocation7], %s4659_s17 }
  0x79   : > { %5661 = sst [smem:[#allocation17]] (%p6594_p3), %s6409_s15  ;;  %s434_s19 = sshll.u32 %s408_s14, 4  ;;  %s435_s19 = int_to_ptr.vmem [resolvable:$true] %s434_s19 }
  0x7a   : > { %s426_s27 = sld [smem:[%s5660_s7]]   ;;  %s6410_s21 = smov 256  }
  0x7b   : > { %5662 = sst [smem:[#allocation17 + $0x1]] (%p6594_p3), %s6410_s21  ;;  %s6411_s25 = smov 2  }
  0x7c   : > { %5663 = sst [smem:[#allocation17 + $0x2]] (%p6594_p3), %s6411_s25  ;;  %s6412_s16 = smov 128  }
  0x7d   : > { %5664 = sst [smem:[#allocation17 + $0x3]] (%p6594_p3), %s6412_s16  ;;  %s6413_s9 = smov 8  }
  0x7e   : > { %5665 = sst [smem:[#allocation17 + $0x4]] (%p6594_p3), %s6412_s16  ;;  %s6414_s10 = smov 131072  }
  0x7f   : > { %5666 = sst [smem:[#allocation17 + $0x5]] (%p6594_p3), %s6413_s9 }
  0x80   : > { %s4663_s5 = sshll.u32 %s426_s27, 26 }
  0x81   : > { %s4664_s30 = sadd.s32 134217728, %s4663_s5 }
  0x82   : > { %5667 = dma.general (%p6594_p3), %s421_s24, 512, %s435_s19, %s6700_s11, %s6414_s10, [#allocation17], %s4664_s30, 0  }
  0x83 PF: > { %459 = sbr.rel (%p6626_p10) target bundleno = 1070 (0x42e), region = 48 }
  0x88   : > { %s6730_s17 = sand.u32 1, %s6375_s8   ;;  %p8796_p4 = scmp.ne.s32.totalorder %s8776_s20, 0 }
  0x89   : > { %s4666_s6 = sshll.u32 %s6730_s17, 8  ;;  %s462_s7 = scalar_lea.sflag [#allocation3], %s6730_s17 }
  0x8a   : > { %s6736_s22 = scalar_lea.vmem [#allocation2], %s4666_s6 }
  0x8b   : > { %6326 = dma.done.wait (%p8796_p4), %s462_s7, 4096  }
  0x8c   : > { %6328 = vsyncadd (%p8796_p4), %s462_s7, 4294963200  ;;  %s470_s4 = sand.u32 1, %s6523_s13   ;;  %s472_s18 = sand.u32 1, %s6363_s28  }
  0x8d   : > { %s4667_s11 = sshll.u32 %s472_s18, 5  ;;  %s471_s3 = scalar_lea.sflag [#allocation6], %s470_s4 }
  0x8e   : > { %s6744_s24 = scalar_lea.vmem [#allocation5], %s4667_s11  ;;  %p8797_p3 = scmp.ne.s32.totalorder %s8779_s23, 0 }
  0x90   : > { %6330 = dma.done.wait (%p8797_p3), %s471_s3, 512  }
  0x91   : > { %6332 = vsyncadd (%p8797_p3), %s471_s3, 4294966784  ;;  %s8798_s15 = sld [smem:[#allocation28_spill]] }
  0x92   : > { %s8799_s27 = sld [smem:[#allocation36_spill]] }
  0x97   : > { %s481_s14 = sand.u32 1, %s8798_s15  }
  0x98   : > { %s4668_s19 = sshll.u32 %s481_s14, 5  ;;  %p8800_p10 = scmp.ne.s32.totalorder %s8799_s27, 0 }
  0x99   : > { %s6751_s20 = scalar_lea.vmem [#allocation7], %s4668_s19 }
  0x9a   : > { %6334 = dma.done.wait (%p8800_p10), %s471_s3, 512  }
  0x9b   : > { %6336 = vsyncadd (%p8800_p10), %s471_s3, 4294966784  ;;  %p8801_p11 = scmp.eq.s32.totalorder %s6523_s13, 0 }
  0x9d   : > { %6338 = dma.done.wait (%p8801_p11), [#allocation9], 10240   ;;  %p8802_p7 = pmov %p8801_p11 }
  0x9e   : > { %v6761_v0 = vld [vmem:[#allocation8 + $0x38] sm:$0xff]   ;;  %v6763_v1 = vld [vmem:[#allocation8 + $0x30] sm:$0xff]   ;;  %v6771_v2 = vld [vmem:[#allocation8 + $0x28] sm:$0xff]   ;;  %s8803_s21 = sld [smem:[#allocation97_spill]]  ;;  %vm1429_vm0 = vcmask 1040384   ;;  %vm2164_vm5 = vcmask 1046528  }
  0x9f   : > { %6340 = vsyncadd (%p8802_p7), [#allocation9], 4294957056  ;;  %5104 = vmatprep.subr.bf16.mxu0 %v6761_v0  ;;  %5624 = vmatprep.subr.bf16.mxu1 %v6761_v0  ;;  %v6775_v3 = vld [vmem:[#allocation8 + $0x20] sm:$0xff]   ;;  %v565_v5 = vld [vmem:[%s6736_s22 + $0x8] sm:$0xff]  ;;  %s8804_s25 = sld [smem:[#allocation31_spill]]  ;;  %s8511_s18 = scalar_lea.vmem [#allocation11], %s4666_s6 }
  0xa0   : > { %5105 = vmatpush3.bf16.msra.mxu0 %v6761_v0  ;;  %5632 = vmatpush3.bf16.msra.mxu1 %v6761_v0  ;;  %v564_v4 = vld [vmem:[%s6736_s22] sm:$0xff]  ;;  %v581_v8 = vld [vmem:[%s6736_s22 + $0x88] sm:$0xff]  ;;  %v6787_v10 = vld [vmem:[#allocation8 + $0x18] sm:$0xff]   ;;  %vm1430_vm1 = vsmask.f32 256  ;;  %s8875_s4 = sld [smem:[#allocation99_spill]] }
  0xa1   : > { %5106 = vmatprep.subr.bf16.mxu0 %v6763_v1  ;;  %5625 = vmatprep.subr.bf16.mxu1 %v6763_v1  ;;  %v580_v6 = vld [vmem:[%s6736_s22 + $0x80] sm:$0xff]  ;;  %v596_v7 = vpack.c.bf16 %v565_v5, %v564_v4  ;;  %v6793_v11 = vld [vmem:[#allocation8 + $0x10] sm:$0xff]   ;;  %v6797_v12 = vld [vmem:[#allocation8 + $0x8] sm:$0xff]   ;;  %vm1488_vm4 = vsmask.f32 7424  ;;  %s4439_s6 = scalar_lea.sflag [#allocation4], %s6730_s17 }
  0xa2   : > { %v604_v9 = vpack.c.bf16 %v581_v8, %v580_v6  ;;  %v6801_v13 = vld [vmem:[#allocation8] sm:$0xff]   ;;  %v566_v14 = vld [vmem:[%s6736_s22 + $0x10] sm:$0xff]  ;;  %v567_v15 = vld [vmem:[%s6736_s22 + $0x18] sm:$0xff] }
  0xa3   : > { %5120 = vmatprep.mubr.bf16.mxu0 %v596_v7  ;;  %v582_v16 = vld [vmem:[%s6736_s22 + $0x90] sm:$0xff]  ;;  %v583_v17 = vld [vmem:[%s6736_s22 + $0x98] sm:$0xff]  ;;  %v568_v18 = vld [vmem:[%s6736_s22 + $0x20] sm:$0xff]  ;;  %v597_v22 = vpack.c.bf16 %v567_v15, %v566_v14 }
  0xa4   : > { %5107 = vmatpush3.bf16.msra.mxu0 %v6763_v1  ;;  %5633 = vmatpush3.bf16.msra.mxu1 %v6763_v1  ;;  %v569_v19 = vld [vmem:[%s6736_s22 + $0x28] sm:$0xff]  ;;  %v584_v20 = vld [vmem:[%s6736_s22 + $0xa0] sm:$0xff]  ;;  %v605_v23 = vpack.c.bf16 %v583_v17, %v582_v16  ;;  %v570_v26 = vld [vmem:[%s6736_s22 + $0x30] sm:$0xff] }
  0xa5   : > { %5108 = vmatprep.subr.bf16.mxu0 %v6771_v2  ;;  %5626 = vmatprep.subr.bf16.mxu1 %v6771_v2  ;;  %v585_v21 = vld [vmem:[%s6736_s22 + $0xa8] sm:$0xff]  ;;  %v598_v24 = vpack.c.bf16 %v569_v19, %v568_v18  ;;  %v571_v27 = vld [vmem:[%s6736_s22 + $0x38] sm:$0xff]  ;;  %v586_v28 = vld [vmem:[%s6736_s22 + $0xb0] sm:$0xff]  ;;  %p1237_p2 = scmp.eq.s32.totalorder %s8804_s25, 0  ;;  %p1243_p1 = scmp.eq.s32.totalorder %s8804_s25, 1 }
  0xa6   : > { %5136 = vmatprep.mubr.bf16.mxu1 %v604_v9  ;;  %v606_v25 = vpack.c.bf16 %v585_v21, %v584_v20  ;;  %v587_v29 = vld [vmem:[%s6736_s22 + $0xb8] sm:$0xff]  ;;  %v572_v30 = vld [vmem:[%s6736_s22 + $0x40] sm:$0xff]  ;;  %v573_v31 = vld [vmem:[%s6736_s22 + $0x48] sm:$0xff]  ;;  %v599_v34 = vpack.c.bf16 %v571_v27, %v570_v26 }
  0xa7   : > { %v588_v32 = vld [vmem:[%s6736_s22 + $0xc0] sm:$0xff]  ;;  %v589_v33 = vld [vmem:[%s6736_s22 + $0xc8] sm:$0xff]  ;;  %v607_v35 = vpack.c.bf16 %v587_v29, %v586_v28  ;;  %v600_v36 = vpack.c.bf16 %v573_v31, %v572_v30  ;;  %v574_v38 = vld [vmem:[%s6736_s22 + $0x50] sm:$0xff]  ;;  %s7080_s16 = scalar_select %p1237_p2, 1, 0 }
  0xa8   : > { %5109 = vmatpush3.bf16.msra.mxu0 %v6771_v2  ;;  %5634 = vmatpush3.bf16.msra.mxu1 %v6771_v2  ;;  %v608_v37 = vpack.c.bf16 %v589_v33, %v588_v32  ;;  %v575_v39 = vld [vmem:[%s6736_s22 + $0x58] sm:$0xff]  ;;  %v590_v40 = vld [vmem:[%s6736_s22 + $0xd0] sm:$0xff]  ;;  %v576_v42 = vld [vmem:[%s6736_s22 + $0x60] sm:$0xff]  ;;  %s1244_s30 = scalar_select %p1243_p1, 1, 0 }
  0xa9   : > { %5110 = vmatprep.subr.bf16.mxu0 %v6775_v3  ;;  %5627 = vmatprep.subr.bf16.mxu1 %v6775_v3  ;;  %v591_v41 = vld [vmem:[%s6736_s22 + $0xd8] sm:$0xff]  ;;  %v577_v43 = vld [vmem:[%s6736_s22 + $0x68] sm:$0xff]  ;;  %v592_v44 = vld [vmem:[%s6736_s22 + $0xe0] sm:$0xff]  ;;  %v601_v46 = vpack.c.bf16 %v575_v39, %v574_v38 }
  0xaa   : > { %v593_v45 = vld [vmem:[%s6736_s22 + $0xe8] sm:$0xff]  ;;  %v609_v47 = vpack.c.bf16 %v591_v41, %v590_v40  ;;  %v602_v48 = vpack.c.bf16 %v577_v43, %v576_v42  ;;  %v578_v50 = vld [vmem:[%s6736_s22 + $0x70] sm:$0xff]  ;;  %v579_v51 = vld [vmem:[%s6736_s22 + $0x78] sm:$0xff] }
  0xab   : > { %v610_v49 = vpack.c.bf16 %v593_v45, %v592_v44  ;;  %v594_v52 = vld [vmem:[%s6736_s22 + $0xf0] sm:$0xff]  ;;  %v595_v53 = vld [vmem:[%s6736_s22 + $0xf8] sm:$0xff]  ;;  %v1067_v54 = vld [vmem:[%s6744_s24] sm:$0xff]  ;;  %v603_v56 = vpack.c.bf16 %v579_v51, %v578_v50 }
  0xac   : > { %5111 = vmatpush3.bf16.msra.mxu0 %v6775_v3  ;;  %5635 = vmatpush3.bf16.msra.mxu1 %v6775_v3  ;;  %v1068_v55 = vld [vmem:[%s6744_s24 + $0x8] sm:$0xff]  ;;  %v611_v57 = vpack.c.bf16 %v595_v53, %v594_v52  ;;  %v1069_v59 = vld [vmem:[%s6744_s24 + $0x10] sm:$0xff]  ;;  %v1070_v60 = vld [vmem:[%s6744_s24 + $0x18] sm:$0xff] }
  0xad   : > { %5112 = vmatprep.subr.bf16.mxu0 %v6787_v10  ;;  %5628 = vmatprep.subr.bf16.mxu1 %v6787_v10  ;;  %v1071_v58 = vpack.c.bf16 %v1068_v55, %v1067_v54  ;;  %v1072_v61 = vpack.c.bf16 %v1070_v60, %v1069_v59  ;;  %v1152_v62 = vld [vmem:[%s6751_s20] sm:$0xff]  ;;  %v1153_v63 = vld [vmem:[%s6751_s20 + $0x8] sm:$0xff]  ;;  %v5832_v4 = vld [vmem:[#allocation10 + $0x38] sm:$0xff]  }
  0xae   : > { %v5833_v5 = vld [vmem:[#allocation10 + $0x30] sm:$0xff]   ;;  %v5834_v6 = vld [vmem:[#allocation10 + $0x78] sm:$0xff]   ;;  %v5835_v7 = vld [vmem:[#allocation10 + $0x28] sm:$0xff]  }
  0xaf   : > { %v5836_v8 = vld [vmem:[#allocation10 + $0x70] sm:$0xff]   ;;  %v5837_v9 = vld [vmem:[#allocation10 + $0x20] sm:$0xff]   ;;  %v5842_v14 = vld [vmem:[#allocation10 + $0x58] sm:$0xff]  }
  0xb0   : > { %5113 = vmatpush3.bf16.msra.mxu0 %v6787_v10  ;;  %5636 = vmatpush3.bf16.msra.mxu1 %v6787_v10  ;;  %v5843_v15 = vld [vmem:[#allocation10 + $0x8] sm:$0xff]   ;;  %v5844_v16 = vld [vmem:[#allocation10 + $0x50] sm:$0xff]   ;;  %v5845_v17 = vld [vmem:[#allocation10] sm:$0xff]  }
  0xb1   : > { %5114 = vmatprep.subr.bf16.mxu0 %v6793_v11  ;;  %5629 = vmatprep.subr.bf16.mxu1 %v6793_v11  ;;  %v5846_v18 = vld [vmem:[#allocation10 + $0x48] sm:$0xff]   ;;  %v5847_v19 = vld [vmem:[#allocation10 + $0x40] sm:$0xff]   ;;  %v6881_v20 = vld [vmem:[#allocation10 + $0xb8] sm:$0xff]  }
  0xb2   : > { %v6886_v21 = vld [vmem:[%s8803_s21] ss:$0 sm:$0xff]  ;;  %vm7119_vm3 = vmand %vm1429_vm0, %vm1430_vm1 }
  0xb4   : > { %5115 = vmatpush3.bf16.msra.mxu0 %v6793_v11  ;;  %5637 = vmatpush3.bf16.msra.mxu1 %v6793_v11 }
  0xb5   : > { %5116 = vmatprep.subr.bf16.mxu0 %v6797_v12  ;;  %5630 = vmatprep.subr.bf16.mxu1 %v6797_v12 }
  0xb8   : > { %5117 = vmatpush3.bf16.msra.mxu0 %v6797_v12  ;;  %5638 = vmatpush3.bf16.msra.mxu1 %v6797_v12 }
  0xb9   : > { %5118 = vmatprep.subr.bf16.mxu0 %v6801_v13  ;;  %5631 = vmatprep.subr.bf16.mxu1 %v6801_v13 }
  0xbc   : > { %5119 = vmatpush3.bf16.msra.mxu0 %v6801_v13  ;;  %5639 = vmatpush3.bf16.msra.mxu1 %v6801_v13 }
  0xbd   : > { %5152 = vmatprep.subr.bf16.mxu1 %v6761_v0  ;;  %5192 = vmatprep.subr.bf16.mxu0 %v5834_v6 }
  0xbf   : > { %5121 = vmatmul.mubr.bf16.vlgmr.msra.gmra.mxu0 %v597_v22  ;;  %5137 = vmatmul.mubr.bf16.vlgmr.msra.gmra.mxu1 %v605_v23 }
  0xc0   : > { %5153 = vmatpush3.bf16.msra.mxu1 %v6761_v0  ;;  %5124 = vmatprep.mubr.bf16.mxu0 %v598_v24 }
  0xc1   : > { %5154 = vmatprep.subr.bf16.mxu1 %v6763_v1  ;;  %5140 = vmatprep.mubr.bf16.mxu1 %v606_v25 }
  0xc2   : > { %5193 = vmatpush3.bf16.msra.mxu0 %v5834_v6 }
  0xc3   : > { %5194 = vmatprep.subr.bf16.mxu0 %v5836_v8 }
  0xc4   : > { %5155 = vmatpush3.bf16.msra.mxu1 %v6763_v1 }
  0xc5   : > { %5156 = vmatprep.subr.bf16.mxu1 %v6771_v2 }
  0xc6   : > { %5195 = vmatpush3.bf16.msra.mxu0 %v5836_v8 }
  0xc7   : > { %5125 = vmatmul.mubr.bf16.gmra.mxu0 %v599_v34  ;;  %5141 = vmatmul.mubr.bf16.gmra.mxu1 %v607_v35 }
  0xc8   : > { %5157 = vmatpush3.bf16.msra.mxu1 %v6771_v2  ;;  %5128 = vmatprep.mubr.bf16.mxu0 %v600_v36 }
  0xc9   : > { %5158 = vmatprep.subr.bf16.mxu1 %v6775_v3  ;;  %5144 = vmatprep.mubr.bf16.mxu1 %v608_v37 }
  0xcc   : > { %5159 = vmatpush3.bf16.msra.mxu1 %v6775_v3 }
  0xcd   : > { %5160 = vmatprep.subr.bf16.mxu1 %v6787_v10 }
  0xcf   : > { %5129 = vmatmul.mubr.bf16.gmra.mxu0 %v601_v46  ;;  %5145 = vmatmul.mubr.bf16.gmra.mxu1 %v609_v47  ;;  %v6911_v47 = vld [vmem:[#allocation10 + $0xf8] sm:$0xff]  }
  0xd0   : > { %5161 = vmatpush3.bf16.msra.mxu1 %v6787_v10  ;;  %5132 = vmatprep.mubr.bf16.mxu0 %v602_v48 }
  0xd1   : > { %5162 = vmatprep.subr.bf16.mxu1 %v6793_v11  ;;  %5148 = vmatprep.mubr.bf16.mxu1 %v610_v49 }
  0xd4   : > { %5163 = vmatpush3.bf16.msra.mxu1 %v6793_v11 }
  0xd5   : > { %5164 = vmatprep.subr.bf16.mxu1 %v6797_v12 }
  0xd7   : > { %5133 = vmatmul.mubr.bf16.gmra.mxu0 %v603_v56  ;;  %5149 = vmatmul.mubr.bf16.gmra.mxu1 %v611_v57 }
  0xd8   : > { %5165 = vmatpush3.bf16.msra.mxu1 %v6797_v12  ;;  %5168 = vmatprep.mubr.bf16.mxu1 %v1071_v58 }
  0xd9   : > { %5166 = vmatprep.subr.bf16.mxu1 %v6801_v13 }
  0xdc   : > { %5167 = vmatpush3.bf16.msra.mxu1 %v6801_v13 }
  0xdd   : > { %5172 = vmatprep.subr.bf16.mxu1 %v6761_v0 }
  0xdf   : > { %5169 = vmatmul.mubr.bf16.vlgmr.msra.gmra.mxu1 %v1072_v61 }
  0xe0   : > { %5173 = vmatpush3.bf16.msra.mxu1 %v6761_v0  ;;  %v1156_v0 = vpack.c.bf16 %v1153_v63, %v1152_v62 }
  0xe1   : > { %5174 = vmatprep.subr.bf16.mxu1 %v6763_v1 }
  0xe2   : > { %5188 = vmatprep.mubr.bf16.mxu1 %v1156_v0 }
  0xe4   : > { %5175 = vmatpush3.bf16.msra.mxu1 %v6763_v1  ;;  %v1154_v1 = vld [vmem:[%s6751_s20 + $0x10] sm:$0xff] }
  0xe5   : > { %5176 = vmatprep.subr.bf16.mxu1 %v6771_v2 }
  0xe8   : > { %5177 = vmatpush3.bf16.msra.mxu1 %v6771_v2  ;;  %v1155_v2 = vld [vmem:[%s6751_s20 + $0x18] sm:$0xff] }
  0xe9   : > { %5178 = vmatprep.subr.bf16.mxu1 %v6775_v3 }
  0xec   : > { %5179 = vmatpush3.bf16.msra.mxu1 %v6775_v3  ;;  %v1157_v3 = vpack.c.bf16 %v1155_v2, %v1154_v1 }
  0xed   : > { %5180 = vmatprep.subr.bf16.mxu1 %v6787_v10 }
  0xf0   : > { %5181 = vmatpush3.bf16.msra.mxu1 %v6787_v10  ;;  %v5838_v10 = vld [vmem:[#allocation10 + $0x68] sm:$0xff]  }
  0xf1   : > { %5182 = vmatprep.subr.bf16.mxu1 %v6793_v11  ;;  %5196 = vmatprep.subr.bf16.mxu0 %v5838_v10 }
  0xf2   : > { %5197 = vmatpush3.bf16.msra.mxu0 %v5838_v10 }
  0xf4   : > { %5183 = vmatpush3.bf16.msra.mxu1 %v6793_v11  ;;  %v5839_v11 = vld [vmem:[#allocation10 + $0x18] sm:$0xff]  }
  0xf5   : > { %5184 = vmatprep.subr.bf16.mxu1 %v6797_v12 }
  0xf8   : > { %5185 = vmatpush3.bf16.msra.mxu1 %v6797_v12  ;;  %v5840_v12 = vld [vmem:[#allocation10 + $0x60] sm:$0xff]  }
  0xf9   : > { %5186 = vmatprep.subr.bf16.mxu1 %v6801_v13  ;;  %5198 = vmatprep.subr.bf16.mxu0 %v5840_v12 }
  0xfa   : > { %5199 = vmatpush3.bf16.msra.mxu0 %v5840_v12 }
  0xfb   : > { %5200 = vmatprep.subr.bf16.mxu0 %v5842_v14 }
  0xfc   : > { %5187 = vmatpush3.bf16.msra.mxu1 %v6801_v13  ;;  %v5841_v13 = vld [vmem:[#allocation10 + $0x10] sm:$0xff]  }
  0xfd   : > { %5240 = vmatprep.subr.bf16.mxu1 %v5832_v4 }
  0xfe   : > { %5201 = vmatpush3.bf16.msra.mxu0 %v5842_v14 }
  0xff   : > { %5189 = vmatmul.mubr.bf16.vlgmr.msra.gmra.mxu1 %v1157_v3  ;;  %5202 = vmatprep.subr.bf16.mxu0 %v5844_v16 }
 0x100   : > { %5241 = vmatpush3.bf16.msra.mxu1 %v5832_v4 }
 0x101   : > { %5242 = vmatprep.subr.bf16.mxu1 %v5833_v5 }
 0x102   : > { %5203 = vmatpush3.bf16.msra.mxu0 %v5844_v16 }
 0x103   : > { %5204 = vmatprep.subr.bf16.mxu0 %v5846_v18 }
 0x104   : > { %5243 = vmatpush3.bf16.msra.mxu1 %v5833_v5 }
 0x105   : > { %5244 = vmatprep.subr.bf16.mxu1 %v5835_v7 }
 0x106   : > { %5205 = vmatpush3.bf16.msra.mxu0 %v5846_v18 }
 0x107   : > { %5206 = vmatprep.subr.bf16.mxu0 %v5847_v19 }
 0x108   : > { %5245 = vmatpush3.bf16.msra.mxu1 %v5835_v7 }
 0x109   : > { %5246 = vmatprep.subr.bf16.mxu1 %v5837_v9 }
 0x10a   : > { %5207 = vmatpush3.bf16.msra.mxu0 %v5847_v19 }
 0x10b   : > { %5288 = vmatprep.subr.bf16.mxu0 %v6881_v20 }
 0x10c   : > { %5247 = vmatpush3.bf16.msra.mxu1 %v5837_v9 }
 0x10d   : > { %5248 = vmatprep.subr.bf16.mxu1 %v5839_v11 }
 0x110   : > { %5249 = vmatpush3.bf16.msra.mxu1 %v5839_v11 }
 0x111   : > { %5250 = vmatprep.subr.bf16.mxu1 %v5841_v13 }
 0x114   : > { %5251 = vmatpush3.bf16.msra.mxu1 %v5841_v13 }
 0x115   : > { %5252 = vmatprep.subr.bf16.mxu1 %v5843_v15 }
 0x118   : > { %5253 = vmatpush3.bf16.msra.mxu1 %v5843_v15 }
 0x119   : > { %5254 = vmatprep.subr.bf16.mxu1 %v5845_v17 }
 0x11c   : > { %5255 = vmatpush3.bf16.msra.mxu1 %v5845_v17 }
 0x11d   : > { %5336 = vmatprep.subr.bf16.mxu1 %v6911_v47 }
 0x17f   : > { %v5122_v22 = vpop.f32.mrf.mxu0  ;;  %v5138_v23 = vpop.f32.mrf.mxu1 }
 0x180   : > { %v6890_v24 = vadd.f32 %v5138_v23, %v6886_v21  ;;  %v6917_v52 = vadd.f32 %v5122_v22, %v6886_v21 }
 0x181   : > { %v764_v25 = vpop.f32.mrf.mxu1  ;;  %v700_v27 = vpop.f32.mrf.mxu0 }
 0x182   : > { %v4699_v26 = vmul.f32 -1.442695, %v6890_v24  ;;  %v6920_v54 = vadd.f32 %v6886_v21, %v700_v27  ;;  %v6923_v56 = vadd.f32 %v6886_v21, %v764_v25  ;;  %v4683_v59 = vmul.f32 -1.442695, %v6917_v52 }
 0x183   : > { %v5139_v28 = vpop.f32.mrf.mxu1  ;;  %v5123_v31 = vpop.f32.mrf.mxu0 }
 0x184   : > { %5904 = vpow2.f32 %v4699_v26  ;;  %v6894_v29 = vadd.f32 %v5139_v28, %v6886_v21  ;;  %v6927_v60 = vadd.f32 %v5123_v31, %v6886_v21  ;;  %v4681_v63 = vmul.f32 -1.442695, %v6920_v54 }
 0x185   : > { %v6896_v30 = vpop.f32.mrf.mxu1  ;;  %v703_v36 = vpop.f32.mrf.mxu0  ;;  %v4697_v1 = vmul.f32 -1.442695, %v6923_v56 }
 0x186   : > { %v4700_v32 = vmul.f32 -1.442695, %v6894_v29  ;;  %v4684_v4 = vmul.f32 -1.442695, %v6927_v60  ;;  %v6944_v7 = vadd.f32 %v6886_v21, %v703_v36  ;;  %v6957_v18 = vadd.f32 %v6886_v21, %v6896_v30 }
 0x187   : > { %v5142_v33 = vpop.f32.mrf.mxu1  ;;  %v5126_v41 = vpop.f32.mrf.mxu0 }
 0x188   : > { %5906 = vpow2.f32 %v4700_v32  ;;  %v6900_v34 = vadd.f32 %v5142_v33, %v6886_v21  ;;  %v6947_v9 = vadd.f32 %v5126_v41, %v6886_v21  ;;  %v4682_v14 = vmul.f32 -1.442695, %v6944_v7 }
 0x189   : > { %v6902_v35 = vpop.f32.mrf.mxu1  ;;  %v716_v46 = vpop.f32.mrf.mxu0  ;;  %v4698_v28 = vmul.f32 -1.442695, %v6957_v18 }
 0x18a   : > { %v4703_v37 = vmul.f32 -1.442695, %v6900_v34  ;;  %v4687_v19 = vmul.f32 -1.442695, %v6947_v9  ;;  %v6966_v26 = vadd.f32 %v6886_v21, %v716_v46 }
 0x18b   : > { %v5143_v38 = vpop.f32.mrf.mxu1  ;;  %v5127_v51 = vpop.f32.mrf.mxu0 }
 0x18c   : > { %5908 = vpow2.f32 %v4703_v37  ;;  %v6906_v39 = vadd.f32 %v5143_v38, %v6886_v21  ;;  %v6961_v23 = vadd.f32 %v5127_v51, %v6886_v21  ;;  %v4685_v37 = vmul.f32 -1.442695, %v6966_v26 }
 0x18d   : > { %v6908_v40 = vpop.f32.mrf.mxu1  ;;  %v719_v58 = vpop.f32.mrf.mxu0 }
 0x18e   : > { %v4704_v42 = vmul.f32 -1.442695, %v6906_v39  ;;  %v4688_v32 = vmul.f32 -1.442695, %v6961_v23  ;;  %v6979_v33 = vadd.f32 %v6886_v21, %v6908_v40 }
 0x18f   : > { %v5146_v44 = vpop.f32.mrf.mxu1  ;;  %v6936_v3 = vpop.f32.mrf.mxu0 }
 0x190   : > { %5910 = vpow2.f32 %v4704_v42  ;;  %v6930_v61 = vadd.f32 %v5146_v44, %v6886_v21  ;;  %v4702_v40 = vmul.f32 -1.442695, %v6979_v33 }
 0x191   : > { %v5905_v43 = vpop.eup %5904  ;;  %v6913_v49 = vpop.f32.mrf.mxu1 }
 0x192   : > { %v941_v45 = vadd.f32 1.0, %v5905_v43  ;;  %v4707_v5 = vmul.f32 -1.442695, %v6930_v61  ;;  %v732_v10 = vpop.f32.mrf.mxu0 }
 0x193   : > { %v5147_v55 = vpop.f32.mrf.mxu1 }
 0x194   : > { %5912 = vrcp.f32 %v941_v45  ;;  %v6941_v6 = vadd.f32 %v5147_v55, %v6886_v21  ;;  %v5131_v22 = vpop.f32.mrf.mxu0 }
 0x195   : > { %v5907_v48 = vpop.eup %5906  ;;  %v6933_v0 = vpop.f32.mrf.mxu1 }
 0x196   : > { %v942_v50 = vadd.f32 1.0, %v5907_v48  ;;  %v4708_v12 = vmul.f32 -1.442695, %v6941_v6  ;;  %v735_v30 = vpop.f32.mrf.mxu0 }
 0x197   : > { %v5150_v8 = vpop.f32.mrf.mxu1 }
 0x198   : > { %5914 = vrcp.f32 %v942_v50  ;;  %v5134_v46 = vpop.f32.mrf.mxu0 }
 0x199   : > { %v5909_v53 = vpop.eup %5908  ;;  %v6951_v15 = vpop.f32.mrf.mxu1 }
 0x19a   : > { %v945_v57 = vadd.f32 1.0, %v5909_v53 }
 0x19b   : > { %v5151_v27 = vpop.f32.mrf.mxu1 }
 0x19c   : > { %5916 = vrcp.f32 %v945_v57 }
 0x19d   : > { %v5911_v62 = vpop.eup %5910  ;;  %5918 = vpow2.f32 %v4683_v59  ;;  %v6983_v41 = vpop.f32.mrf.mxu1 }
 0x19e   : > { %v946_v2 = vadd.f32 1.0, %v5911_v62  ;;  %v6994_v59 = vpop.f32.mrf.mxu0 }
 0x1a0   : > { %5920 = vrcp.f32 %v946_v2  ;;  %v7000_v2 = vadd.f32 %v5150_v8, %v6886_v21  ;;  %v7008_v8 = vadd.f32 %v6886_v21, %v735_v30  ;;  %v7020_v30 = vadd.f32 %v6936_v3, %v6886_v21 }
 0x1a1   : > { %5922 = vpow2.f32 %v4681_v63  ;;  %v5913_v11 = vpop.eup %5912  ;;  %v6997_v63 = vadd.f32 %v5134_v46, %v6886_v21 }
 0x1a2   : > { %5924 = vpow2.f32 %v4697_v1  ;;  %v1037_v16 = vmul.f32 %v5913_v11, %v6890_v24  ;;  %v6970_v24 = vadd.f32 %v6886_v21, %v6902_v35 }
 0x1a3   : > { %5926 = vpow2.f32 %v4684_v4 }
 0x1a4   : > { %5928 = vpow2.f32 %v4707_v5  ;;  %v4701_v38 = vmul.f32 -1.442695, %v6970_v24 }
 0x1a5   : > { %v5915_v13 = vpop.eup %5914  ;;  %5930 = vpow2.f32 %v4708_v12 }
 0x1a6   : > { %v1038_v17 = vmul.f32 %v5915_v13, %v6894_v29  ;;  %5932 = vpow2.f32 %v4682_v14  ;;  %v6974_v29 = vadd.f32 %v6886_v21, %v719_v58  ;;  %v6992_v58 = vadd.f32 %v6886_v21, %v732_v10  ;;  %v5135_v13 = vpop.f32.mrf.mxu0 }
 0x1a7   : > { %5934 = vpow2.f32 %v4687_v19  ;;  %v4711_v19 = vmul.f32 -1.442695, %v7000_v2 }
 0x1a8   : > { %v6963_v25 = vpack.c.bf16 %v1038_v17, %v1037_v16  ;;  %5936 = vpow2.f32 %v4698_v28  ;;  %v4686_v45 = vmul.f32 -1.442695, %v6974_v29  ;;  %v4689_v5 = vmul.f32 -1.442695, %v6992_v58 }
 0x1a9   : > { %v5917_v31 = vpop.eup %5916  ;;  %5938 = vpow2.f32 %v4688_v32  ;;  %v7004_v16 = vadd.f32 %v5131_v22, %v6886_v21  ;;  %v4695_v17 = vmul.f32 -1.442695, %v6997_v63 }
 0x1aa   : > { %v5919_v36 = vpop.eup %5918  ;;  %v1041_v43 = vmul.f32 %v5917_v31, %v6900_v34  ;;  %5940 = vpow2.f32 %v4685_v37  ;;  %v5170_v34 = vpop.f32.mrf.mxu1  ;;  %v7012_v31 = vadd.f32 %v5135_v13, %v6886_v21  ;;  %v7015_v37 = vadd.f32 %v5151_v27, %v6886_v21 }
 0x1ab   : > { %v925_v51 = vadd.f32 1.0, %v5919_v36  ;;  %5942 = vpow2.f32 %v4701_v38 }
 0x1ac   : > { %5944 = vpow2.f32 %v4686_v45  ;;  %v1107_v10 = vpop.f32.mrf.mxu1  ;;  %v7025_v45 = vadd.f32 %v5170_v34, %v6886_v21  ;;  %v4691_v34 = vmul.f32 -1.442695, %v7020_v30 }
 0x1ad   : > { %v5921_v35 = vpop.eup %5920  ;;  %5946 = vpow2.f32 %v4702_v40  ;;  %v7031_v40 = vadd.f32 %v6886_v21, %v1107_v10 }
 0x1ae   : > { %v5923_v42 = vpop.eup %5922  ;;  %v1042_v44 = vmul.f32 %v5921_v35, %v6906_v39  ;;  %5948 = vrcp.f32 %v925_v51  ;;  %v5171_v32 = vpop.f32.mrf.mxu1  ;;  %v4692_v35 = vmul.f32 -1.442695, %v7004_v16 }
 0x1af   : > { %v5925_v48 = vpop.eup %5924  ;;  %v923_v57 = vadd.f32 1.0, %v5923_v42  ;;  %v4690_v42 = vmul.f32 -1.442695, %v7008_v8  ;;  %v751_v51 = vpop.f32.mrf.mxu0  ;;  %v4713_v10 = vmul.f32 -1.442695, %v7031_v40 }
 0x1b0   : > { %v5927_v50 = vpop.eup %5926  ;;  %v6989_v53 = vpack.c.bf16 %v1042_v44, %v1041_v43  ;;  %v939_v39 = vadd.f32 1.0, %v5925_v48  ;;  %v4696_v44 = vmul.f32 -1.442695, %v7012_v31  ;;  %v1110_v27 = vpop.f32.mrf.mxu1  ;;  %v4712_v48 = vmul.f32 -1.442695, %v7015_v37 }
 0x1b1   : > { %v5929_v55 = vpop.eup %5928  ;;  %v926_v62 = vadd.f32 1.0, %v5927_v50  ;;  %5950 = vrcp.f32 %v923_v57 }
 0x1b2   : > { %v949_v1 = vadd.f32 1.0, %v5929_v55  ;;  %v5931_v4 = vpop.eup %5930  ;;  %5952 = vrcp.f32 %v939_v39  ;;  %v7034_v55 = vadd.f32 %v5171_v32, %v6886_v21  ;;  %v7040_v39 = vadd.f32 %v6886_v21, %v1110_v27 }
 0x1b3   : > { %v5933_v11 = vpop.eup %5932  ;;  %v950_v12 = vadd.f32 1.0, %v5931_v4  ;;  %5954 = vrcp.f32 %v926_v62 }
 0x1b4   : > { %v5935_v14 = vpop.eup %5934  ;;  %5956 = vrcp.f32 %v949_v1  ;;  %v924_v28 = vadd.f32 1.0, %v5933_v11  ;;  %v4715_v1 = vmul.f32 -1.442695, %v7025_v45 }
 0x1b5   : > { %5958 = vpow2.f32 %v4689_v5  ;;  %v929_v36 = vadd.f32 1.0, %v5935_v14  ;;  %v5937_v22 = vpop.eup %5936  ;;  %v7046_v5 = vadd.f32 %v6886_v21, %v751_v51  ;;  %v7054_v14 = vadd.f32 %v6886_v21, %v6994_v59 }
 0x1b6   : > { %5960 = vrcp.f32 %v950_v12  ;;  %v5939_v38 = vpop.eup %5938  ;;  %v4716_v12 = vmul.f32 -1.442695, %v7034_v55 }
 0x1b7   : > { %5962 = vpow2.f32 %v4695_v17  ;;  %v5941_v43 = vpop.eup %5940  ;;  %v930_v50 = vadd.f32 1.0, %v5939_v38  ;;  %v4714_v17 = vmul.f32 -1.442695, %v7040_v39  ;;  %v4693_v59 = vmul.f32 -1.442695, %v7054_v14 }
 0x1b8   : > { %5964 = vpow2.f32 %v4711_v19  ;;  %v7027_v46 = vpop.eup %5942  ;;  %v927_v38 = vadd.f32 1.0, %v5941_v43 }
 0x1b9   : > { %5966 = vrcp.f32 %v924_v28  ;;  %v5945_v3 = vpop.eup %5944 }
 0x1ba   : > { %5968 = vrcp.f32 %v929_v36  ;;  %v7036_v57 = vpop.eup %5946  ;;  %v928_v28 = vadd.f32 1.0, %v5945_v3  ;;  %v4694_v36 = vmul.f32 -1.442695, %v7046_v5 }
 0x1bb   : > { %5970 = vpow2.f32 %v4692_v35  ;;  %v7042_v62 = vpop.eup %5948 }
 0x1bc   : > { %5972 = vpow2.f32 %v4690_v42 }
 0x1bd   : > { %5974 = vpow2.f32 %v4696_v44 }
 0x1be   : > { %v5951_v4 = vpop.eup %5950  ;;  %5976 = vpow2.f32 %v4712_v48 }
 0x1bf   : > { %v7049_v11 = vpop.eup %5952  ;;  %5978 = vrcp.f32 %v930_v50  ;;  %v940_v50 = vadd.f32 1.0, %v5937_v22 }
 0x1c0   : > { %v5955_v13 = vpop.eup %5954  ;;  %5980 = vpow2.f32 %v4691_v34 }
 0x1c1   : > { %v5957_v19 = vpop.eup %5956  ;;  %5982 = vpow2.f32 %v4715_v1 }
 0x1c2   : > { %v5959_v32 = vpop.eup %5958  ;;  %5984 = vpow2.f32 %v4713_v10  ;;  %v1045_v44 = vmul.f32 %v5957_v19, %v6930_v61 }
 0x1c3   : > { %v5961_v35 = vpop.eup %5960  ;;  %5986 = vpow2.f32 %v4716_v12  ;;  %v931_v51 = vadd.f32 1.0, %v5959_v32 }
 0x1c4   : > { %v5963_v42 = vpop.eup %5962  ;;  %v1046_v27 = vmul.f32 %v5961_v35, %v6941_v6  ;;  %5988 = vpow2.f32 %v4714_v17 }
 0x1c5   : > { %v5965_v48 = vpop.eup %5964  ;;  %5990 = vrcp.f32 %v928_v28  ;;  %v937_v43 = vadd.f32 1.0, %v5963_v42 }
 0x1c6   : > { %v5967_v3 = vpop.eup %5966  ;;  %v7061_v34 = vpack.c.bf16 %v1046_v27, %v1045_v44  ;;  %5992 = vpow2.f32 %v4694_v36  ;;  %v953_v12 = vadd.f32 1.0, %v5965_v48  ;;  %v7066_v44 = vadd.f32 %v6886_v21, %v6913_v49 }
 0x1c7   : > { %v5969_v1 = vpop.eup %5968  ;;  %5994 = vrcp.f32 %v927_v38  ;;  %v1020_v42 = vmul.f32 %v5967_v3, %v6944_v7  ;;  %v1021_v7 = vmul.f32 %v7042_v62, %v6917_v52 }
 0x1c8   : > { %v5971_v10 = vpop.eup %5970  ;;  %5996 = vpow2.f32 %v4693_v59  ;;  %v1022_v59 = vmul.f32 %v5955_v13, %v6927_v60  ;;  %v4705_v60 = vmul.f32 -1.442695, %v7066_v44 }
 0x1c9   : > { %v5973_v61 = vpop.eup %5972  ;;  %5998 = vrcp.f32 %v940_v50  ;;  %v934_v17 = vadd.f32 1.0, %v5971_v10 }
 0x1ca   : > { %v5975_v6 = vpop.eup %5974  ;;  %6000 = vrcp.f32 %v931_v51  ;;  %v932_v35 = vadd.f32 1.0, %v5973_v61  ;;  %v1019_v51 = vmul.f32 %v5951_v4, %v6920_v54  ;;  %v7076_v54 = vadd.f32 %v6886_v21, %v6933_v0 }
 0x1cb   : > { %v5977_v19 = vpop.eup %5976  ;;  %6002 = vrcp.f32 %v937_v43  ;;  %v938_v22 = vadd.f32 1.0, %v5975_v6 }
 0x1cc   : > { %v5979_v28 = vpop.eup %5978  ;;  %6004 = vrcp.f32 %v953_v12  ;;  %v954_v32 = vadd.f32 1.0, %v5977_v19  ;;  %v1051_v61 = vpack.c.bf16 %v1020_v42, %v1019_v51  ;;  %v1052_v19 = vpack.c.bf16 %v1022_v59, %v1021_v7 }
 0x1cd   : > { %v5981_v36 = vpop.eup %5980  ;;  %6006 = vrcp.f32 %v938_v22  ;;  %v1026_v62 = vmul.f32 %v5979_v28, %v6961_v23  ;;  %v4706_v42 = vmul.f32 -1.442695, %v7076_v54  ;;  %v7089_v23 = vadd.f32 %v6886_v21, %v6951_v15 }
 0x1ce   : > { %v5983_v38 = vpop.eup %5982  ;;  %6008 = vrcp.f32 %v954_v32  ;;  %v933_v3 = vadd.f32 1.0, %v5981_v36  ;;  %v1257_v22 = vshrl.u32 %v1051_v61, 16  ;;  %v1264_v0 = vshrl.u32 %v1052_v19, 16 }
 0x1cf   : > { %v5985_v27 = vpop.eup %5984  ;;  %6010 = vrcp.f32 %v934_v17  ;;  %v1136_v48 = vadd.f32 1.0, %v5983_v38  ;;  %v1025_v38 = vmul.f32 %v5969_v1, %v6947_v9  ;;  %v1239_v28 = vstv %s7080_s16 }
 0x1d0   : > { %v5987_v50 = vpop.eup %5986  ;;  %6012 = vrcp.f32 %v932_v35  ;;  %v1134_v43 = vadd.f32 1.0, %v5985_v27  ;;  %v7096_v9 = vadd.f32 %v6886_v21, %v6983_v41  ;;  %v1266_v15 = vrot.slane %v1264_v0, 7 }
 0x1d1   : > { %v5989_v10 = vpop.eup %5988  ;;  %6014 = vrcp.f32 %v1136_v48  ;;  %v1137_v49 = vadd.f32 1.0, %v5987_v50  ;;  %v1054_v51 = vpack.c.bf16 %v1026_v62, %v1025_v38  ;;  %vm7110_vm2 = vcmp.eq.s32.totalorder %v1239_v28, 1 }
 0x1d2   : > { %v5991_v12 = vpop.eup %5990  ;;  %6016 = vrcp.f32 %v1134_v43  ;;  %v1135_v13 = vadd.f32 1.0, %v5989_v10  ;;  %v944_v43 = vadd.f32 1.0, %v7036_v57  ;;  %v1259_v10 = vrot.slane %v1257_v22, 7 }
 0x1d3   : > { %v5993_v6 = vpop.eup %5992  ;;  %6018 = vrcp.f32 %v1137_v49  ;;  %v1024_v35 = vmul.f32 %v5991_v12, %v6974_v29  ;;  %v943_v29 = vadd.f32 1.0, %v7027_v46  ;;  %v4710_v22 = vmul.f32 -1.442695, %v7096_v9 }
 0x1d4   : > { %v5995_v4 = vpop.eup %5994  ;;  %6020 = vrcp.f32 %v1135_v13  ;;  %v936_v32 = vadd.f32 1.0, %v5993_v6  ;;  %v1278_v13 = vshrl.u32 %v1054_v51, 16 }
 0x1d5   : > { %v5997_v52 = vpop.eup %5996  ;;  %6022 = vrcp.f32 %v933_v3  ;;  %v1023_v59 = vmul.f32 %v5995_v4, %v6966_v26 }
 0x1d6   : > { %v5999_v17 = vpop.eup %5998  ;;  %6024 = vpow2.f32 %v4705_v60  ;;  %v935_v48 = vadd.f32 1.0, %v5997_v52  ;;  %v1260_v60 = vshll.u32 %v1051_v61, 16  ;;  %v1267_v52 = vshll.u32 %v1052_v19, 16 }
 0x1d7   : > { %v6001_v36 = vpop.eup %6000  ;;  %v1036_v26 = vmul.f32 %v5999_v17, %v6957_v18  ;;  %v1053_v7 = vpack.c.bf16 %v1024_v35, %v1023_v59  ;;  %6026 = vrcp.f32 %v936_v32  ;;  %v1035_v18 = vmul.f32 %v7049_v11, %v6923_v56 }
 0x1d8   : > { %v6003_v27 = vpop.eup %6002  ;;  %6028 = vpow2.f32 %v4706_v42  ;;  %v1269_v56 = vor.u32 %v1267_v52, %v1266_v15  ;;  %v7123_v32 = vrot.slane %v1278_v13, 7 }
 0x1d9   : > { %v6005_v50 = vpop.eup %6004  ;;  %v1033_v49 = vmul.f32 %v6003_v27, %v6997_v63  ;;  %6030 = vrcp.f32 %v935_v48  ;;  %v1271_v63 = vshrl.u32 %v1053_v7, 16  ;;  %v7114_v11 = vpack.c.bf16 %v1036_v26, %v1035_v18 }
 0x1da   : > { %v6007_v1 = vpop.eup %6006  ;;  %v1049_v57 = vmul.f32 %v6005_v50, %v7000_v2  ;;  %6032 = vrcp.f32 %v943_v29  ;;  %v4709_v2 = vmul.f32 -1.442695, %v7089_v23  ;;  %v1274_v26 = vshll.u32 %v1053_v7, 16 }
 0x1db   : > { %v6009_v3 = vpop.eup %6008  ;;  %v1034_v46 = vmul.f32 %v6007_v1, %v7012_v31  ;;  %v1262_v31 = vor.u32 %v1260_v60, %v1259_v10  ;;  %6034 = vrcp.f32 %v944_v43  ;;  %v7128_v59 = vrot.slane %v1271_v63, 7 }
 0x1dc   : > { %v6011_v12 = vpop.eup %6010  ;;  %v1050_v21 = vmul.f32 %v6009_v3, %v7015_v37  ;;  %v7138_v43 = vsel %vm7119_vm3, %v1259_v10, 0  ;;  %v1281_v1 = vshll.u32 %v1054_v51, 16  ;;  %6036 = vpow2.f32 %v4710_v22 }
 0x1dd   : > { %v6013_v41 = vpop.eup %6012  ;;  %v7105_v6 = vpack.c.bf16 %v1034_v46, %v1033_v49  ;;  %v7134_v50 = vsel %vm7119_vm3, 0, %v1262_v31  ;;  %v7160_v60 = vsel %vm7119_vm3, %v1266_v15, 0  ;;  %6038 = vpow2.f32 %v4709_v2 }
 0x1de   : > { %v6015_v4 = vpop.eup %6014  ;;  %v7107_v62 = vpack.c.bf16 %v1050_v21, %v1049_v57  ;;  %v1028_v0 = vmul.f32 %v6013_v41, %v7008_v8  ;;  %v1027_v8 = vmul.f32 %v6001_v36, %v6992_v58  ;;  %v1504_v46 = vshll.u32 %v7134_v50, 16 }
 0x1df   : > { %v6017_v61 = vpop.eup %6016  ;;  %v1148_v38 = vmul.f32 %v6015_v4, %v7025_v45  ;;  %v1030_v45 = vmul.f32 %v6011_v12, %v7004_v16  ;;  %v1283_v10 = vor.u32 %v1281_v1, %v7123_v32  ;;  %v1276_v58 = vor.u32 %v1274_v26, %v7128_v59 }
 0x1e0   : > { %v6019_v17 = vpop.eup %6018  ;;  %v1146_v48 = vmul.f32 %v6017_v61, %v7031_v40  ;;  %v7144_v40 = vsel %vm7119_vm3, 0, %v1269_v56  ;;  %v1055_v49 = vpack.c.bf16 %v1028_v0, %v1027_v8  ;;  %v1502_v21 = vshrl.u32 %v7134_v50, 16 }
 0x1e1   : > { %v6021_v19 = vpop.eup %6020  ;;  %v1149_v42 = vmul.f32 %v6019_v17, %v7034_v55  ;;  %v1509_v41 = vshll.u32 %v7138_v43, 16  ;;  %v1516_v18 = vshll.u32 %v7144_v40, 16  ;;  %v1506_v31 = vrot.slane %v1504_v46, 1 }
 0x1e2   : > { %v6023_v27 = vpop.eup %6022  ;;  %v1147_v28 = vmul.f32 %v6021_v19, %v7040_v39  ;;  %v1285_v4 = vshrl.u32 %v1055_v49, 16  ;;  %v1514_v15 = vshrl.u32 %v7144_v40, 16  ;;  %v1521_v17 = vshll.u32 %v7160_v60, 16 }
 0x1e3   : > { %v6025_v29 = vpop.eup %6024  ;;  %v1151_v55 = vpack.c.bf16 %v1149_v42, %v1148_v38  ;;  %v1029_v39 = vmul.f32 %v6023_v27, %v7020_v30  ;;  %v1511_v42 = vrot.slane %v1509_v41, 1  ;;  %v1518_v27 = vrot.slane %v1516_v18, 1  ;;  %v5855_v18 = vld [vmem:[#allocation10 + $0xe8] sm:$0xff]  }
 0x1e4   : > { %v1150_v3 = vpack.c.bf16 %v1147_v28, %v1146_v48  ;;  %v7150_v36 = vadd.f32 1.0, %v6025_v29  ;;  %v6027_v51 = vpop.eup %6026  ;;  %v7180_v28 = vrot.slane %v1285_v4, 7  ;;  %v1507_v8 = vor.u32 %v1506_v31, %v1502_v21 }
 0x1e5   : > { %v7154_v7 = vpack.c.bf16 %v1030_v45, %v1029_v39  ;;  %v1242_v12 = vsel %vm7110_vm2, 0, %v1151_v55  ;;  %v6029_v57 = vpop.eup %6028  ;;  %v1032_v61 = vmul.f32 %v6027_v51, %v7046_v5  ;;  %v7178_v5 = vsel %vm7119_vm3, 0, %v1276_v58  ;;  %v5853_v55 = vld [vmem:[#allocation10 + $0xf0] sm:$0xff]  }
 0x1e6   : > { %v1241_v16 = vsel %vm7110_vm2, 0, %v1150_v3  ;;  %v6031_v13 = vpop.eup %6030  ;;  %v1320_v37 = vshrl.u32 %v1242_v12, 16  ;;  %v948_v56 = vadd.f32 1.0, %v6029_v57  ;;  %v7188_v45 = vsel %vm7119_vm3, 0, %v1283_v10 }
 0x1e7   : > { %v1250_v30 = vshrl.u32 %v1241_v16, 16  ;;  %v1253_v63 = vshll.u32 %v1241_v16, 16  ;;  %v1292_v2 = vshrl.u32 %v7154_v7, 16  ;;  %v7173_v0 = vpop.eup %6032  ;;  %v1031_v38 = vmul.f32 %v6031_v13, %v7054_v14 }
 0x1e8   : > { %v6035_v48 = vpop.eup %6034  ;;  %v1322_v3 = vrot.slane %v1320_v37, 7  ;;  %v1288_v46 = vshll.u32 %v1055_v49, 16  ;;  %6040 = vrcp.f32 %v948_v56  ;;  %v1523_v58 = vrot.slane %v1521_v17, 1  ;;  %v5849_v56 = vld [vmem:[#allocation10 + $0xb0] sm:$0xff]  }
 0x1e9   : > { %v1252_v52 = vrot.slane %v1250_v30, 7  ;;  %v7190_v14 = vpack.c.bf16 %v1032_v61, %v1031_v38  ;;  %v7195_v39 = vrot.slane %v1292_v2, 7  ;;  %v1519_v51 = vor.u32 %v1518_v27, %v1514_v15  ;;  %v6037_v13 = vpop.eup %6036 }
 0x1ea   : > { %v1323_v30 = vshll.u32 %v1242_v12, 16  ;;  %v1295_v57 = vshll.u32 %v7154_v7, 16  ;;  %v1290_v21 = vor.u32 %v1288_v46, %v7180_v28  ;;  %v1528_v41 = vshll.u32 %v7178_v5, 16  ;;  %v6039_v17 = vpop.eup %6038 }
 0x1eb   : > { %v1255_v22 = vor.u32 %v1253_v63, %v1252_v52  ;;  %v7171_v19 = vsel %vm7119_vm3, %v1252_v52, 0  ;;  %v1540_v49 = vshll.u32 %v7188_v45, 16  ;;  %v1299_v4 = vshrl.u32 %v7190_v14, 16 }
 0x1ec   : > { %v1497_v26 = vshll.u32 %v7171_v19, 16  ;;  %v1325_v31 = vor.u32 %v1323_v30, %v1322_v3  ;;  %v1327_v12 = vshrl.u32 %v7114_v11, 16  ;;  %6042 = vrcp.f32 %v7150_v36 }
 0x1ed   : > { %v7184_v29 = vsel %vm7119_vm3, 0, %v1255_v22  ;;  %v7211_v61 = vsel %vm1488_vm4, %v1507_v8, %v1511_v42  ;;  %v7214_v37 = vsel %vm1488_vm4, %v1519_v51, %v1523_v58  ;;  %v7219_v15 = vsel %vm7119_vm3, %v7128_v59, 0  ;;  %v5850_v51 = vld [vmem:[#allocation10 + $0xa8] sm:$0xff]  }
 0x1ee   : > { %v1492_v1 = vshll.u32 %v7184_v29, 16  ;;  %5256 = vmatprep.mubr.bf16.mxu1 %v7184_v29  ;;  %v1490_v10 = vshrl.u32 %v7184_v29, 16  ;;  %v1499_v63 = vrot.slane %v1497_v26, 1  ;;  %v952_v2 = vadd.f32 1.0, %v6037_v13 }
 0x1ef   : > { %5257 = vmatmul.mubr.bf16.vlgmr.msra.gmra.mxu1 %v7134_v50  ;;  %v1530_v36 = vrot.slane %v1528_v41, 1  ;;  %v7224_v22 = vsel %vm7119_vm3, %v7123_v32, 0  ;;  %v1542_v38 = vrot.slane %v1540_v49, 1  ;;  %v7226_v42 = vrot.slane %v1299_v4, 7  ;;  %v5856_v32 = vld [vmem:[#allocation10 + $0xe0] sm:$0xff]   ;;  %v5858_v41 = vld [vmem:[#allocation10 + $0xd8] sm:$0xff]  }
 0x1f0   : > { %v1494_v16 = vrot.slane %v1492_v1, 1  ;;  %5260 = vmatprep.mubr.bf16.mxu1 %v7144_v40  ;;  %5337 = vmatpush3.bf16.msra.mxu1 %v6911_v47  ;;  %v1297_v47 = vor.u32 %v1295_v57, %v7195_v39  ;;  %v7231_v59 = vsel %vm7119_vm3, 0, %v1290_v21  ;;  %v7235_v27 = vsel %vm7119_vm3, 0, %v1325_v31 }
 0x1f1   : > { %5338 = vmatprep.subr.bf16.mxu1 %v5853_v55  ;;  %v7239_v8 = vsel %vm7119_vm3, %v1322_v3, 0  ;;  %v1526_v1 = vshrl.u32 %v7178_v5, 16  ;;  %v1533_v26 = vshll.u32 %v7219_v15, 16  ;;  %v951_v58 = vadd.f32 1.0, %v6039_v17 }
 0x1f2   : > { %v1495_v52 = vor.u32 %v1494_v16, %v1490_v10  ;;  %v7248_v46 = vsel %vm7119_vm3, 0, %v1297_v47  ;;  %v1302_v10 = vshll.u32 %v7190_v14, 16  ;;  %v1552_v16 = vshll.u32 %v7231_v59, 16 }
 0x1f3   : > { %v1531_v3 = vor.u32 %v1530_v36, %v1526_v1  ;;  %v2189_v30 = vrot.slane %v7235_v27, 1  ;;  %v2190_v57 = vrot.slane %v7239_v8, 1  ;;  %6044 = vrcp.f32 %v952_v2 }
 0x1f4   : > { %v1500_v7 = vsel %vm1488_vm4, %v1495_v52, %v1499_v63  ;;  %5339 = vmatpush3.bf16.msra.mxu1 %v5853_v55  ;;  %v1040_v55 = vmul.f32 %v6035_v48, %v6979_v33  ;;  %v1538_v33 = vshrl.u32 %v7188_v45, 16  ;;  %v1545_v48 = vshll.u32 %v7224_v22, 16 }
 0x1f5   : > { %5208 = vmatprep.mubr.bf16.mxu0 %v1500_v7  ;;  %5340 = vmatprep.subr.bf16.mxu1 %v5855_v18  ;;  %v1304_v14 = vor.u32 %v1302_v10, %v7226_v42  ;;  %v1564_v21 = vshll.u32 %v7248_v46, 16  ;;  %v1334_v49 = vshrl.u32 %v6963_v25, 16  ;;  %v1535_v13 = vrot.slane %v1533_v26, 1  ;;  %v6041_v52 = vpop.eup %6040 }
 0x1f6   : > { %5209 = vmatmul.mubr.bf16.vlgmr.msra.gmra.mxu0 %v7211_v61  ;;  %v7262_v4 = vsel %vm2164_vm5, %v2189_v30, %v2190_v57  ;;  %6046 = vrcp.f32 %v951_v58  ;;  %v1547_v63 = vrot.slane %v1545_v48, 1  ;;  %v7269_v31 = vsel %vm7119_vm3, %v7180_v28, 0 }
 0x1f7   : > { %5212 = vmatprep.mubr.bf16.mxu0 %v7214_v37  ;;  %5261 = vmatmul.mubr.bf16.gmra.mxu1 %v7178_v5  ;;  %v7271_v47 = vrot.slane %v1327_v12, 7  ;;  %v7274_v7 = vsel %vm1488_vm4, %v1531_v3, %v1535_v13  ;;  %v1554_v17 = vrot.slane %v1552_v16, 1  ;;  %v7279_v2 = vsel %vm7119_vm3, %v7195_v39, 0  ;;  %v5854_v16 = vld [vmem:[#allocation10 + $0x98] sm:$0xff]  }
 0x1f8   : > { %5289 = vmatpush3.bf16.msra.mxu0 %v6881_v20  ;;  %5264 = vmatprep.mubr.bf16.mxu1 %v7188_v45  ;;  %v1543_v20 = vor.u32 %v1542_v38, %v1538_v33  ;;  %v1566_v12 = vrot.slane %v1564_v21, 1  ;;  %v7289_v36 = vsel %vm7119_vm3, 0, %v1304_v14  ;;  %v7291_v38 = vrot.slane %v1334_v49, 7 }
 0x1f9   : > { %5290 = vmatprep.subr.bf16.mxu0 %v5849_v56  ;;  %5341 = vmatpush3.bf16.msra.mxu1 %v5855_v18  ;;  %v1039_v18 = vmul.f32 %v7173_v0, %v6970_v24  ;;  %v5851_v24 = vld [vmem:[#allocation10 + $0xa0] sm:$0xff]   ;;  %v1550_v39 = vshrl.u32 %v7231_v59, 16  ;;  %v1330_v1 = vshll.u32 %v7114_v11, 16  ;;  %v1562_v26 = vshrl.u32 %v7248_v46, 16 }
 0x1fa   : > { %5342 = vmatprep.subr.bf16.mxu1 %v5856_v32  ;;  %v7285_v28 = vsel %vm1488_vm4, %v1543_v20, %v1547_v63  ;;  %v1569_v58 = vshll.u32 %v7279_v2, 16  ;;  %v1337_v10 = vshll.u32 %v6963_v25, 16  ;;  %v1044_v33 = vmul.f32 %v6041_v52, %v7076_v54  ;;  %v5861_v20 = vld [vmem:[#allocation10 + $0xc8] sm:$0xff]   ;;  %v5857_v63 = vld [vmem:[#allocation10 + $0x90] sm:$0xff]  }
 0x1fb   : > { %v7281_v0 = vpack.c.bf16 %v1040_v55, %v1039_v18  ;;  %v6043_v55 = vpop.eup %6042  ;;  %v1555_v48 = vor.u32 %v1554_v17, %v1550_v39  ;;  %v1576_v3 = vshll.u32 %v7289_v36, 16  ;;  %v1567_v11 = vor.u32 %v1566_v12, %v1562_v26 }
 0x1fc   : > { %5291 = vmatpush3.bf16.msra.mxu0 %v5849_v56  ;;  %v5859_v56 = vld [vmem:[#allocation10 + $0xd0] sm:$0xff]   ;;  %v1588_v57 = vshll.u32 %v7235_v27, 16  ;;  %v1332_v14 = vor.u32 %v1330_v1, %v7271_v47  ;;  %v1348_v25 = vshrl.u32 %v6989_v53, 16  ;;  %v1043_v54 = vmul.f32 %v6043_v55, %v7066_v44 }
 0x1fd   : > { %5292 = vmatprep.subr.bf16.mxu0 %v5850_v51  ;;  %5343 = vmatpush3.bf16.msra.mxu1 %v5856_v32  ;;  %v1557_v32 = vshll.u32 %v7269_v31, 16  ;;  %v1341_v30 = vshrl.u32 %v7281_v0, 16  ;;  %v1571_v49 = vrot.slane %v1569_v58, 1  ;;  %v1578_v18 = vrot.slane %v1576_v3, 1 }
 0x1fe   : > { %5213 = vmatmul.mubr.bf16.gmra.mxu0 %v7274_v7  ;;  %5344 = vmatprep.subr.bf16.mxu1 %v5858_v41  ;;  %v7315_v13 = vpack.c.bf16 %v1044_v33, %v1043_v54  ;;  %v1590_v12 = vrot.slane %v1588_v57, 1  ;;  %v1344_v26 = vshll.u32 %v7281_v0, 16  ;;  %v1586_v58 = vshrl.u32 %v7235_v27, 16  ;;  %v5860_v57 = vld [vmem:[#allocation10 + $0x88] sm:$0xff]  }
 0x1ff   : > { %5216 = vmatprep.mubr.bf16.mxu0 %v7285_v28  ;;  %5265 = vmatmul.mubr.bf16.gmra.mxu1 %v7231_v59  ;;  %v1559_v21 = vrot.slane %v1557_v32, 1  ;;  %v7320_v17 = vrot.slane %v1341_v30, 7  ;;  %v7324_v44 = vsel %vm1488_vm4, %v1567_v11, %v1571_v49  ;;  %v7330_v32 = vrot.slane %v1348_v25, 7 }
 0x200   : > { %5268 = vmatprep.mubr.bf16.mxu1 %v7248_v46  ;;  %5293 = vmatpush3.bf16.msra.mxu0 %v5850_v51  ;;  %v1339_v51 = vor.u32 %v1337_v10, %v7291_v38  ;;  %v6045_v39 = vpop.eup %6044  ;;  %v1593_v10 = vshll.u32 %v7239_v8, 16  ;;  %v1355_v3 = vshrl.u32 %v7315_v13, 16  ;;  %v7350_v8 = vld [vmem:[#allocation10 + $0x178] sm:$0xff]  }
 0x201   : > { %5294 = vmatprep.subr.bf16.mxu0 %v5851_v24  ;;  %5345 = vmatpush3.bf16.msra.mxu1 %v5858_v41  ;;  %v7313_v41 = vsel %vm7119_vm3, %v7226_v42, 0  ;;  %v7318_v52 = vsel %vm1488_vm4, %v1555_v48, %v1559_v21  ;;  %v7328_v42 = vsel %vm7119_vm3, 0, %v1332_v14  ;;  %v1351_v48 = vshll.u32 %v6989_v53, 16 }
 0x202   : > { %5346 = vmatprep.subr.bf16.mxu1 %v5859_v56  ;;  %v1581_v55 = vshll.u32 %v7313_v41, 16  ;;  %v7338_v1 = vsel %vm7119_vm3, 0, %v1339_v51  ;;  %v1600_v11 = vshll.u32 %v7328_v42, 16  ;;  %v1346_v0 = vor.u32 %v1344_v26, %v7320_v17 }
 0x203   : > { %v6047_v33 = vpop.eup %6046  ;;  %v1048_v14 = vmul.f32 %v6045_v39, %v7096_v9  ;;  %v1591_v51 = vor.u32 %v1590_v12, %v1586_v58  ;;  %v1353_v53 = vor.u32 %v1351_v48, %v7330_v32  ;;  %v1595_v21 = vrot.slane %v1593_v10, 1 }
 0x204   : > { %5295 = vmatpush3.bf16.msra.mxu0 %v5851_v24  ;;  %v5862_v24 = vld [vmem:[#allocation10 + $0xc0] sm:$0xff]   ;;  %v1583_v25 = vrot.slane %v1581_v55, 1  ;;  %v1047_v54 = vmul.f32 %v6047_v33, %v7089_v23  ;;  %v7360_v9 = vrot.slane %v1355_v3, 7  ;;  %v7368_v12 = vsel %vm7119_vm3, %v7291_v38, 0 }
 0x205   : > { %5296 = vmatprep.subr.bf16.mxu0 %v5854_v16  ;;  %5347 = vmatpush3.bf16.msra.mxu1 %v5859_v56  ;;  %v1574_v56 = vshrl.u32 %v7289_v36, 16  ;;  %v5863_v23 = vld [vmem:[#allocation10 + $0x80] sm:$0xff]   ;;  %v1598_v38 = vshrl.u32 %v7328_v42, 16  ;;  %v7382_v26 = vsel %vm7119_vm3, 0, %v1353_v53  ;;  %v1358_v58 = vshll.u32 %v7315_v13, 16 }
 0x206   : > { %5217 = vmatmul.mubr.bf16.gmra.mxu0 %v7318_v52  ;;  %5348 = vmatprep.subr.bf16.mxu1 %v5861_v20  ;;  %v1065_v39 = vpack.c.bf16 %v1048_v14, %v1047_v54  ;;  %v1610_v10 = vshrl.u32 %v7338_v1, 16  ;;  %v1617_v33 = vshll.u32 %v7368_v12, 16  ;;  %v1365_v48 = vshll.u32 %v7061_v34, 16 }
 0x207   : > { %5220 = vmatprep.mubr.bf16.mxu0 %v7324_v44  ;;  %5269 = vmatmul.mubr.bf16.gmra.mxu1 %v7289_v36  ;;  %v1579_v30 = vor.u32 %v1578_v18, %v1574_v56  ;;  %v1602_v18 = vrot.slane %v1600_v11, 1  ;;  %v7374_v56 = vsel %vm7119_vm3, 0, %v1346_v0  ;;  %v7390_v11 = vld [vmem:[#allocation10 + $0x138] sm:$0xff]   ;;  %v1360_v0 = vor.u32 %v1358_v58, %v7360_v9 }
 0x208   : > { %5272 = vmatprep.mubr.bf16.mxu1 %v7235_v27  ;;  %5297 = vmatpush3.bf16.msra.mxu0 %v5854_v16  ;;  %v1612_v27 = vshll.u32 %v7338_v1, 16  ;;  %v1362_v16 = vshrl.u32 %v7061_v34, 16  ;;  %v1369_v14 = vshrl.u32 %v1065_v39, 16  ;;  %v1636_v13 = vshll.u32 %v7382_v26, 16 }
 0x209   : > { %5298 = vmatprep.subr.bf16.mxu0 %v5857_v63  ;;  %5349 = vmatpush3.bf16.msra.mxu1 %v5861_v20  ;;  %v7358_v20 = vsel %vm7119_vm3, %v7271_v47, 0  ;;  %v7363_v49 = vsel %vm1488_vm4, %v1579_v30, %v1583_v25  ;;  %v1596_v47 = vsel %vm1488_vm4, %v1591_v51, %v1595_v21  ;;  %v1603_v3 = vor.u32 %v1602_v18, %v1598_v38 }
 0x20a   : > { %5350 = vmatprep.subr.bf16.mxu1 %v5862_v24  ;;  %v1364_v55 = vrot.slane %v1362_v16, 7  ;;  %v1624_v30 = vshll.u32 %v7374_v56, 16  ;;  %v1619_v16 = vrot.slane %v1617_v33, 1  ;;  %v7405_v54 = vsel %vm7119_vm3, %v7330_v32, 0 }
 0x20b   : > { %v1371_v21 = vrot.slane %v1369_v14, 7  ;;  %v1622_v32 = vshrl.u32 %v7374_v56, 16  ;;  %v1372_v38 = vshll.u32 %v1065_v39, 16  ;;  %v1641_v58 = vshll.u32 %v7405_v54, 16 }
 0x20c   : > { %5299 = vmatpush3.bf16.msra.mxu0 %v5857_v63  ;;  %v1614_v63 = vrot.slane %v1612_v27, 1  ;;  %v1367_v27 = vor.u32 %v1365_v48, %v1364_v55  ;;  %v1626_v25 = vrot.slane %v1624_v30, 1 }
 0x20d   : > { %5300 = vmatprep.subr.bf16.mxu0 %v5860_v57  ;;  %5351 = vmatpush3.bf16.msra.mxu1 %v5862_v24  ;;  %v1605_v24 = vshll.u32 %v7358_v20, 16  ;;  %v1374_v48 = vor.u32 %v1372_v38, %v1371_v21  ;;  %v1643_v14 = vrot.slane %v1641_v58, 1 }
 0x20e   : > { %5221 = vmatmul.mubr.bf16.gmra.mxu0 %v7363_v49  ;;  %5432 = vmatprep.subr.bf16.mxu1 %v7350_v8  ;;  %v1615_v51 = vor.u32 %v1614_v63, %v1610_v10  ;;  %v7422_v63 = vsel %vm7119_vm3, 0, %v1367_v27  ;;  %v1627_v10 = vor.u32 %v1626_v25, %v1622_v32  ;;  %v7439_v27 = vsel %vm7119_vm3, %v1364_v55, 0 }
 0x20f   : > { %5224 = vmatprep.mubr.bf16.mxu0 %v1596_v47  ;;  %5273 = vmatmul.mubr.bf16.gmra.mxu1 %v7328_v42  ;;  %v1607_v53 = vrot.slane %v1605_v24, 1  ;;  %v1634_v24 = vshrl.u32 %v7382_v26, 16  ;;  %v1660_v30 = vshll.u32 %v7422_v63, 16  ;;  %v7447_v25 = vsel %vm7119_vm3, 0, %v1374_v48 }
 0x210   : > { %5276 = vmatprep.mubr.bf16.mxu1 %v7338_v1  ;;  %5301 = vmatpush3.bf16.msra.mxu0 %v5860_v57  ;;  %v7397_v57 = vsel %vm7119_vm3, %v7320_v17, 0  ;;  %v7410_v18 = vsel %vm1488_vm4, %v1615_v51, %v1619_v16  ;;  %v1638_v17 = vrot.slane %v1636_v13, 1  ;;  %v7432_v51 = vsel %vm7119_vm3, %v7360_v9, 0 }
 0x211   : > { %5302 = vmatprep.subr.bf16.mxu0 %v5863_v23  ;;  %v7400_v34 = vsel %vm1488_vm4, %v1603_v3, %v1607_v53  ;;  %v1629_v47 = vshll.u32 %v7397_v57, 16  ;;  %v1662_v16 = vrot.slane %v1660_v30, 1  ;;  %v1658_v55 = vshrl.u32 %v7422_v63, 16 }
 0x212   : > { %v1639_v3 = vor.u32 %v1638_v17, %v1634_v24  ;;  %v1653_v17 = vshll.u32 %v7432_v51, 16  ;;  %v1665_v32 = vshll.u32 %v7439_v27, 16  ;;  %v1672_v38 = vshll.u32 %v7447_v25, 16 }
 0x213   : > { %v1663_v24 = vor.u32 %v1662_v16, %v1658_v55  ;;  %v5869_v55 = vld [vmem:[#allocation10 + $0x170] sm:$0xff]  }
 0x214   : > { %5303 = vmatpush3.bf16.msra.mxu0 %v5863_v23  ;;  %v7414_v23 = vsel %vm7119_vm3, 0, %v1360_v0  ;;  %v1631_v0 = vrot.slane %v1629_v47, 1  ;;  %v7443_v53 = vsel %vm1488_vm4, %v1639_v3, %v1643_v14  ;;  %v1655_v58 = vrot.slane %v1653_v17, 1 }
 0x215   : > { %5384 = vmatprep.subr.bf16.mxu0 %v7390_v11  ;;  %v1648_v33 = vshll.u32 %v7414_v23, 16  ;;  %v1646_v9 = vshrl.u32 %v7414_v23, 16  ;;  %v1674_v3 = vrot.slane %v1672_v38, 1  ;;  %v2169_v38 = vrot.slane %v7138_v43, 1 }
 0x216   : > { %5225 = vmatmul.mubr.bf16.gmra.mxu0 %v7400_v34  ;;  %v7435_v39 = vsel %vm1488_vm4, %v1627_v10, %v1631_v0  ;;  %v1667_v10 = vrot.slane %v1665_v32, 1  ;;  %v1670_v0 = vshrl.u32 %v7447_v25, 16  ;;  %v2174_v43 = vrot.slane %v7178_v5, 1 }
 0x217   : > { %5228 = vmatprep.mubr.bf16.mxu0 %v7410_v18  ;;  %5277 = vmatmul.mubr.bf16.gmra.mxu1 %v7374_v56  ;;  %v1650_v13 = vrot.slane %v1648_v33, 1  ;;  %v7459_v33 = vsel %vm7119_vm3, %v1371_v21, 0 }
 0x218   : > { %5280 = vmatprep.mubr.bf16.mxu1 %v7382_v26  ;;  %v7466_v30 = vsel %vm1488_vm4, %v1663_v24, %v1667_v10  ;;  %v1677_v14 = vshll.u32 %v7459_v33, 16  ;;  %v1675_v21 = vor.u32 %v1674_v3, %v1670_v0  ;;  %v2172_v24 = vrot.slane %v7160_v60, 1  ;;  %v5865_v10 = vld [vmem:[#allocation10 + $0x130] sm:$0xff]   ;;  %v5866_v60 = vld [vmem:[#allocation10 + $0x128] sm:$0xff]  }
 0x219   : > { %v1651_v47 = vor.u32 %v1650_v13, %v1646_v9  ;;  %v2165_v13 = vrot.slane %v7184_v29, 1  ;;  %v2166_v9 = vrot.slane %v7171_v19, 1  ;;  %v2168_v29 = vrot.slane %v7134_v50, 1 }
 0x21a   : > { %v1679_v16 = vrot.slane %v1677_v14, 1  ;;  %v2171_v19 = vrot.slane %v7144_v40, 1  ;;  %v1306_v3 = vshrl.u32 %v7105_v6, 16  ;;  %v2177_v0 = vrot.slane %v7188_v45, 1  ;;  %v5874_v14 = vld [vmem:[#allocation10 + $0x158] sm:$0xff]  }
 0x21b   : > { %v7462_v48 = vsel %vm1488_vm4, %v1651_v47, %v1655_v58  ;;  %v2167_v32 = vsel %vm2164_vm5, %v2165_v13, %v2166_v9  ;;  %v5871_v47 = vld [vmem:[#allocation10 + $0x168] sm:$0xff]   ;;  %v7488_v58 = vsel %vm2164_vm5, %v2168_v29, %v2169_v38  ;;  %v2178_v13 = vrot.slane %v7224_v22, 1  ;;  %v5870_v29 = vld [vmem:[#allocation10 + $0x118] sm:$0xff]  }
 0x21c   : > { %v7476_v17 = vsel %vm1488_vm4, %v1675_v21, %v1679_v16  ;;  %v2175_v21 = vrot.slane %v7219_v15, 1  ;;  %v5867_v16 = vld [vmem:[#allocation10 + $0x120] sm:$0xff]   ;;  %v7506_v9 = vrot.slane %v1306_v3, 7  ;;  %v1309_v15 = vshll.u32 %v7105_v6, 16  ;;  %v5877_v38 = vld [vmem:[#allocation10 + $0x148] sm:$0xff]  }
 0x21d   : > { %v2180_v22 = vrot.slane %v7231_v59, 1  ;;  %v5876_v3 = vld [vmem:[#allocation10 + $0x108] sm:$0xff]  }
 0x21e   : > { %5229 = vmatmul.mubr.bf16.gmra.mxu0 %v7435_v39 }
 0x21f   : > { %5232 = vmatprep.mubr.bf16.mxu0 %v7443_v53  ;;  %5281 = vmatmul.mubr.bf16.gmra.mxu1 %v7414_v23 }
 0x220   : > { %5284 = vmatprep.mubr.bf16.mxu1 %v7422_v63 }
 0x226   : > { %5233 = vmatmul.mubr.bf16.gmra.mxu0 %v7462_v48 }
 0x227   : > { %5236 = vmatprep.mubr.bf16.mxu0 %v7466_v30  ;;  %5285 = vmatmul.mubr.bf16.gmra.mxu1 %v7447_v25 }
 0x228   : > { %5352 = vmatprep.mubr.bf16.mxu1 %v7134_v50  ;;  %v5872_v50 = vld [vmem:[#allocation10 + $0x160] sm:$0xff]  }
 0x22e   : > { %5237 = vmatmul.mubr.bf16.gmra.mxu0 %v7476_v17 }
 0x22f   : > { %5304 = vmatprep.mubr.bf16.mxu0 %v2167_v32  ;;  %5353 = vmatmul.mubr.bf16.vlgmr.msra.gmra.mxu1 %v7144_v40  ;;  %v5875_v32 = vld [vmem:[#allocation10 + $0x150] sm:$0xff]  }
 0x230   : > { %5356 = vmatprep.mubr.bf16.mxu1 %v7178_v5  ;;  %5433 = vmatpush3.bf16.msra.mxu1 %v7350_v8  ;;  %v7492_v8 = vsel %vm2164_vm5, %v2171_v19, %v2172_v24  ;;  %v1311_v19 = vor.u32 %v1309_v15, %v7506_v9  ;;  %v2181_v24 = vrot.slane %v7269_v31, 1  ;;  %v5878_v31 = vld [vmem:[#allocation10 + $0x140] sm:$0xff]   ;;  %v2193_v15 = vrot.slane %v7358_v20, 1 }
 0x231   : > { %5434 = vmatprep.subr.bf16.mxu1 %v5869_v55  ;;  %v1376_v20 = vshrl.u32 %v7107_v62, 16 }
 0x232   : > { %v7522_v6 = vsel %vm2164_vm5, %v2180_v22, %v2181_v24  ;;  %v2196_v22 = vrot.slane %v7368_v12, 1  ;;  %v2201_v12 = vrot.slane %v7382_v26, 1 }
 0x233   : > { %v7569_v24 = vrot.slane %v1376_v20, 7  ;;  %v5887_v20 = vld [vmem:[#allocation10 + $0x1e8] sm:$0xff]  }
 0x234   : > { %5435 = vmatpush3.bf16.msra.mxu1 %v5869_v55  ;;  %v7510_v55 = vsel %vm2164_vm5, %v2177_v0, %v2178_v13  ;;  %v5884_v0 = vld [vmem:[#allocation10 + $0x1f8] sm:$0xff]   ;;  %v5879_v13 = vld [vmem:[#allocation10 + $0x100] sm:$0xff]  }
 0x235   : > { %5436 = vmatprep.subr.bf16.mxu1 %v5871_v47 }
 0x236   : > { %5305 = vmatmul.mubr.bf16.vlgmr.msra.gmra.mxu0 %v7488_v58 }
 0x237   : > { %5308 = vmatprep.mubr.bf16.mxu0 %v7492_v8  ;;  %5357 = vmatmul.mubr.bf16.gmra.mxu1 %v7188_v45 }
 0x238   : > { %5385 = vmatpush3.bf16.msra.mxu0 %v7390_v11  ;;  %5360 = vmatprep.mubr.bf16.mxu1 %v7231_v59  ;;  %v7504_v11 = vsel %vm2164_vm5, %v2174_v43, %v2175_v21 }
 0x239   : > { %5386 = vmatprep.subr.bf16.mxu0 %v5865_v10  ;;  %5437 = vmatpush3.bf16.msra.mxu1 %v5871_v47  ;;  %v2183_v47 = vrot.slane %v7248_v46, 1 }
 0x23a   : > { %5438 = vmatprep.subr.bf16.mxu1 %v5872_v50 }
 0x23c   : > { %5387 = vmatpush3.bf16.msra.mxu0 %v5865_v10  ;;  %v2184_v10 = vrot.slane %v7279_v2, 1  ;;  %v2186_v2 = vrot.slane %v7289_v36, 1 }
 0x23d   : > { %5388 = vmatprep.subr.bf16.mxu0 %v5866_v60  ;;  %5439 = vmatpush3.bf16.msra.mxu1 %v5872_v50  ;;  %v5873_v50 = vld [vmem:[#allocation10 + $0x110] sm:$0xff]  }
 0x23e   : > { %5309 = vmatmul.mubr.bf16.gmra.mxu0 %v7504_v11  ;;  %5440 = vmatprep.subr.bf16.mxu1 %v5874_v14  ;;  %v7526_v43 = vsel %vm2164_vm5, %v2183_v47, %v2184_v10  ;;  %v2199_v47 = vrot.slane %v7397_v57, 1  ;;  %v2204_v57 = vrot.slane %v7414_v23, 1 }
 0x23f   : > { %5312 = vmatprep.mubr.bf16.mxu0 %v7510_v55  ;;  %5361 = vmatmul.mubr.bf16.gmra.mxu1 %v7248_v46 }
 0x240   : > { %5364 = vmatprep.mubr.bf16.mxu1 %v7289_v36  ;;  %5389 = vmatpush3.bf16.msra.mxu0 %v5866_v60  ;;  %v7530_v60 = vsel %vm7119_vm3, 0, %v1311_v19  ;;  %v2202_v19 = vrot.slane %v7405_v54, 1  ;;  %v2207_v54 = vrot.slane %v7422_v63, 1 }
 0x241   : > { %5390 = vmatprep.subr.bf16.mxu0 %v5867_v16  ;;  %5441 = vmatpush3.bf16.msra.mxu1 %v5874_v14  ;;  %v2187_v14 = vrot.slane %v7313_v41, 1  ;;  %v7545_v41 = vld [vmem:[#allocation10 + $0x1b8] sm:$0xff]  }
 0x242   : > { %5442 = vmatprep.subr.bf16.mxu1 %v5875_v32  ;;  %v7573_v10 = vsel %vm2164_vm5, %v2201_v12, %v2202_v19 }
 0x243   : > { %v7538_v21 = vsel %vm2164_vm5, %v2186_v2, %v2187_v14  ;;  %v2205_v2 = vrot.slane %v7432_v51, 1  ;;  %v2210_v51 = vrot.slane %v7447_v25, 1 }
 0x244   : > { %5391 = vmatpush3.bf16.msra.mxu0 %v5867_v16  ;;  %v2192_v16 = vrot.slane %v7328_v42, 1 }
 0x245   : > { %5392 = vmatprep.subr.bf16.mxu0 %v5870_v29  ;;  %5443 = vmatpush3.bf16.msra.mxu1 %v5875_v32  ;;  %v2195_v32 = vrot.slane %v7338_v1, 1  ;;  %v7585_v14 = vsel %vm2164_vm5, %v2204_v57, %v2205_v2  ;;  %v5882_v57 = vld [vmem:[#allocation10 + $0x1a8] sm:$0xff]   ;;  %v5891_v2 = vld [vmem:[#allocation10 + $0x1d0] sm:$0xff]  }
 0x246   : > { %5313 = vmatmul.mubr.bf16.gmra.mxu0 %v7522_v6  ;;  %5444 = vmatprep.subr.bf16.mxu1 %v5877_v38 }
 0x247   : > { %5316 = vmatprep.mubr.bf16.mxu0 %v7526_v43  ;;  %5365 = vmatmul.mubr.bf16.gmra.mxu1 %v7530_v60 }
 0x248   : > { %5368 = vmatprep.mubr.bf16.mxu1 %v7328_v42  ;;  %5393 = vmatpush3.bf16.msra.mxu0 %v5870_v29  ;;  %v7551_v29 = vsel %vm2164_vm5, %v2192_v16, %v2193_v15  ;;  %v2198_v42 = vrot.slane %v7374_v56, 1 }
 0x249   : > { %5394 = vmatprep.subr.bf16.mxu0 %v5873_v50  ;;  %5445 = vmatpush3.bf16.msra.mxu1 %v5877_v38 }
 0x24a   : > { %5446 = vmatprep.subr.bf16.mxu1 %v5878_v31  ;;  %v7567_v38 = vsel %vm2164_vm5, %v2198_v42, %v2199_v47  ;;  %v5885_v42 = vld [vmem:[#allocation10 + $0x1f0] sm:$0xff]  }
 0x24c   : > { %5395 = vmatpush3.bf16.msra.mxu0 %v5873_v50  ;;  %v1379_v50 = vshll.u32 %v7107_v62, 16 }
 0x24d   : > { %5396 = vmatprep.subr.bf16.mxu0 %v5876_v3  ;;  %5447 = vmatpush3.bf16.msra.mxu1 %v5878_v31 }
 0x24e   : > { %5317 = vmatmul.mubr.bf16.gmra.mxu0 %v7538_v21  ;;  %5528 = vmatprep.subr.bf16.mxu1 %v5884_v0  ;;  %v1381_v31 = vor.u32 %v1379_v50, %v7569_v24 }
 0x24f   : > { %5320 = vmatprep.mubr.bf16.mxu0 %v7262_v4  ;;  %5369 = vmatmul.mubr.bf16.gmra.mxu1 %v7338_v1  ;;  %v7556_v4 = vsel %vm2164_vm5, %v2195_v32, %v2196_v22  ;;  %v2211_v32 = vrot.slane %v7459_v33, 1  ;;  %v7614_v33 = vld [vmem:[%s8803_s21] ss:$0 sm:$0xff] }
 0x250   : > { %5372 = vmatprep.mubr.bf16.mxu1 %v7374_v56  ;;  %5397 = vmatpush3.bf16.msra.mxu0 %v5876_v3  ;;  %v2208_v3 = vrot.slane %v7439_v27, 1  ;;  %v7595_v16 = vsel %vm7119_vm3, 0, %v1381_v31  ;;  %v5883_v31 = vld [vmem:[#allocation10 + $0x1a0] sm:$0xff]  }
 0x251   : > { %5398 = vmatprep.subr.bf16.mxu0 %v5879_v13  ;;  %v7603_v15 = vsel %vm2164_vm5, %v2210_v51, %v2211_v32  ;;  %v5886_v51 = vld [vmem:[#allocation10 + $0x198] sm:$0xff]   ;;  %v5893_v32 = vld [vmem:[#allocation10 + $0x1c8] sm:$0xff]  }
 0x252   : > { %v7591_v62 = vsel %vm2164_vm5, %v2207_v54, %v2208_v3  ;;  %8809 = vst [vmem:[#allocation40_spill] sm:$0xff] %v7603_v15  ;;  %v5890_v54 = vld [vmem:[#allocation10 + $0x1d8] sm:$0xff]   ;;  %v2748_v3 = vshll.u32 %v7530_v60, 16 }
 0x254   : > { %5399 = vmatpush3.bf16.msra.mxu0 %v5879_v13  ;;  %v7587_v13 = vpop.f32.mrf.mxu1 }
 0x255   : > { %5480 = vmatprep.subr.bf16.mxu0 %v7545_v41 }
 0x256   : > { %5321 = vmatmul.mubr.bf16.gmra.mxu0 %v7551_v29  ;;  %v1192_v27 = vpop.f32.mrf.mxu1 }
 0x257   : > { %5324 = vmatprep.mubr.bf16.mxu0 %v7556_v4  ;;  %5373 = vmatmul.mubr.bf16.gmra.mxu1 %v7382_v26  ;;  %v7617_v12 = vadd.f32 %v7614_v33, %v1192_v27  ;;  %v3033_v27 = vrot.slane %v7530_v60, 1 }
 0x258   : > { %5376 = vmatprep.mubr.bf16.mxu1 %v7414_v23  ;;  %v7605_v22 = vpop.f32.mrf.mxu1 }
 0x259   : > { %v4717_v19 = vmul.f32 -1.442695, %v7617_v12 }
 0x25b   : > { %6048 = vpow2.f32 %v4717_v19 }
 0x25e   : > { %5325 = vmatmul.mubr.bf16.gmra.mxu0 %v7567_v38 }
 0x25f   : > { %5328 = vmatprep.mubr.bf16.mxu0 %v7573_v10  ;;  %5377 = vmatmul.mubr.bf16.gmra.mxu1 %v7422_v63 }
 0x260   : > { %5380 = vmatprep.mubr.bf16.mxu1 %v7447_v25 }
 0x266   : > { %5329 = vmatmul.mubr.bf16.gmra.mxu0 %v7585_v14 }
 0x267   : > { %5332 = vmatprep.mubr.bf16.mxu0 %v7591_v62  ;;  %5381 = vmatmul.mubr.bf16.gmra.mxu1 %v7595_v16 }
 0x268   : > { %5448 = vmatprep.mubr.bf16.mxu1 %v7488_v58  ;;  %v1195_v58 = vpop.f32.mrf.mxu1 }
 0x269   : > { %v7620_v47 = vadd.f32 %v7614_v33, %v1195_v58  ;;  %v2750_v58 = vrot.slane %v2748_v3, 1 }
 0x26b   : > { %v4718_v50 = vmul.f32 -1.442695, %v7620_v47 }
 0x26d   : > { %6050 = vpow2.f32 %v4718_v50  ;;  %v6049_v50 = vpop.eup %6048 }
 0x26e   : > { %5333 = vmatmul.mubr.bf16.gmra.mxu0 %v7603_v15 }
 0x26f   : > { %5400 = vmatprep.mubr.bf16.mxu0 %v7211_v61  ;;  %5449 = vmatmul.mubr.bf16.vlgmr.msra.gmra.mxu1 %v7492_v8  ;;  %v5881_v61 = vld [vmem:[#allocation10 + $0x1b0] sm:$0xff]  }
 0x270   : > { %5452 = vmatprep.mubr.bf16.mxu1 %v7504_v11  ;;  %5529 = vmatpush3.bf16.msra.mxu1 %v5884_v0  ;;  %v5888_v0 = vld [vmem:[#allocation10 + $0x1e0] sm:$0xff]  }
 0x271   : > { %5530 = vmatprep.subr.bf16.mxu1 %v5885_v42 }
 0x274   : > { %5531 = vmatpush3.bf16.msra.mxu1 %v5885_v42 }
 0x275   : > { %5532 = vmatprep.subr.bf16.mxu1 %v5887_v20 }
 0x276   : > { %5401 = vmatmul.mubr.bf16.vlgmr.msra.gmra.mxu0 %v7214_v37 }
 0x277   : > { %5404 = vmatprep.mubr.bf16.mxu0 %v7274_v7  ;;  %5453 = vmatmul.mubr.bf16.gmra.mxu1 %v7510_v55 }
 0x278   : > { %5481 = vmatpush3.bf16.msra.mxu0 %v7545_v41  ;;  %5456 = vmatprep.mubr.bf16.mxu1 %v7522_v6  ;;  %v1460_v41 = vsel %vm7119_vm3, %v7506_v9, 0  ;;  %v5894_v9 = vld [vmem:[#allocation10 + $0x1c0] sm:$0xff]  }
 0x279   : > { %5482 = vmatprep.subr.bf16.mxu0 %v5881_v61  ;;  %5533 = vmatpush3.bf16.msra.mxu1 %v5887_v20  ;;  %v3034_v42 = vrot.slane %v1460_v41, 1  ;;  %v5889_v20 = vld [vmem:[#allocation10 + $0x190] sm:$0xff]   ;;  %v2753_v19 = vshll.u32 %v1460_v41, 16  ;;  %v5895_v41 = vld [vmem:[#allocation10 + $0x180] sm:$0xff]  }
 0x27a   : > { %5534 = vmatprep.subr.bf16.mxu1 %v5888_v0 }
 0x27b   : > { %v2755_v3 = vrot.slane %v2753_v19, 1  ;;  %v1245_v19 = vstv %s1244_s30 }
 0x27c   : > { %5483 = vmatpush3.bf16.msra.mxu0 %v5881_v61  ;;  %v7640_v61 = vsel %vm2164_vm5, %v3033_v27, %v3034_v42  ;;  %vm7682_vm6 = vcmp.eq.s32.totalorder %v1245_v19, 1 }
 0x27d   : > { %5484 = vmatprep.subr.bf16.mxu0 %v5882_v57  ;;  %5535 = vmatpush3.bf16.msra.mxu1 %v5888_v0  ;;  %v2746_v0 = vshrl.u32 %v7530_v60, 16 }
 0x27e   : > { %5405 = vmatmul.mubr.bf16.gmra.mxu0 %v7285_v28  ;;  %5536 = vmatprep.subr.bf16.mxu1 %v5890_v54 }
 0x27f   : > { %5408 = vmatprep.mubr.bf16.mxu0 %v7318_v52  ;;  %5457 = vmatmul.mubr.bf16.gmra.mxu1 %v7526_v43 }
 0x280   : > { %5460 = vmatprep.mubr.bf16.mxu1 %v7538_v21  ;;  %5485 = vmatpush3.bf16.msra.mxu0 %v5882_v57  ;;  %v6051_v57 = vpop.eup %6050 }
 0x281   : > { %5486 = vmatprep.subr.bf16.mxu0 %v5883_v31  ;;  %5537 = vmatpush3.bf16.msra.mxu1 %v5890_v54  ;;  %v2751_v54 = vor.u32 %v2750_v58, %v2746_v0  ;;  %v1220_v27 = vadd.f32 1.0, %v6051_v57  ;;  %v2760_v0 = vshll.u32 %v7595_v16, 16 }
 0x282   : > { %5538 = vmatprep.subr.bf16.mxu1 %v5891_v2 }
 0x283   : > { %v7647_v42 = vsel %vm1488_vm4, %v2751_v54, %v2755_v3 }
 0x284   : > { %5487 = vmatpush3.bf16.msra.mxu0 %v5883_v31  ;;  %v5892_v31 = vld [vmem:[#allocation10 + $0x188] sm:$0xff]  }
 0x285   : > { %5488 = vmatprep.subr.bf16.mxu0 %v5886_v51  ;;  %5539 = vmatpush3.bf16.msra.mxu1 %v5891_v2  ;;  %v1219_v2 = vadd.f32 1.0, %v6049_v50  ;;  %v3036_v50 = vrot.slane %v7595_v16, 1 }
 0x286   : > { %5409 = vmatmul.mubr.bf16.gmra.mxu0 %v7324_v44  ;;  %5540 = vmatprep.subr.bf16.mxu1 %v5893_v32 }
 0x287   : > { %5412 = vmatprep.mubr.bf16.mxu0 %v7363_v49  ;;  %5461 = vmatmul.mubr.bf16.gmra.mxu1 %v7640_v61  ;;  %6052 = vrcp.f32 %v1219_v2 }
 0x288   : > { %5464 = vmatprep.mubr.bf16.mxu1 %v7551_v29  ;;  %5489 = vmatpush3.bf16.msra.mxu0 %v5886_v51  ;;  %6054 = vrcp.f32 %v1220_v27  ;;  %v7653_v29 = vld [vmem:[#allocation10 + $0x238] sm:$0xff]   ;;  %v7657_v51 = vadd.f32 %v7614_v33, %v7587_v13 }
 0x289   : > { %5490 = vmatprep.subr.bf16.mxu0 %v5889_v20  ;;  %5541 = vmatpush3.bf16.msra.mxu1 %v5893_v32  ;;  %v7661_v32 = vadd.f32 %v7614_v33, %v7605_v22 }
 0x28a   : > { %5542 = vmatprep.subr.bf16.mxu1 %v5894_v9 }
 0x28b   : > { %v4720_v58 = vmul.f32 -1.442695, %v7661_v32 }
 0x28c   : > { %5491 = vmatpush3.bf16.msra.mxu0 %v5889_v20 }
 0x28d   : > { %5492 = vmatprep.subr.bf16.mxu0 %v5892_v31  ;;  %5543 = vmatpush3.bf16.msra.mxu1 %v5894_v9  ;;  %v1470_v9 = vsel %vm7119_vm3, %v7569_v24, 0  ;;  %v2758_v24 = vshrl.u32 %v7595_v16, 16 }
 0x28e   : > { %5413 = vmatmul.mubr.bf16.gmra.mxu0 %v7647_v42  ;;  %v3037_v54 = vrot.slane %v1470_v9, 1  ;;  %v2765_v2 = vshll.u32 %v1470_v9, 16 }
 0x28f   : > { %5416 = vmatprep.mubr.bf16.mxu0 %v7400_v34  ;;  %5465 = vmatmul.mubr.bf16.gmra.mxu1 %v7556_v4  ;;  %v4719_v34 = vmul.f32 -1.442695, %v7657_v51 }
 0x290   : > { %5468 = vmatprep.mubr.bf16.mxu1 %v7567_v38  ;;  %5493 = vmatpush3.bf16.msra.mxu0 %v5892_v31 }
 0x291   : > { %5494 = vmatprep.subr.bf16.mxu0 %v5895_v41  ;;  %6056 = vpow2.f32 %v4719_v34 }
 0x292   : > { %6058 = vpow2.f32 %v4720_v58 }
 0x294   : > { %5495 = vmatpush3.bf16.msra.mxu0 %v5895_v41  ;;  %v6053_v13 = vpop.eup %6052 }
 0x295   : > { %5576 = vmatprep.subr.bf16.mxu0 %v7653_v29  ;;  %v6055_v22 = vpop.eup %6054  ;;  %v1231_v33 = vmul.f32 %v6053_v13, %v7617_v12  ;;  %v2762_v12 = vrot.slane %v2760_v0, 1 }
 0x296   : > { %5417 = vmatmul.mubr.bf16.gmra.mxu0 %v7410_v18  ;;  %v1232_v20 = vmul.f32 %v6055_v22, %v7620_v47  ;;  %v7688_v47 = vsel %vm2164_vm5, %v3036_v50, %v3037_v54  ;;  %v2767_v22 = vrot.slane %v2765_v2, 1 }
 0x297   : > { %5420 = vmatprep.mubr.bf16.mxu0 %v7435_v39  ;;  %5469 = vmatmul.mubr.bf16.gmra.mxu1 %v7573_v10  ;;  %8812 = vst [vmem:[#allocation41_spill] sm:$0xff] %v7688_v47  ;;  %v2763_v34 = vor.u32 %v2762_v12, %v2758_v24  ;;  %v5897_v12 = vld [vmem:[#allocation10 + $0x230] sm:$0xff]  }
 0x298   : > { %5472 = vmatprep.mubr.bf16.mxu1 %v7585_v14  ;;  %v1235_v57 = vpack.c.bf16 %v1232_v20, %v1231_v33 }
 0x299   : > { %v7697_v20 = vsel %vm1488_vm4, %v2763_v34, %v2767_v22 }
 0x29a   : > { %v1247_v27 = vsel %vm7682_vm6, 0, %v1235_v57 }
 0x29b   : > { %v1313_v13 = vshrl.u32 %v1247_v27, 16  ;;  %v1316_v9 = vshll.u32 %v1247_v27, 16 }
 0x29d   : > { %v1315_v0 = vrot.slane %v1313_v13, 7 }
 0x29e   : > { %5421 = vmatmul.mubr.bf16.gmra.mxu0 %v7443_v53  ;;  %v6057_v3 = vpop.eup %6056 }
 0x29f   : > { %5424 = vmatprep.mubr.bf16.mxu0 %v7462_v48  ;;  %5473 = vmatmul.mubr.bf16.gmra.mxu1 %v7591_v62  ;;  %v6059_v41 = vpop.eup %6058  ;;  %v1221_v58 = vadd.f32 1.0, %v6057_v3  ;;  %v1318_v50 = vor.u32 %v1316_v9, %v1315_v0  ;;  %v5899_v9 = vld [vmem:[#allocation10 + $0x220] sm:$0xff]  }
 0x2a0   : > { %5476 = vmatprep.mubr.bf16.mxu1 %v7603_v15  ;;  %v1222_v33 = vadd.f32 1.0, %v6059_v41 }
 0x2a1   : > { %6060 = vrcp.f32 %v1221_v58  ;;  %v7706_v2 = vsel %vm7119_vm3, 0, %v1318_v50 }
 0x2a2   : > { %6062 = vrcp.f32 %v1222_v33  ;;  %v3560_v34 = vshll.u32 %v7706_v2, 16 }
 0x2a4   : > { %v3562_v50 = vrot.slane %v3560_v34, 1  ;;  %v5900_v34 = vld [vmem:[#allocation10 + $0x218] sm:$0xff]  }
 0x2a6   : > { %5425 = vmatmul.mubr.bf16.gmra.mxu0 %v7466_v30 }
 0x2a7   : > { %5428 = vmatprep.mubr.bf16.mxu0 %v7476_v17  ;;  %5477 = vmatmul.mubr.bf16.gmra.mxu1 %v7688_v47 }
 0x2a8   : > { %5544 = vmatprep.mubr.bf16.mxu1 %v7214_v37 }
 0x2ae   : > { %5429 = vmatmul.mubr.bf16.gmra.mxu0 %v7697_v20 }
 0x2af   : > { %v5258_v19 = vpop.f32.mrf.mxu1  ;;  %5496 = vmatprep.mubr.bf16.mxu0 %v7144_v40  ;;  %5545 = vmatmul.mubr.bf16.vlgmr.msra.gmra.mxu1 %v7274_v7 }
 0x2b0   : > { %5548 = vmatprep.mubr.bf16.mxu1 %v7285_v28 }
 0x2b1   : > { %v2005_v37 = vpop.f32.mrf.mxu1 }
 0x2b3   : > { %v5259_v57 = vpop.f32.mrf.mxu1 }
 0x2b5   : > { %v2008_v54 = vpop.f32.mrf.mxu1 }
 0x2b6   : > { %v5210_v24 = vpop.f32.mrf.mxu0  ;;  %5497 = vmatmul.mubr.bf16.vlgmr.msra.gmra.mxu0 %v7178_v5  ;;  %v5898_v5 = vld [vmem:[#allocation10 + $0x228] sm:$0xff]  }
 0x2b7   : > { %v7708_v3 = vadd.f32 %v5258_v19, %v5210_v24  ;;  %v5262_v40 = vpop.f32.mrf.mxu1  ;;  %5500 = vmatprep.mubr.bf16.mxu0 %v7188_v45  ;;  %5549 = vmatmul.mubr.bf16.gmra.mxu1 %v7318_v52  ;;  %v7721_v45 = vsel %vm7119_vm3, %v1315_v0, 0  ;;  %v6061_v52 = vpop.eup %6060 }
 0x2b8   : > { %5577 = vmatpush3.bf16.msra.mxu0 %v7653_v29  ;;  %v1796_v7 = vpop.f32.mrf.mxu0  ;;  %5552 = vmatprep.mubr.bf16.mxu1 %v7324_v44  ;;  %v6063_v22 = vpop.eup %6062 }
 0x2b9   : > { %v7714_v28 = vadd.f32 %v2005_v37, %v1796_v7  ;;  %v2021_v27 = vpop.f32.mrf.mxu1  ;;  %5578 = vmatprep.subr.bf16.mxu0 %v5897_v12  ;;  %v3558_v37 = vshrl.u32 %v7706_v2, 16 }
 0x2ba   : > { %v5211_v41 = vpop.f32.mrf.mxu0 }
 0x2bb   : > { %v7717_v58 = vadd.f32 %v5259_v57, %v5211_v41  ;;  %v5263_v13 = vpop.f32.mrf.mxu1  ;;  %v3565_v57 = vshll.u32 %v7721_v45, 16 }
 0x2bc   : > { %v1799_v29 = vpop.f32.mrf.mxu0  ;;  %5579 = vmatpush3.bf16.msra.mxu0 %v5897_v12  ;;  %v1234_v12 = vmul.f32 %v6063_v22, %v7661_v32 }
 0x2bd   : > { %v7723_v44 = vadd.f32 %v2008_v54, %v1799_v29  ;;  %v2024_v33 = vpop.f32.mrf.mxu1  ;;  %5580 = vmatprep.subr.bf16.mxu0 %v5898_v5  ;;  %v1233_v54 = vmul.f32 %v6061_v52, %v7657_v51  ;;  %v3563_v29 = vor.u32 %v3562_v50, %v3558_v37 }
 0x2be   : > { %v5214_v19 = vpop.f32.mrf.mxu0  ;;  %5501 = vmatmul.mubr.bf16.gmra.mxu0 %v7231_v59 }
 0x2bf   : > { %v7728_v24 = vadd.f32 %v5262_v40, %v5214_v19  ;;  %v5266_v0 = vpop.f32.mrf.mxu1  ;;  %5504 = vmatprep.mubr.bf16.mxu0 %v7248_v46  ;;  %5553 = vmatmul.mubr.bf16.gmra.mxu1 %v7363_v49  ;;  %v3567_v19 = vrot.slane %v3565_v57, 1  ;;  %v1236_v49 = vpack.c.bf16 %v1234_v12, %v1233_v54  ;;  %v5903_v12 = vld [vmem:[#allocation10 + $0x200] sm:$0xff]  }
 0x2c0   : > { %v1812_v7 = vpop.f32.mrf.mxu0  ;;  %5556 = vmatprep.mubr.bf16.mxu1 %v7647_v42  ;;  %5581 = vmatpush3.bf16.msra.mxu0 %v5898_v5  ;;  %v5901_v42 = vld [vmem:[#allocation10 + $0x210] sm:$0xff]  }
 0x2c1   : > { %v7735_v59 = vadd.f32 %v2021_v27, %v1812_v7  ;;  %v2037_v41 = vpop.f32.mrf.mxu1  ;;  %5582 = vmatprep.subr.bf16.mxu0 %v5899_v9  ;;  %v3568_v27 = vsel %vm1488_vm4, %v3563_v29, %v3567_v19 }
 0x2c2   : > { %v5215_v40 = vpop.f32.mrf.mxu0 }
 0x2c3   : > { %v7737_v47 = vadd.f32 %v5263_v13, %v5215_v40  ;;  %v5267_v46 = vpop.f32.mrf.mxu1  ;;  %v1248_v13 = vsel %vm7682_vm6, 0, %v1236_v49 }
 0x2c4   : > { %v1815_v15 = vpop.f32.mrf.mxu0  ;;  %5583 = vmatpush3.bf16.msra.mxu0 %v5899_v9  ;;  %v1383_v50 = vshrl.u32 %v1248_v13, 16 }
 0x2c5   : > { %v7739_v51 = vadd.f32 %v2024_v33, %v1815_v15  ;;  %v2040_v32 = vpop.f32.mrf.mxu1  ;;  %5584 = vmatprep.subr.bf16.mxu0 %v5900_v34 }
 0x2c6   : > { %v5218_v5 = vpop.f32.mrf.mxu0  ;;  %5505 = vmatmul.mubr.bf16.gmra.mxu0 %v7289_v36  ;;  %v5902_v36 = vld [vmem:[#allocation10 + $0x208] sm:$0xff]  }
 0x2c7   : > { %v7743_v52 = vadd.f32 %v5266_v0, %v5218_v5  ;;  %v5270_v22 = vpop.f32.mrf.mxu1  ;;  %5508 = vmatprep.mubr.bf16.mxu0 %v7530_v60  ;;  %5557 = vmatmul.mubr.bf16.gmra.mxu1 %v3568_v27 }
 0x2c8   : > { %v1828_v9 = vpop.f32.mrf.mxu0  ;;  %5560 = vmatprep.mubr.bf16.mxu1 %v7410_v18  ;;  %5585 = vmatpush3.bf16.msra.mxu0 %v5900_v34  ;;  %v1385_v18 = vrot.slane %v1383_v50, 7 }
 0x2c9   : > { %v7749_v15 = vadd.f32 %v2037_v41, %v1828_v9  ;;  %v2053_v33 = vpop.f32.mrf.mxu1  ;;  %5586 = vmatprep.subr.bf16.mxu0 %v5901_v42  ;;  %v1386_v41 = vshll.u32 %v1248_v13, 16 }
 0x2ca   : > { %v5219_v37 = vpop.f32.mrf.mxu0 }
 0x2cb   : > { %v7751_v57 = vadd.f32 %v5267_v46, %v5219_v37  ;;  %v5271_v0 = vpop.f32.mrf.mxu1 }
 0x2cc   : > { %v1831_v54 = vpop.f32.mrf.mxu0  ;;  %5587 = vmatpush3.bf16.msra.mxu0 %v5901_v42 }
 0x2cd   : > { %v7753_v60 = vadd.f32 %v2040_v32, %v1831_v54  ;;  %v2056_v31 = vpop.f32.mrf.mxu1  ;;  %5588 = vmatprep.subr.bf16.mxu0 %v5902_v36  ;;  %v1388_v32 = vor.u32 %v1386_v41, %v1385_v18 }
 0x2ce   : > { %v5222_v7 = vpop.f32.mrf.mxu0  ;;  %5509 = vmatmul.mubr.bf16.gmra.mxu0 %v7706_v2 }
 0x2cf   : > { %v7756_v34 = vadd.f32 %v5270_v22, %v5222_v7  ;;  %v5274_v40 = vpop.f32.mrf.mxu1  ;;  %5512 = vmatprep.mubr.bf16.mxu0 %v7338_v1  ;;  %5561 = vmatmul.mubr.bf16.gmra.mxu1 %v7435_v39  ;;  %v7770_v39 = vsel %vm7119_vm3, 0, %v1388_v32 }
 0x2d0   : > { %v1844_v29 = vpop.f32.mrf.mxu0  ;;  %5564 = vmatprep.mubr.bf16.mxu1 %v7443_v53  ;;  %5589 = vmatpush3.bf16.msra.mxu0 %v5902_v36 }
 0x2d1   : > { %v7761_v19 = vadd.f32 %v2053_v33, %v1844_v29  ;;  %v2069_v46 = vpop.f32.mrf.mxu1  ;;  %5590 = vmatprep.subr.bf16.mxu0 %v5903_v12 }
 0x2d2   : > { %v5223_v49 = vpop.f32.mrf.mxu0 }
 0x2d3   : > { %v7763_v42 = vadd.f32 %v5271_v0, %v5223_v49  ;;  %v5275_v5 = vpop.f32.mrf.mxu1 }
 0x2d4   : > { %v1847_v27 = vpop.f32.mrf.mxu0  ;;  %5591 = vmatpush3.bf16.msra.mxu0 %v5903_v12 }
 0x2d5   : > { %v7765_v22 = vadd.f32 %v2056_v31, %v1847_v27  ;;  %v2072_v1 = vpop.f32.mrf.mxu1  ;;  %v7784_v31 = vsel %vm7119_vm3, %v1385_v18, 0 }
 0x2d6   : > { %v5226_v13 = vpop.f32.mrf.mxu0  ;;  %5513 = vmatmul.mubr.bf16.gmra.mxu0 %v7374_v56  ;;  %v3572_v56 = vshll.u32 %v7770_v39, 16 }
 0x2d7   : > { %v7772_v53 = vadd.f32 %v5274_v40, %v5226_v13  ;;  %v5278_v9 = vpop.f32.mrf.mxu1  ;;  %5516 = vmatprep.mubr.bf16.mxu0 %v7382_v26  ;;  %5565 = vmatmul.mubr.bf16.gmra.mxu1 %v7462_v48  ;;  %v3577_v40 = vshll.u32 %v7784_v31, 16 }
 0x2d8   : > { %v1860_v33 = vpop.f32.mrf.mxu0  ;;  %5568 = vmatprep.mubr.bf16.mxu1 %v7466_v30  ;;  %v3570_v30 = vshrl.u32 %v7770_v39, 16  ;;  %v3574_v41 = vrot.slane %v3572_v56, 1 }
 0x2d9   : > { %v7777_v36 = vadd.f32 %v2069_v46, %v1860_v33  ;;  %v2085_v37 = vpop.f32.mrf.mxu1 }
 0x2da   : > { %v5227_v50 = vpop.f32.mrf.mxu0 }
 0x2db   : > { %v7780_v0 = vadd.f32 %v5275_v5, %v5227_v50  ;;  %v5279_v54 = vpop.f32.mrf.mxu1  ;;  %v3579_v5 = vrot.slane %v3577_v40, 1 }
 0x2dc   : > { %v1863_v12 = vpop.f32.mrf.mxu0 }
 0x2dd   : > { %v7786_v26 = vadd.f32 %v2072_v1, %v1863_v12  ;;  %v2088_v48 = vpop.f32.mrf.mxu1 }
 0x2de   : > { %v5230_v7 = vpop.f32.mrf.mxu0  ;;  %5517 = vmatmul.mubr.bf16.gmra.mxu0 %v7414_v23  ;;  %v3575_v23 = vor.u32 %v3574_v41, %v3570_v30 }
 0x2df   : > { %v7791_v29 = vadd.f32 %v5278_v9, %v5230_v7  ;;  %v5282_v46 = vpop.f32.mrf.mxu1  ;;  %5520 = vmatprep.mubr.bf16.mxu0 %v7422_v63  ;;  %5569 = vmatmul.mubr.bf16.gmra.mxu1 %v7476_v17 }
 0x2e0   : > { %v1876_v35 = vpop.f32.mrf.mxu0  ;;  %5572 = vmatprep.mubr.bf16.mxu1 %v7697_v20  ;;  %v3580_v63 = vsel %vm1488_vm4, %v3575_v23, %v3579_v5 }
 0x2e1   : > { %v7796_v18 = vadd.f32 %v2085_v37, %v1876_v35  ;;  %v2101_v49 = vpop.f32.mrf.mxu1 }
 0x2e2   : > { %v5231_v32 = vpop.f32.mrf.mxu0 }
 0x2e3   : > { %v7798_v27 = vadd.f32 %v5279_v54, %v5231_v32  ;;  %v5283_v1 = vpop.f32.mrf.mxu1 }
 0x2e4   : > { %v1879_v13 = vpop.f32.mrf.mxu0 }
 0x2e5   : > { %v7800_v9 = vadd.f32 %v2088_v48, %v1879_v13  ;;  %v2104_v33 = vpop.f32.mrf.mxu1 }
 0x2e6   : > { %v5234_v50 = vpop.f32.mrf.mxu0  ;;  %5521 = vmatmul.mubr.bf16.gmra.mxu0 %v7447_v25 }
 0x2e7   : > { %v7804_v17 = vadd.f32 %v5282_v46, %v5234_v50  ;;  %v5286_v20 = vpop.f32.mrf.mxu1  ;;  %5524 = vmatprep.mubr.bf16.mxu0 %v7595_v16  ;;  %5573 = vmatmul.mubr.bf16.gmra.mxu1 %v3580_v63 }
 0x2e8   : > { %v1892_v37 = vpop.f32.mrf.mxu0 }
 0x2e9   : > { %v7807_v56 = vadd.f32 %v2101_v49, %v1892_v37  ;;  %v2117_v54 = vpop.f32.mrf.mxu1 }
 0x2ea   : > { %v5235_v12 = vpop.f32.mrf.mxu0 }
 0x2eb   : > { %v7809_v7 = vadd.f32 %v5283_v1, %v5235_v12  ;;  %v5287_v48 = vpop.f32.mrf.mxu1 }
 0x2ec   : > { %v1895_v30 = vpop.f32.mrf.mxu0 }
 0x2ed   : > { %v7811_v41 = vadd.f32 %v2104_v33, %v1895_v30  ;;  %v2120_v25 = vpop.f32.mrf.mxu1 }
 0x2ee   : > { %v5238_v40 = vpop.f32.mrf.mxu0  ;;  %5525 = vmatmul.mubr.bf16.gmra.mxu0 %v7770_v39 }
 0x2ef   : > { %v7814_v46 = vadd.f32 %v5286_v20, %v5238_v40  ;;  %v5354_v35 = vpop.f32.mrf.mxu1  ;;  %5592 = vmatprep.mubr.bf16.mxu0 %v7492_v8 }
 0x2f0   : > { %v1908_v16 = vpop.f32.mrf.mxu0 }
 0x2f1   : > { %v7817_v49 = vadd.f32 %v2117_v54, %v1908_v16  ;;  %v2586_v32 = vpop.f32.mrf.mxu1 }
 0x2f2   : > { %v5239_v23 = vpop.f32.mrf.mxu0 }
 0x2f3   : > { %v7819_v5 = vadd.f32 %v5287_v48, %v5239_v23  ;;  %v5355_v1 = vpop.f32.mrf.mxu1 }
 0x2f4   : > { %v1911_v13 = vpop.f32.mrf.mxu0 }
 0x2f5   : > { %v7821_v33 = vadd.f32 %v2120_v25, %v1911_v13  ;;  %v2589_v50 = vpop.f32.mrf.mxu1 }
 0x2f6   : > { %v5306_v63 = vpop.f32.mrf.mxu0  ;;  %5593 = vmatmul.mubr.bf16.vlgmr.msra.gmra.mxu0 %v7504_v11 }
 0x2f7   : > { %v2457_v20 = vadd.f32 %v5306_v63, %v7708_v3  ;;  %v5358_v37 = vpop.f32.mrf.mxu1  ;;  %5596 = vmatprep.mubr.bf16.mxu0 %v7510_v55 }
 0x2f8   : > { %v2328_v8 = vpop.f32.mrf.mxu0 }
 0x2f9   : > { %v2455_v54 = vadd.f32 %v2328_v8, %v7714_v28  ;;  %v2602_v12 = vpop.f32.mrf.mxu1  ;;  %v7827_v30 = vadd.f32 %v5354_v35, %v2457_v20 }
 0x2fa   : > { %v5307_v48 = vpop.f32.mrf.mxu0 }
 0x2fb   : > { %v2458_v40 = vadd.f32 %v5307_v48, %v7717_v58  ;;  %v5359_v25 = vpop.f32.mrf.mxu1  ;;  %v7830_v16 = vadd.f32 %v2586_v32, %v2455_v54 }
 0x2fc   : > { %v2331_v23 = vpop.f32.mrf.mxu0 }
 0x2fd   : > { %v2456_v11 = vadd.f32 %v2331_v23, %v7723_v44  ;;  %v2605_v13 = vpop.f32.mrf.mxu1  ;;  %v7833_v3 = vadd.f32 %v5355_v1, %v2458_v40 }
 0x2fe   : > { %v5310_v63 = vpop.f32.mrf.mxu0  ;;  %5597 = vmatmul.mubr.bf16.gmra.mxu0 %v7522_v6 }
 0x2ff   : > { %v2461_v55 = vadd.f32 %v5310_v63, %v7728_v24  ;;  %v5362_v28 = vpop.f32.mrf.mxu1  ;;  %5600 = vmatprep.mubr.bf16.mxu0 %v7526_v43  ;;  %v7838_v35 = vadd.f32 %v2589_v50, %v2456_v11  ;;  %v3845_v63 = vrot.slane %v7706_v2, 1 }
 0x300   : > { %v2344_v58 = vpop.f32.mrf.mxu0 }
 0x301   : > { %v2459_v32 = vadd.f32 %v2344_v58, %v7735_v59  ;;  %v2618_v20 = vpop.f32.mrf.mxu1  ;;  %v7841_v8 = vadd.f32 %v5358_v37, %v2461_v55 }
 0x302   : > { %v5311_v44 = vpop.f32.mrf.mxu0 }
 0x303   : > { %v2462_v1 = vadd.f32 %v5311_v44, %v7737_v47  ;;  %v5363_v54 = vpop.f32.mrf.mxu1  ;;  %v7844_v48 = vadd.f32 %v2602_v12, %v2459_v32 }
 0x304   : > { %v2347_v6 = vpop.f32.mrf.mxu0 }
 0x305   : > { %v2460_v24 = vadd.f32 %v2347_v6, %v7739_v51  ;;  %v2621_v40 = vpop.f32.mrf.mxu1  ;;  %v7847_v23 = vadd.f32 %v5359_v25, %v2462_v1  ;;  %v3846_v51 = vrot.slane %v7721_v45, 1 }
 0x306   : > { %v5314_v43 = vpop.f32.mrf.mxu0  ;;  %5601 = vmatmul.mubr.bf16.gmra.mxu0 %v7538_v21 }
 0x307   : > { %v2465_v59 = vadd.f32 %v5314_v43, %v7743_v52  ;;  %v5366_v50 = vpop.f32.mrf.mxu1  ;;  %5604 = vmatprep.mubr.bf16.mxu0 %v7640_v61  ;;  %v7852_v37 = vadd.f32 %v2605_v13, %v2460_v24  ;;  %v3847_v44 = vsel %vm2164_vm5, %v3845_v63, %v3846_v51 }
 0x308   : > { %v2360_v47 = vpop.f32.mrf.mxu0 }
 0x309   : > { %v2463_v12 = vadd.f32 %v2360_v47, %v7749_v15  ;;  %v2634_v11 = vpop.f32.mrf.mxu1  ;;  %v7857_v25 = vadd.f32 %v5362_v28, %v2465_v59 }
 0x30a   : > { %v5315_v55 = vpop.f32.mrf.mxu0 }
 0x30b   : > { %v2466_v21 = vadd.f32 %v5315_v55, %v7751_v57  ;;  %v5367_v58 = vpop.f32.mrf.mxu1  ;;  %v7860_v52 = vadd.f32 %v2618_v20, %v2463_v12 }
 0x30c   : > { %v2363_v32 = vpop.f32.mrf.mxu0 }
 0x30d   : > { %v2464_v61 = vadd.f32 %v2363_v32, %v7753_v60  ;;  %v2637_v13 = vpop.f32.mrf.mxu1  ;;  %v7864_v15 = vadd.f32 %v5363_v54, %v2466_v21 }
 0x30e   : > { %v5318_v1 = vpop.f32.mrf.mxu0  ;;  %5605 = vmatmul.mubr.bf16.gmra.mxu0 %v3847_v44 }
 0x30f   : > { %v2469_v2 = vadd.f32 %v5318_v1, %v7756_v34  ;;  %v5370_v45 = vpop.f32.mrf.mxu1  ;;  %5608 = vmatprep.mubr.bf16.mxu0 %v7556_v4  ;;  %v7868_v28 = vadd.f32 %v2621_v40, %v2464_v61 }
 0x310   : > { %v2376_v57 = vpop.f32.mrf.mxu0 }
 0x311   : > { %v2467_v20 = vadd.f32 %v2376_v57, %v7761_v19  ;;  %v2650_v6 = vpop.f32.mrf.mxu1  ;;  %v7871_v24 = vadd.f32 %v5366_v50, %v2469_v2 }
 0x312   : > { %v5319_v60 = vpop.f32.mrf.mxu0 }
 0x313   : > { %v2470_v43 = vadd.f32 %v5319_v60, %v7763_v42  ;;  %v5371_v54 = vpop.f32.mrf.mxu1  ;;  %v7874_v59 = vadd.f32 %v2634_v11, %v2467_v20 }
 0x314   : > { %v2379_v47 = vpop.f32.mrf.mxu0 }
 0x315   : > { %v2468_v34 = vadd.f32 %v2379_v47, %v7765_v22  ;;  %v2653_v12 = vpop.f32.mrf.mxu1  ;;  %v7877_v63 = vadd.f32 %v5367_v58, %v2470_v43  ;;  %v8813_v47 = vld [vmem:[#allocation40_spill] sm:$0xff] }
 0x316   : > { %v5322_v4 = vpop.f32.mrf.mxu0  ;;  %5609 = vmatmul.mubr.bf16.gmra.mxu0 %v7567_v38 }
 0x317   : > { %v2473_v19 = vadd.f32 %v5322_v4, %v7772_v53  ;;  %v5374_v40 = vpop.f32.mrf.mxu1  ;;  %5612 = vmatprep.mubr.bf16.mxu0 %v7573_v10  ;;  %v7882_v50 = vadd.f32 %v2637_v13, %v2468_v34 }
 0x318   : > { %v2392_v42 = vpop.f32.mrf.mxu0 }
 0x319   : > { %v2471_v11 = vadd.f32 %v2392_v42, %v7777_v36  ;;  %v2666_v51 = vpop.f32.mrf.mxu1  ;;  %v7885_v55 = vadd.f32 %v5370_v45, %v2473_v19  ;;  %v3848_v42 = vrot.slane %v7770_v39, 1 }
 0x31a   : > { %v5323_v22 = vpop.f32.mrf.mxu0 }
 0x31b   : > { %v2474_v21 = vadd.f32 %v5323_v22, %v7780_v0  ;;  %v5375_v58 = vpop.f32.mrf.mxu1  ;;  %v7888_v32 = vadd.f32 %v2650_v6, %v2471_v11 }
 0x31c   : > { %v2395_v38 = vpop.f32.mrf.mxu0 }
 0x31d   : > { %v2472_v53 = vadd.f32 %v2395_v38, %v7786_v26  ;;  %v2669_v61 = vpop.f32.mrf.mxu1  ;;  %v7891_v44 = vadd.f32 %v5371_v54, %v2474_v21 }
 0x31e   : > { %v5326_v10 = vpop.f32.mrf.mxu0  ;;  %5613 = vmatmul.mubr.bf16.gmra.mxu0 %v7585_v14 }
 0x31f   : > { %v2477_v36 = vadd.f32 %v5326_v10, %v7791_v29  ;;  %v5378_v13 = vpop.f32.mrf.mxu1  ;;  %5616 = vmatprep.mubr.bf16.mxu0 %v7591_v62  ;;  %v7896_v1 = vadd.f32 %v2653_v12, %v2472_v53  ;;  %v8814_v12 = vld [vmem:[#allocation41_spill] sm:$0xff] }
 0x320   : > { %v2408_v0 = vpop.f32.mrf.mxu0 }
 0x321   : > { %v2475_v2 = vadd.f32 %v2408_v0, %v7796_v18  ;;  %v2682_v45 = vpop.f32.mrf.mxu1  ;;  %v7899_v57 = vadd.f32 %v5374_v40, %v2477_v36 }
 0x322   : > { %v5327_v26 = vpop.f32.mrf.mxu0 }
 0x323   : > { %v2478_v20 = vadd.f32 %v5327_v26, %v7798_v27  ;;  %v5379_v6 = vpop.f32.mrf.mxu1  ;;  %v7902_v60 = vadd.f32 %v2666_v51, %v2475_v2 }
 0x324   : > { %v2411_v14 = vpop.f32.mrf.mxu0 }
 0x325   : > { %v2476_v29 = vadd.f32 %v2411_v14, %v7800_v9  ;;  %v2685_v43 = vpop.f32.mrf.mxu1  ;;  %v7905_v54 = vadd.f32 %v5375_v58, %v2478_v20  ;;  %v3849_v9 = vrot.slane %v7784_v31, 1 }
 0x326   : > { %v5330_v62 = vpop.f32.mrf.mxu0  ;;  %5617 = vmatmul.mubr.bf16.gmra.mxu0 %v8813_v47 }
 0x327   : > { %v2481_v18 = vadd.f32 %v5330_v62, %v7804_v17  ;;  %v5382_v34 = vpop.f32.mrf.mxu1  ;;  %5620 = vmatprep.mubr.bf16.mxu0 %v8814_v12  ;;  %v7910_v4 = vadd.f32 %v2669_v61, %v2476_v29  ;;  %v3850_v61 = vsel %vm2164_vm5, %v3848_v42, %v3849_v9 }
 0x328   : > { %v2424_v27 = vpop.f32.mrf.mxu0 }
 0x329   : > { %v2479_v19 = vadd.f32 %v2424_v27, %v7807_v56  ;;  %v2698_v40 = vpop.f32.mrf.mxu1  ;;  %v7915_v11 = vadd.f32 %v5378_v13, %v2481_v18 }
 0x32a   : > { %v5331_v51 = vpop.f32.mrf.mxu0 }
 0x32b   : > { %v2482_v22 = vadd.f32 %v5331_v51, %v7809_v7  ;;  %v5383_v21 = vpop.f32.mrf.mxu1  ;;  %v7918_v17 = vadd.f32 %v2682_v45, %v2479_v19 }
 0x32c   : > { %v2427_v58 = vpop.f32.mrf.mxu0 }
 0x32d   : > { %v2480_v38 = vadd.f32 %v2427_v58, %v7811_v41  ;;  %v2701_v53 = vpop.f32.mrf.mxu1  ;;  %v7922_v56 = vadd.f32 %v5379_v6, %v2482_v22 }
 0x32e   : > { %v5334_v10 = vpop.f32.mrf.mxu0  ;;  %5621 = vmatmul.mubr.bf16.gmra.mxu0 %v3850_v61 }
 0x32f   : > { %v2485_v39 = vadd.f32 %v5334_v10, %v7814_v46  ;;  %v7925_v31 = vpop.f32.mrf.mxu1  ;;  %v7927_v36 = vadd.f32 %v2685_v43, %v2480_v38 }
 0x330   : > { %v2440_v7 = vpop.f32.mrf.mxu0 }
 0x331   : > { %v2483_v13 = vadd.f32 %v2440_v7, %v7817_v49  ;;  %v7930_v0 = vpop.f32.mrf.mxu1  ;;  %v7932_v2 = vadd.f32 %v5382_v34, %v2485_v39 }
 0x332   : > { %v5335_v41 = vpop.f32.mrf.mxu0 }
 0x333   : > { %v2486_v45 = vadd.f32 %v5335_v41, %v7819_v5  ;;  %v7935_v26 = vpop.f32.mrf.mxu1  ;;  %v7937_v20 = vadd.f32 %v2698_v40, %v2483_v13 }
 0x334   : > { %v2443_v6 = vpop.f32.mrf.mxu0 }
 0x335   : > { %v2484_v46 = vadd.f32 %v2443_v6, %v7821_v33  ;;  %v7940_v14 = vpop.f32.mrf.mxu1  ;;  %v7942_v29 = vadd.f32 %v5383_v21, %v2486_v45 }
 0x336   : > { %v5402_v43 = vpop.f32.mrf.mxu0 }
 0x337   : > { %v7945_v49 = vadd.f32 %v5402_v43, %v7827_v30  ;;  %v7947_v62 = vpop.f32.mrf.mxu1  ;;  %v7949_v47 = vadd.f32 %v2701_v53, %v2484_v46 }
 0x338   : > { %v2870_v5 = vpop.f32.mrf.mxu0 }
 0x339   : > { %v7952_v18 = vadd.f32 %v2870_v5, %v7830_v16  ;;  %v7954_v34 = vpop.f32.mrf.mxu1 }
 0x33a   : > { %v5403_v12 = vpop.f32.mrf.mxu0 }
 0x33b   : > { %v7957_v33 = vadd.f32 %v5403_v12, %v7833_v3  ;;  %v7959_v27 = vpop.f32.mrf.mxu1 }
 0x33c   : > { %v2873_v19 = vpop.f32.mrf.mxu0 }
 0x33d   : > { %v7962_v30 = vadd.f32 %v2873_v19, %v7838_v35  ;;  %v7964_v40 = vpop.f32.mrf.mxu1 }
 0x33e   : > { %v5406_v42 = vpop.f32.mrf.mxu0 }
 0x33f   : > { %v7967_v9 = vadd.f32 %v5406_v42, %v7841_v8  ;;  %v7969_v16 = vpop.f32.mrf.mxu1 }
 0x340   : > { %v2886_v51 = vpop.f32.mrf.mxu0 }
 0x341   : > { %v7972_v22 = vadd.f32 %v2886_v51, %v7844_v48  ;;  %v7974_v3 = vpop.f32.mrf.mxu1 }
 0x342   : > { %v5407_v21 = vpop.f32.mrf.mxu0 }
 0x343   : > { %v7977_v58 = vadd.f32 %v5407_v21, %v7847_v23  ;;  %v7979_v35 = vpop.f32.mrf.mxu1 }
 0x344   : > { %v2889_v38 = vpop.f32.mrf.mxu0 }
 0x345   : > { %v7982_v53 = vadd.f32 %v2889_v38, %v7852_v37  ;;  %v7984_v8 = vpop.f32.mrf.mxu1 }
 0x346   : > { %v5410_v61 = vpop.f32.mrf.mxu0 }
 0x347   : > { %v7987_v10 = vadd.f32 %v5410_v61, %v7857_v25  ;;  %v7989_v48 = vpop.f32.mrf.mxu1 }
 0x348   : > { %v2902_v39 = vpop.f32.mrf.mxu0 }
 0x349   : > { %v7992_v7 = vadd.f32 %v2902_v39, %v7860_v52  ;;  %v7994_v23 = vpop.f32.mrf.mxu1 }
 0x34a   : > { %v5411_v13 = vpop.f32.mrf.mxu0 }
 0x34b   : > { %v7997_v41 = vadd.f32 %v5411_v13, %v7864_v15  ;;  %v7999_v37 = vpop.f32.mrf.mxu1 }
 0x34c   : > { %v2905_v45 = vpop.f32.mrf.mxu0 }
 0x34d   : > { %v8002_v6 = vadd.f32 %v2905_v45, %v7868_v28  ;;  %v8004_v25 = vpop.f32.mrf.mxu1 }
 0x34e   : > { %v5414_v46 = vpop.f32.mrf.mxu0 }
 0x34f   : > { %v8007_v43 = vadd.f32 %v5414_v46, %v7871_v24  ;;  %v8009_v52 = vpop.f32.mrf.mxu1 }
 0x350   : > { %v2918_v5 = vpop.f32.mrf.mxu0 }
 0x351   : > { %v8012_v12 = vadd.f32 %v2918_v5, %v7874_v59  ;;  %v8014_v15 = vpop.f32.mrf.mxu1 }
 0x352   : > { %v5415_v19 = vpop.f32.mrf.mxu0 }
 0x353   : > { %v8017_v42 = vadd.f32 %v5415_v19, %v7877_v63  ;;  %v8019_v28 = vpop.f32.mrf.mxu1 }
 0x354   : > { %v2921_v51 = vpop.f32.mrf.mxu0 }
 0x355   : > { %v8022_v21 = vadd.f32 %v2921_v51, %v7882_v50  ;;  %v8024_v24 = vpop.f32.mrf.mxu1 }
 0x356   : > { %v5418_v38 = vpop.f32.mrf.mxu0 }
 0x357   : > { %v8027_v61 = vadd.f32 %v5418_v38, %v7885_v55  ;;  %v8029_v59 = vpop.f32.mrf.mxu1 }
 0x358   : > { %v2934_v39 = vpop.f32.mrf.mxu0 }
 0x359   : > { %v8032_v13 = vadd.f32 %v2934_v39, %v7888_v32  ;;  %v8034_v63 = vpop.f32.mrf.mxu1 }
 0x35a   : > { %8815 = vst [vmem:[#allocation40_spill] sm:$0xff] %v8034_v63  ;;  %v5419_v45 = vpop.f32.mrf.mxu0 }
 0x35b   : > { %v8037_v46 = vadd.f32 %v5419_v45, %v7891_v44  ;;  %v8039_v50 = vpop.f32.mrf.mxu1 }
 0x35c   : > { %8816 = vst [vmem:[#allocation41_spill] sm:$0xff] %v8039_v50  ;;  %v2937_v5 = vpop.f32.mrf.mxu0 }
 0x35d   : > { %v8042_v19 = vadd.f32 %v2937_v5, %v7896_v1  ;;  %v8044_v55 = vpop.f32.mrf.mxu1 }
 0x35e   : > { %8817 = vst [vmem:[#allocation42_spill] sm:$0xff] %v8044_v55  ;;  %v5422_v51 = vpop.f32.mrf.mxu0 }
 0x35f   : > { %v8047_v38 = vadd.f32 %v5422_v51, %v7899_v57  ;;  %v8049_v32 = vpop.f32.mrf.mxu1 }
 0x360   : > { %8818 = vst [vmem:[#allocation43_spill] sm:$0xff] %v8049_v32  ;;  %v2950_v39 = vpop.f32.mrf.mxu0 }
 0x361   : > { %v8052_v63 = vadd.f32 %v2950_v39, %v7902_v60  ;;  %v8054_v44 = vpop.f32.mrf.mxu1 }
 0x362   : > { %8819 = vst [vmem:[#allocation44_spill] sm:$0xff] %v8054_v44  ;;  %v5423_v45 = vpop.f32.mrf.mxu0 }
 0x363   : > { %v8057_v50 = vadd.f32 %v5423_v45, %v7905_v54  ;;  %v8059_v1 = vpop.f32.mrf.mxu1 }
 0x364   : > { %8820 = vst [vmem:[#allocation45_spill] sm:$0xff] %v8059_v1  ;;  %v2953_v5 = vpop.f32.mrf.mxu0 }
 0x365   : > { %v8062_v55 = vadd.f32 %v2953_v5, %v7910_v4  ;;  %v8064_v57 = vpop.f32.mrf.mxu1 }
 0x366   : > { %8821 = vst [vmem:[#allocation46_spill] sm:$0xff] %v8064_v57  ;;  %v5426_v51 = vpop.f32.mrf.mxu0 }
 0x367   : > { %v8067_v32 = vadd.f32 %v5426_v51, %v7915_v11  ;;  %v8069_v60 = vpop.f32.mrf.mxu1 }
 0x368   : > { %8822 = vst [vmem:[#allocation47_spill] sm:$0xff] %v8069_v60  ;;  %v2966_v39 = vpop.f32.mrf.mxu0 }
 0x369   : > { %v8072_v44 = vadd.f32 %v2966_v39, %v7918_v17  ;;  %v8074_v54 = vpop.f32.mrf.mxu1 }
 0x36a   : > { %8823 = vst [vmem:[#allocation48_spill] sm:$0xff] %v8074_v54  ;;  %v5427_v45 = vpop.f32.mrf.mxu0 }
 0x36b   : > { %v8077_v1 = vadd.f32 %v5427_v45, %v7922_v56  ;;  %v8079_v4 = vpop.f32.mrf.mxu1 }
 0x36c   : > { %8825 = vst [vmem:[#allocation50_spill] sm:$0xff] %v8079_v4  ;;  %v2969_v5 = vpop.f32.mrf.mxu0 }
 0x36d   : > { %8824 = vst [vmem:[#allocation49_spill] sm:$0xff] %v8077_v1  ;;  %v8082_v57 = vadd.f32 %v2969_v5, %v7927_v36  ;;  %v8084_v11 = vpop.f32.mrf.mxu1 }
 0x36e   : > { %8827 = vst [vmem:[#allocation52_spill] sm:$0xff] %v8084_v11  ;;  %v5430_v51 = vpop.f32.mrf.mxu0 }
 0x36f   : > { %8826 = vst [vmem:[#allocation51_spill] sm:$0xff] %v8082_v57  ;;  %v8087_v60 = vadd.f32 %v5430_v51, %v7932_v2  ;;  %v8089_v17 = vpop.f32.mrf.mxu1 }
 0x370   : > { %v2982_v39 = vpop.f32.mrf.mxu0 }
 0x371   : > { %8828 = vst [vmem:[#allocation53_spill] sm:$0xff] %v8087_v60  ;;  %v8092_v54 = vadd.f32 %v2982_v39, %v7937_v20  ;;  %v8094_v56 = vpop.f32.mrf.mxu1 }
 0x372   : > { %8830 = vst [vmem:[#allocation55_spill] sm:$0xff] %v8094_v56  ;;  %v5431_v45 = vpop.f32.mrf.mxu0 }
 0x373   : > { %8829 = vst [vmem:[#allocation54_spill] sm:$0xff] %v8092_v54  ;;  %v8097_v4 = vadd.f32 %v5431_v45, %v7942_v29  ;;  %v8099_v36 = vpop.f32.mrf.mxu1 }
 0x374   : > { %8832 = vst [vmem:[#allocation57_spill] sm:$0xff] %v8099_v36  ;;  %v2985_v5 = vpop.f32.mrf.mxu0 }
 0x375   : > { %8831 = vst [vmem:[#allocation56_spill] sm:$0xff] %v8097_v4  ;;  %v8102_v11 = vadd.f32 %v2985_v5, %v7949_v47  ;;  %v8104_v2 = vpop.f32.mrf.mxu1 }
 0x376   : > { %8834 = vst [vmem:[#allocation59_spill] sm:$0xff] %v8104_v2  ;;  %v5498_v51 = vpop.f32.mrf.mxu0 }
 0x377   : > { %8833 = vst [vmem:[#allocation58_spill] sm:$0xff] %v8102_v11  ;;  %v8106_v60 = vpop.f32.mrf.mxu1 }
 0x378   : > { %8835 = vst [vmem:[#allocation60_spill] sm:$0xff] %v8106_v60  ;;  %v3398_v57 = vpop.f32.mrf.mxu0 }
 0x379   : > { %v8108_v20 = vpop.f32.mrf.mxu1 }
 0x37a   : > { %8836 = vst [vmem:[#allocation61_spill] sm:$0xff] %v8108_v20  ;;  %v8110_v39 = vpop.f32.mrf.mxu0 }
 0x37b   : > { %v8114_v29 = vpop.f32.mrf.mxu1 }
 0x37c   : > { %v8112_v54 = vpop.f32.mrf.mxu0  ;;  %8837 = vst [vmem:[#allocation62_spill] sm:$0xff] %v8114_v29 }
 0x37d   : > { %v8120_v47 = vpop.f32.mrf.mxu1 }
 0x37e   : > { %v8116_v45 = vpop.f32.mrf.mxu0  ;;  %8839 = vst [vmem:[#allocation64_spill] sm:$0xff] %v8120_v47 }
 0x37f   : > { %v8126_v60 = vpop.f32.mrf.mxu1 }
 0x380   : > { %v8118_v4 = vpop.f32.mrf.mxu0  ;;  %8842 = vst [vmem:[#allocation67_spill] sm:$0xff] %v8126_v60 }
 0x381   : > { %8838 = vst [vmem:[#allocation63_spill] sm:$0xff] %v8118_v4  ;;  %v8132_v36 = vpop.f32.mrf.mxu1 }
 0x382   : > { %v8122_v5 = vpop.f32.mrf.mxu0  ;;  %8845 = vst [vmem:[#allocation70_spill] sm:$0xff] %v8132_v36 }
 0x383   : > { %8840 = vst [vmem:[#allocation65_spill] sm:$0xff] %v8122_v5  ;;  %v8138_v56 = vpop.f32.mrf.mxu1 }
 0x384   : > { %v8124_v2 = vpop.f32.mrf.mxu0  ;;  %8848 = vst [vmem:[#allocation73_spill] sm:$0xff] %v8138_v56 }
 0x385   : > { %8841 = vst [vmem:[#allocation66_spill] sm:$0xff] %v8124_v2  ;;  %v8144_v5 = vpop.f32.mrf.mxu1 }
 0x386   : > { %v8128_v11 = vpop.f32.mrf.mxu0  ;;  %8851 = vst [vmem:[#allocation76_spill] sm:$0xff] %v8144_v5 }
 0x387   : > { %8843 = vst [vmem:[#allocation68_spill] sm:$0xff] %v8128_v11  ;;  %v8150_v11 = vpop.f32.mrf.mxu1 }
 0x388   : > { %v8130_v20 = vpop.f32.mrf.mxu0  ;;  %8854 = vst [vmem:[#allocation79_spill] sm:$0xff] %v8150_v11 }
 0x389   : > { %8844 = vst [vmem:[#allocation69_spill] sm:$0xff] %v8130_v20 }
 0x38a   : > { %v8134_v1 = vpop.f32.mrf.mxu0 }
 0x38b   : > { %8846 = vst [vmem:[#allocation71_spill] sm:$0xff] %v8134_v1  ;;  %v8156_v1 = vpop.f32.mrf.mxu1 }
 0x38c   : > { %v8136_v29 = vpop.f32.mrf.mxu0  ;;  %8857 = vst [vmem:[#allocation82_spill] sm:$0xff] %v8156_v1 }
 0x38d   : > { %8847 = vst [vmem:[#allocation72_spill] sm:$0xff] %v8136_v29 }
 0x38e   : > { %v8140_v4 = vpop.f32.mrf.mxu0 }
 0x38f   : > { %8849 = vst [vmem:[#allocation74_spill] sm:$0xff] %v8140_v4  ;;  %v8162_v4 = vpop.f32.mrf.mxu1 }
 0x390   : > { %v8142_v47 = vpop.f32.mrf.mxu0  ;;  %8860 = vst [vmem:[#allocation85_spill] sm:$0xff] %v8162_v4 }
 0x391   : > { %8850 = vst [vmem:[#allocation75_spill] sm:$0xff] %v8142_v47 }
 0x392   : > { %v8146_v2 = vpop.f32.mrf.mxu0 }
 0x393   : > { %8852 = vst [vmem:[#allocation77_spill] sm:$0xff] %v8146_v2  ;;  %v8168_v2 = vpop.f32.mrf.mxu1 }
 0x394   : > { %v8148_v60 = vpop.f32.mrf.mxu0 }
 0x395   : > { %8853 = vst [vmem:[#allocation78_spill] sm:$0xff] %v8148_v60 }
 0x396   : > { %v8152_v20 = vpop.f32.mrf.mxu0 }
 0x397   : > { %8855 = vst [vmem:[#allocation80_spill] sm:$0xff] %v8152_v20  ;;  %v8174_v20 = vpop.f32.mrf.mxu1 }
 0x398   : > { %v8154_v36 = vpop.f32.mrf.mxu0 }
 0x399   : > { %8856 = vst [vmem:[#allocation81_spill] sm:$0xff] %v8154_v36 }
 0x39a   : > { %v8158_v29 = vpop.f32.mrf.mxu0 }
 0x39b   : > { %8858 = vst [vmem:[#allocation83_spill] sm:$0xff] %v8158_v29  ;;  %v8180_v29 = vpop.f32.mrf.mxu1 }
 0x39c   : > { %v8160_v56 = vpop.f32.mrf.mxu0 }
 0x39d   : > { %8859 = vst [vmem:[#allocation84_spill] sm:$0xff] %v8160_v56 }
 0x39e   : > { %v8164_v47 = vpop.f32.mrf.mxu0 }
 0x39f   : > { %8861 = vst [vmem:[#allocation86_spill] sm:$0xff] %v8164_v47  ;;  %v8186_v47 = vpop.f32.mrf.mxu1 }
 0x3a0   : > { %v8166_v5 = vpop.f32.mrf.mxu0  ;;  %8869 = vst [vmem:[#allocation94_spill] sm:$0xff] %v8186_v47 }
 0x3a1   : > { %8862 = vst [vmem:[#allocation87_spill] sm:$0xff] %v8166_v5 }
 0x3a2   : > { %v8170_v60 = vpop.f32.mrf.mxu0 }
 0x3a3   : > { %8863 = vst [vmem:[#allocation88_spill] sm:$0xff] %v8170_v60  ;;  %v3269_v60 = vadd.f32 %v7925_v31, %v7945_v49  ;;  %v3274_v31 = vadd.f32 %v7959_v27, %v7977_v58  ;;  %v8210_v49 = vpop.f32.mrf.mxu1  ;;  %v8246_v58 = vadd.f32 %v8024_v24, %v8042_v19  ;;  %v8880_v19 = vld [vmem:[#allocation45_spill] sm:$0xff] }
 0x3a4   : > { %v8172_v11 = vpop.f32.mrf.mxu0 }
 0x3a5   : > { %8864 = vst [vmem:[#allocation89_spill] sm:$0xff] %v8172_v11  ;;  %v3267_v11 = vadd.f32 %v7930_v0, %v7952_v18  ;;  %v3272_v0 = vadd.f32 %v7964_v40, %v7982_v53  ;;  %v3276_v18 = vadd.f32 %v7984_v8, %v8002_v6  ;;  %v8226_v40 = vadd.f32 %v7999_v37, %v8017_v42  ;;  %v8251_v8 = vpop.f32.mrf.mxu1  ;;  %v8872_v37 = vld [vmem:[#allocation41_spill] sm:$0xff]  ;;  %v8278_v42 = vld [vmem:[%s8875_s4] ss:$0 sm:$0xff] }
 0x3a6   : > { %v8176_v36 = vpop.f32.mrf.mxu0  ;;  %v8265_v6 = vadd.f32 %v8872_v37, %v8057_v50  ;;  %v8879_v50 = vld [vmem:[#allocation49_spill] sm:$0xff] }
 0x3a7   : > { %8865 = vst [vmem:[#allocation90_spill] sm:$0xff] %v8176_v36  ;;  %v3270_v36 = vadd.f32 %v7935_v26, %v7957_v33  ;;  %v3277_v26 = vadd.f32 %v7969_v16, %v7987_v10  ;;  %v3525_v27 = vadd.f32 %v3398_v57, %v3267_v11  ;;  %v8234_v16 = vadd.f32 %v8009_v52, %v8027_v61  ;;  %v8874_v52 = vld [vmem:[#allocation43_spill] sm:$0xff]  ;;  %v8883_v57 = vld [vmem:[#allocation53_spill] sm:$0xff] }
 0x3a8   : > { %v8178_v1 = vpop.f32.mrf.mxu0  ;;  %v8255_v10 = vadd.f32 %v8029_v59, %v8047_v38  ;;  %v8877_v59 = vld [vmem:[#allocation55_spill] sm:$0xff] }
 0x3a9   : > { %8866 = vst [vmem:[#allocation91_spill] sm:$0xff] %v8178_v1  ;;  %v3268_v1 = vadd.f32 %v7940_v14, %v7962_v30  ;;  %v3275_v14 = vadd.f32 %v7974_v3, %v7992_v7  ;;  %v3279_v30 = vadd.f32 %v7994_v23, %v8012_v12  ;;  %v8242_v3 = vadd.f32 %v8019_v28, %v8037_v46  ;;  %v8881_v38 = vld [vmem:[#allocation51_spill] sm:$0xff] }
 0x3aa   : > { %v8182_v56 = vpop.f32.mrf.mxu0  ;;  %v3528_v53 = vadd.f32 %v8110_v39, %v3270_v36  ;;  %v8273_v12 = vadd.f32 %v8874_v52, %v8067_v32  ;;  %v8882_v32 = vld [vmem:[#allocation46_spill] sm:$0xff]  ;;  %v8887_v39 = vld [vmem:[#allocation57_spill] sm:$0xff]  ;;  %v8892_v52 = vld [vmem:[#allocation52_spill] sm:$0xff] }
 0x3ab   : > { %8867 = vst [vmem:[#allocation92_spill] sm:$0xff] %v8182_v56  ;;  %v3273_v56 = vadd.f32 %v7947_v62, %v7967_v9  ;;  %v3278_v62 = vadd.f32 %v7979_v35, %v7997_v41  ;;  %v8230_v9 = vadd.f32 %v8004_v25, %v8022_v21  ;;  %v3526_v41 = vadd.f32 %v8112_v54, %v3268_v1  ;;  %v8873_v25 = vld [vmem:[#allocation42_spill] sm:$0xff]  ;;  %v8876_v21 = vld [vmem:[#allocation44_spill] sm:$0xff] }
 0x3ac   : > { %v8184_v4 = vpop.f32.mrf.mxu0  ;;  %v8283_v24 = vadd.f32 %v8876_v21, %v8072_v44  ;;  %v8293_v1 = vadd.f32 %v8882_v32, %v8881_v38  ;;  %v8299_v44 = vpop.f32.mrf.mxu1  ;;  %v8896_v32 = vld [vmem:[#allocation68_spill] sm:$0xff] }
 0x3ad   : > { %8868 = vst [vmem:[#allocation93_spill] sm:$0xff] %v8184_v4  ;;  %v3271_v4 = vadd.f32 %v7954_v34, %v7972_v22  ;;  %v3281_v34 = vadd.f32 %v7989_v48, %v8007_v43  ;;  %v8238_v22 = vadd.f32 %v8014_v15, %v8032_v13  ;;  %v8871_v48 = vld [vmem:[#allocation40_spill] sm:$0xff]  ;;  %v8269_v43 = vadd.f32 %v8873_v25, %v8062_v55  ;;  %v8891_v25 = vld [vmem:[#allocation58_spill] sm:$0xff] }
 0x3ae   : > { %v8188_v5 = vpop.f32.mrf.mxu0  ;;  %v8259_v7 = vadd.f32 %v8871_v48, %v8052_v63  ;;  %v3531_v28 = vadd.f32 %v8116_v45, %v3273_v56  ;;  %v3809_v13 = vadd.f32 %v8877_v59, %v3525_v27  ;;  %v8878_v63 = vld [vmem:[#allocation63_spill] sm:$0xff]  ;;  %v8289_v55 = vadd.f32 %v8880_v19, %v8879_v50  ;;  %v8886_v56 = vld [vmem:[#allocation48_spill] sm:$0xff] }
 0x3af   : > { %8870 = vst [vmem:[#allocation95_spill] sm:$0xff] %v8188_v5  ;;  %v3527_v5 = vadd.f32 %v5498_v51, %v3269_v60  ;;  %v3529_v46 = vadd.f32 %v8878_v63, %v3271_v4  ;;  %v8884_v60 = vld [vmem:[#allocation47_spill] sm:$0xff]  ;;  %v3812_v45 = vadd.f32 %v8887_v39, %v3528_v53  ;;  %v8889_v48 = vld [vmem:[#allocation56_spill] sm:$0xff] }
 0x3b0   : > { %v8202_v47 = vpop.f32.mrf.mxu0  ;;  %v8297_v54 = vadd.f32 %v8884_v60, %v8883_v57  ;;  %v8893_v59 = vld [vmem:[#allocation59_spill] sm:$0xff]  ;;  %v8894_v53 = vld [vmem:[#allocation60_spill] sm:$0xff]  ;;  %v3535_v57 = vadd.f32 %v8896_v32, %v3277_v26  ;;  %v8897_v60 = vld [vmem:[#allocation69_spill] sm:$0xff] }
 0x3b1   : > { %v3811_v23 = vadd.f32 %v8089_v17, %v3527_v5  ;;  %v8885_v17 = vld [vmem:[#allocation54_spill] sm:$0xff]  ;;  %v8888_v5 = vld [vmem:[#allocation65_spill] sm:$0xff]  ;;  %v3810_v63 = vadd.f32 %v8893_v59, %v3526_v41  ;;  %v3815_v19 = vadd.f32 %v8894_v53, %v3531_v28  ;;  %v8903_v53 = vld [vmem:[#allocation75_spill] sm:$0xff] }
 0x3b2   : > { %v8220_v33 = vpop.f32.mrf.mxu0  ;;  %v8303_v36 = vadd.f32 %v8886_v56, %v8885_v17  ;;  %v3532_v27 = vadd.f32 %v8888_v5, %v3274_v31  ;;  %v8895_v31 = vld [vmem:[#allocation66_spill] sm:$0xff]  ;;  %v8898_v56 = vld [vmem:[#allocation61_spill] sm:$0xff]  ;;  %v8328_v5 = vpop.f32.mrf.mxu1 }
 0x3b3   : > { %v3530_v38 = vadd.f32 %v8895_v31, %v3272_v0  ;;  %v3813_v39 = vadd.f32 %v8898_v56, %v3529_v46 }
 0x3b4   : > { %v8248_v35 = vpop.f32.mrf.mxu0 }
 0x3b6   : > { %v5594_v15 = vpop.f32.mrf.mxu0 }
 0x3b7   : > { %v4081_v61 = vadd.f32 %v5594_v15, %v3811_v23  ;;  %v8890_v23 = vld [vmem:[#allocation50_spill] sm:$0xff]  ;;  %v8316_v15 = vadd.f32 %v8892_v52, %v8891_v25 }
 0x3b8   : > { %v3952_v11 = vpop.f32.mrf.mxu0  ;;  %v8312_v37 = vadd.f32 %v8890_v23, %v8889_v48  ;;  %v8899_v48 = vld [vmem:[#allocation71_spill] sm:$0xff]  ;;  %v8900_v23 = vld [vmem:[#allocation72_spill] sm:$0xff]  ;;  %v8901_v25 = vld [vmem:[#allocation74_spill] sm:$0xff] }
 0x3b9   : > { %v8306_v4 = vadd.f32 %v8278_v42, %v4081_v61  ;;  %v4079_v51 = vadd.f32 %v3952_v11, %v3809_v13  ;;  %v3533_v11 = vadd.f32 %v8897_v60, %v3275_v14  ;;  %v3536_v28 = vadd.f32 %v8899_v48, %v3278_v62  ;;  %v8902_v14 = vld [vmem:[#allocation62_spill] sm:$0xff]  ;;  %v8905_v62 = vld [vmem:[#allocation67_spill] sm:$0xff]  ;;  %v8908_v48 = vld [vmem:[#allocation73_spill] sm:$0xff] }
 0x3ba   : > { %v5595_v21 = vpop.f32.mrf.mxu0  ;;  %v3534_v0 = vadd.f32 %v8900_v23, %v3276_v18  ;;  %v3539_v26 = vadd.f32 %v8901_v25, %v3281_v34  ;;  %v3819_v60 = vadd.f32 %v8905_v62, %v3535_v57  ;;  %v8906_v18 = vld [vmem:[#allocation70_spill] sm:$0xff]  ;;  %v8346_v34 = vpop.f32.mrf.mxu1  ;;  %v8910_v57 = vld [vmem:[#allocation79_spill] sm:$0xff] }
 0x3bb   : > { %v4796_v50 = vmul.f32 -1.442695, %v8306_v4  ;;  %v8321_v61 = vadd.f32 %v8278_v42, %v4079_v51  ;;  %v4082_v13 = vadd.f32 %v5595_v21, %v3812_v45  ;;  %v3816_v21 = vadd.f32 %v8902_v14, %v3532_v27 }
 0x3bc   : > { %v3955_v17 = vpop.f32.mrf.mxu0  ;;  %v3820_v23 = vadd.f32 %v8908_v48, %v3536_v28  ;;  %v8913_v28 = vld [vmem:[#allocation81_spill] sm:$0xff]  ;;  %v5570_v62 = vpop.f32.mrf.mxu1 }
 0x3bd   : > { %6064 = vpow2.f32 %v4796_v50  ;;  %v4794_v41 = vmul.f32 -1.442695, %v8321_v61  ;;  %v8332_v51 = vadd.f32 %v8278_v42, %v4082_v13  ;;  %v4080_v45 = vadd.f32 %v3955_v17, %v3810_v63  ;;  %v8904_v63 = vld [vmem:[#allocation64_spill] sm:$0xff] }
 0x3be   : > { %v5598_v52 = vpop.f32.mrf.mxu0  ;;  %v3537_v13 = vadd.f32 %v8903_v53, %v3279_v30  ;;  %v3814_v32 = vadd.f32 %v8904_v63, %v3530_v38  ;;  %v3817_v17 = vadd.f32 %v8906_v18, %v3533_v11  ;;  %v8909_v38 = vld [vmem:[#allocation76_spill] sm:$0xff]  ;;  %v8914_v63 = vld [vmem:[#allocation82_spill] sm:$0xff] }
 0x3bf   : > { %6066 = vpow2.f32 %v4794_v41  ;;  %v4797_v46 = vmul.f32 -1.442695, %v8332_v51  ;;  %v8340_v59 = vadd.f32 %v8278_v42, %v4080_v45  ;;  %v4085_v50 = vadd.f32 %v5598_v52, %v3815_v19  ;;  %v8907_v19 = vld [vmem:[#allocation77_spill] sm:$0xff] }
 0x3c0   : > { %v3968_v31 = vpop.f32.mrf.mxu0  ;;  %v3540_v45 = vadd.f32 %v8907_v19, %v8226_v40  ;;  %v3818_v25 = vadd.f32 %v8909_v38, %v3534_v0  ;;  %v8357_v52 = vadd.f32 %v8910_v57, %v3539_v26  ;;  %v8912_v40 = vld [vmem:[#allocation80_spill] sm:$0xff]  ;;  %v8370_v26 = vadd.f32 %v8914_v63, %v3537_v13  ;;  %v8918_v13 = vld [vmem:[#allocation85_spill] sm:$0xff] }
 0x3c1   : > { %6068 = vpow2.f32 %v4797_v46  ;;  %v4795_v27 = vmul.f32 -1.442695, %v8340_v59  ;;  %v8350_v56 = vadd.f32 %v8278_v42, %v4085_v50  ;;  %v4083_v41 = vadd.f32 %v3968_v31, %v3813_v39  ;;  %v8911_v39 = vld [vmem:[#allocation78_spill] sm:$0xff] }
 0x3c2   : > { %v5599_v30 = vpop.f32.mrf.mxu0  ;;  %v3538_v50 = vadd.f32 %v8911_v39, %v8230_v9  ;;  %v3543_v53 = vadd.f32 %v8912_v40, %v8234_v16  ;;  %v3541_v31 = vadd.f32 %v8913_v28, %v8238_v22  ;;  %v8915_v9 = vld [vmem:[#allocation83_spill] sm:$0xff]  ;;  %v8916_v16 = vld [vmem:[#allocation84_spill] sm:$0xff]  ;;  %v8917_v22 = vld [vmem:[#allocation86_spill] sm:$0xff]  ;;  %v8383_v38 = vadd.f32 %v8918_v13, %v3540_v45  ;;  %v3778_v40 = vpop.f32.mrf.mxu1 }
 0x3c3   : > { %6070 = vpow2.f32 %v4795_v27  ;;  %v4800_v11 = vmul.f32 -1.442695, %v8350_v56  ;;  %v8361_v14 = vadd.f32 %v8278_v42, %v4083_v41  ;;  %v4086_v46 = vadd.f32 %v5599_v30, %v3816_v21 }
 0x3c4   : > { %v3971_v0 = vpop.f32.mrf.mxu0  ;;  %v3544_v41 = vadd.f32 %v8915_v9, %v8242_v3  ;;  %v3542_v19 = vadd.f32 %v8916_v16, %v8246_v58  ;;  %v3547_v30 = vadd.f32 %v8917_v22, %v8255_v10  ;;  %v8392_v58 = vadd.f32 %v8168_v2, %v3538_v50  ;;  %v8921_v50 = vld [vmem:[#allocation94_spill] sm:$0xff] }
 0x3c5   : > { %6072 = vpow2.f32 %v4800_v11  ;;  %v4798_v18 = vmul.f32 -1.442695, %v8361_v14  ;;  %v8374_v27 = vadd.f32 %v8278_v42, %v4086_v46  ;;  %v4084_v21 = vadd.f32 %v3971_v0, %v3814_v32  ;;  %v8919_v46 = vld [vmem:[#allocation87_spill] sm:$0xff] }
 0x3c6   : > { %v5602_v48 = vpop.f32.mrf.mxu0  ;;  %v3545_v3 = vadd.f32 %v8919_v46, %v8259_v7  ;;  %v8395_v10 = vadd.f32 %v8174_v20, %v3543_v53  ;;  %v8398_v45 = vadd.f32 %v8180_v29, %v3541_v31  ;;  %v8920_v7 = vld [vmem:[#allocation88_spill] sm:$0xff]  ;;  %v8410_v20 = vadd.f32 %v8210_v49, %v3542_v19  ;;  %v8924_v46 = vld [vmem:[#allocation91_spill] sm:$0xff] }
 0x3c7   : > { %6074 = vpow2.f32 %v4798_v18  ;;  %v4801_v57 = vmul.f32 -1.442695, %v8374_v27  ;;  %v8387_v11 = vadd.f32 %v8278_v42, %v4084_v21  ;;  %v4089_v32 = vadd.f32 %v5602_v48, %v3819_v60 }
 0x3c8   : > { %v3984_v39 = vpop.f32.mrf.mxu0  ;;  %v3548_v18 = vadd.f32 %v8920_v7, %v8265_v6  ;;  %v8407_v21 = vadd.f32 %v8921_v50, %v3544_v41  ;;  %v8413_v29 = vadd.f32 %v8251_v8, %v3547_v30  ;;  %v8922_v6 = vld [vmem:[#allocation89_spill] sm:$0xff]  ;;  %v8923_v41 = vld [vmem:[#allocation90_spill] sm:$0xff]  ;;  %v8424_v19 = vadd.f32 %v8299_v44, %v3545_v3  ;;  %v5571_v8 = vpop.f32.mrf.mxu1 }
 0x3c9   : > { %6076 = vpow2.f32 %v4801_v57  ;;  %v4799_v28 = vmul.f32 -1.442695, %v8387_v11  ;;  %v8402_v0 = vadd.f32 %v8278_v42, %v4089_v32  ;;  %v4087_v60 = vadd.f32 %v3984_v39, %v3817_v17 }
 0x3ca   : > { %v6065_v63 = vpop.eup %6064  ;;  %v5603_v2 = vpop.f32.mrf.mxu0  ;;  %v3546_v16 = vadd.f32 %v8922_v6, %v8269_v43  ;;  %v3551_v22 = vadd.f32 %v8923_v41, %v8273_v12  ;;  %v3549_v39 = vadd.f32 %v8924_v46, %v8283_v24 }
 0x3cb   : > { %v4248_v53 = vadd.f32 1.0, %v6065_v63  ;;  %6078 = vpow2.f32 %v4799_v28  ;;  %v4804_v31 = vmul.f32 -1.442695, %v8402_v0  ;;  %v8417_v17 = vadd.f32 %v8278_v42, %v4087_v60 }
 0x3cc   : > { %v6067_v9 = vpop.eup %6066  ;;  %v4090_v48 = vadd.f32 %v5603_v2, %v3820_v23  ;;  %v3987_v49 = vpop.f32.mrf.mxu0  ;;  %v8433_v23 = vadd.f32 %v8328_v5, %v3548_v18  ;;  %v8441_v63 = vadd.f32 %v8346_v34, %v3546_v16  ;;  %v8443_v7 = vadd.f32 %v5570_v62, %v3551_v22 }
 0x3cd   : > { %6080 = vrcp.f32 %v4248_v53  ;;  %v4246_v30 = vadd.f32 1.0, %v6067_v9  ;;  %v4802_v13 = vmul.f32 -1.442695, %v8417_v17  ;;  %v4088_v57 = vadd.f32 %v3987_v49, %v3818_v25  ;;  %v3781_v2 = vpop.f32.mrf.mxu1 }
 0x3ce   : > { %v6069_v32 = vpop.eup %6068  ;;  %6082 = vpow2.f32 %v4804_v31  ;;  %v8430_v43 = vadd.f32 %v8278_v42, %v4090_v48  ;;  %v5606_v12 = vpop.f32.mrf.mxu0  ;;  %v8452_v34 = vadd.f32 %v3778_v40, %v3549_v39  ;;  %v8926_v48 = vld [vmem:[#allocation93_spill] sm:$0xff] }
 0x3cf   : > { %6084 = vrcp.f32 %v4246_v30  ;;  %v4249_v44 = vadd.f32 1.0, %v6069_v32  ;;  %v8436_v3 = vadd.f32 %v8278_v42, %v4088_v57  ;;  %v4093_v28 = vadd.f32 %v5606_v12, %v8357_v52  ;;  %v8925_v52 = vld [vmem:[#allocation92_spill] sm:$0xff]  ;;  %v8927_v30 = vld [vmem:[#allocation95_spill] sm:$0xff]  ;;  %v5574_v40 = vpop.f32.mrf.mxu1 }
 0x3d0   : > { %v6071_v25 = vpop.eup %6070  ;;  %6086 = vpow2.f32 %v4802_v13  ;;  %v4805_v60 = vmul.f32 -1.442695, %v8430_v43  ;;  %v4000_v24 = vpop.f32.mrf.mxu0  ;;  %v3552_v31 = vadd.f32 %v8925_v52, %v8289_v55  ;;  %v3550_v49 = vadd.f32 %v8926_v48, %v8293_v1 }
 0x3d1   : > { %6088 = vrcp.f32 %v4249_v44  ;;  %v4247_v5 = vadd.f32 1.0, %v6071_v25  ;;  %v4803_v18 = vmul.f32 -1.442695, %v8436_v3  ;;  %v8447_v50 = vadd.f32 %v8278_v42, %v4093_v28 }
 0x3d2   : > { %v6073_v53 = vpop.eup %6072  ;;  %6090 = vpow2.f32 %v4805_v60  ;;  %v4091_v9 = vadd.f32 %v4000_v24, %v8370_v26  ;;  %v5607_v6 = vpop.f32.mrf.mxu0  ;;  %v3555_v13 = vadd.f32 %v8927_v30, %v8297_v54  ;;  %v3553_v1 = vadd.f32 %v8202_v47, %v8303_v36  ;;  %v6193_v30 = vld [vmem:[%s6736_s22 + $0x10] sm:$0xff] }
 0x3d3   : > { %6092 = vrcp.f32 %v4247_v5  ;;  %v4252_v62 = vadd.f32 1.0, %v6073_v53  ;;  %v4808_v16 = vmul.f32 -1.442695, %v8447_v50  ;;  %v4094_v41 = vadd.f32 %v5607_v6, %v8383_v38  ;;  %v3794_v36 = vpop.f32.mrf.mxu1 }
 0x3d4   : > { %v6075_v22 = vpop.eup %6074  ;;  %6094 = vpow2.f32 %v4803_v18  ;;  %v8461_v55 = vadd.f32 %v8278_v42, %v4091_v9  ;;  %v4003_v26 = vpop.f32.mrf.mxu0  ;;  %v8470_v12 = vadd.f32 %v5571_v8, %v3552_v31  ;;  %v8477_v5 = vadd.f32 %v3781_v2, %v3550_v49 }
 0x3d5   : > { %6096 = vrcp.f32 %v4252_v62  ;;  %v4250_v57 = vadd.f32 1.0, %v6075_v22  ;;  %v8464_v32 = vadd.f32 %v8278_v42, %v4094_v41  ;;  %v4092_v38 = vadd.f32 %v4003_v26, %v8392_v58 }
 0x3d6   : > { %v6077_v46 = vpop.eup %6076  ;;  %6098 = vpow2.f32 %v4808_v16  ;;  %v4806_v54 = vmul.f32 -1.442695, %v8461_v55  ;;  %v5610_v39 = vpop.f32.mrf.mxu0  ;;  %v8479_v47 = vadd.f32 %v5574_v40, %v3555_v13  ;;  %v3556_v31 = vadd.f32 %v8220_v33, %v8312_v37 }
 0x3d7   : > { %6100 = vrcp.f32 %v4250_v57  ;;  %v4253_v44 = vadd.f32 1.0, %v6077_v46  ;;  %v4809_v28 = vmul.f32 -1.442695, %v8464_v32  ;;  %v8474_v25 = vadd.f32 %v8278_v42, %v4092_v38 }
 0x3d8   : > { %v6079_v60 = vpop.eup %6078  ;;  %6102 = vpow2.f32 %v4806_v54  ;;  %v4097_v58 = vadd.f32 %v5610_v39, %v8395_v10  ;;  %v4016_v24 = vpop.f32.mrf.mxu0  ;;  %v8488_v2 = vadd.f32 %v3794_v36, %v3553_v1  ;;  %v8497_v33 = vadd.f32 %v8248_v35, %v8316_v15 }
 0x3d9   : > { %6104 = vrcp.f32 %v4253_v44  ;;  %v4251_v8 = vadd.f32 1.0, %v6079_v60  ;;  %v4807_v18 = vmul.f32 -1.442695, %v8474_v25  ;;  %v4095_v53 = vadd.f32 %v4016_v24, %v8398_v45 }
 0x3da   : > { %v6081_v52 = vpop.eup %6080  ;;  %6106 = vpow2.f32 %v4809_v28  ;;  %v8486_v9 = vadd.f32 %v8278_v42, %v4097_v58  ;;  %v5611_v10 = vpop.f32.mrf.mxu0 }
 0x3db   : > { %v6083_v6 = vpop.eup %6082  ;;  %v4344_v62 = vmul.f32 %v6081_v52, %v8306_v4  ;;  %6108 = vrcp.f32 %v4251_v8  ;;  %v8492_v16 = vadd.f32 %v8278_v42, %v4095_v53  ;;  %v4098_v45 = vadd.f32 %v5611_v10, %v8407_v21  ;;  %v5575_v4 = vpop.f32.mrf.mxu1  ;;  %v6195_v8 = vld [vmem:[%s6736_s22 + $0x18] sm:$0xff] }
 0x3dc   : > { %v6085_v41 = vpop.eup %6084  ;;  %v4256_v37 = vadd.f32 1.0, %v6083_v6  ;;  %6110 = vpow2.f32 %v4807_v18  ;;  %v4812_v22 = vmul.f32 -1.442695, %v8486_v9  ;;  %v4019_v48 = vpop.f32.mrf.mxu0  ;;  %v8507_v46 = vadd.f32 %v5575_v4, %v3556_v31 }
 0x3dd   : > { %v6087_v49 = vpop.eup %6086  ;;  %v4376_v13 = vadd.f32 %v6193_v30, %v4344_v62  ;;  %v4342_v26 = vmul.f32 %v6085_v41, %v8321_v61  ;;  %v4810_v21 = vmul.f32 -1.442695, %v8492_v16  ;;  %v8504_v40 = vadd.f32 %v8278_v42, %v4098_v45  ;;  %v6194_v61 = vld [vmem:[%s6736_s22] sm:$0xff]  ;;  %v6196_v45 = vld [vmem:[%s6736_s22 + $0x8] sm:$0xff] }
 0x3de   : > { %v6089_v35 = vpop.eup %6088  ;;  %6112 = vrcp.f32 %v4256_v37  ;;  %v4254_v15 = vadd.f32 1.0, %v6087_v49  ;;  %v4096_v57 = vadd.f32 %v4019_v48, %v8410_v20  ;;  %v5614_v38 = vpop.f32.mrf.mxu0 }
 0x3df   : > { %v6091_v1 = vpop.eup %6090  ;;  %4408 = vst [vmem:[%s8511_s18 + $0x10] sm:$0xff] %v4376_v13  ;;  %v4374_v54 = vadd.f32 %v6194_v61, %v4342_v26  ;;  %v4345_v39 = vmul.f32 %v6089_v35, %v8332_v51  ;;  %6114 = vpow2.f32 %v4812_v22  ;;  %v4813_v44 = vmul.f32 -1.442695, %v8504_v40  ;;  %v6197_v13 = vld [vmem:[%s6736_s22 + $0x30] sm:$0xff]  ;;  %v6198_v61 = vld [vmem:[%s6736_s22 + $0x20] sm:$0xff] }
 0x3e0   : > { %v6093_v28 = vpop.eup %6092  ;;  %6116 = vrcp.f32 %v4254_v15  ;;  %v4257_v20 = vadd.f32 1.0, %v6091_v1  ;;  %v8518_v60 = vadd.f32 %v8278_v42, %v4096_v57  ;;  %v4101_v58 = vadd.f32 %v5614_v38, %v8413_v29  ;;  %v4032_v24 = vpop.f32.mrf.mxu0 }
 0x3e1   : > { %v6095_v36 = vpop.eup %6094  ;;  %4406 = vst [vmem:[%s8511_s18] sm:$0xff] %v4374_v54  ;;  %v4377_v18 = vadd.f32 %v6195_v8, %v4345_v39  ;;  %v4343_v51 = vmul.f32 %v6093_v28, %v8340_v59  ;;  %6118 = vpow2.f32 %v4810_v21  ;;  %v4099_v53 = vadd.f32 %v4032_v24, %v8424_v19 }
 0x3e2   : > { %v6097_v52 = vpop.eup %6096  ;;  %6120 = vrcp.f32 %v4257_v20  ;;  %v4255_v31 = vadd.f32 1.0, %v6095_v36  ;;  %v4811_v10 = vmul.f32 -1.442695, %v8518_v60  ;;  %v8527_v6 = vadd.f32 %v8278_v42, %v4101_v58  ;;  %v5615_v29 = vpop.f32.mrf.mxu0  ;;  %v6199_v36 = vld [vmem:[%s6736_s22 + $0x38] sm:$0xff] }
 0x3e3   : > { %v6099_v62 = vpop.eup %6098  ;;  %4409 = vst [vmem:[%s8511_s18 + $0x18] sm:$0xff] %v4377_v18  ;;  %v4375_v41 = vadd.f32 %v6196_v45, %v4343_v51  ;;  %v4348_v59 = vmul.f32 %v6097_v52, %v8350_v56  ;;  %6122 = vpow2.f32 %v4813_v44  ;;  %v8533_v19 = vadd.f32 %v8278_v42, %v4099_v53 }
 0x3e4   : > { %v6101_v37 = vpop.eup %6100  ;;  %6124 = vrcp.f32 %v4255_v31  ;;  %v4260_v22 = vadd.f32 1.0, %v6099_v62  ;;  %v4816_v48 = vmul.f32 -1.442695, %v8527_v6  ;;  %v4102_v49 = vadd.f32 %v5615_v29, %v8433_v23  ;;  %v4035_v4 = vpop.f32.mrf.mxu0  ;;  %v6200_v29 = vld [vmem:[%s6736_s22 + $0x28] sm:$0xff] }
 0x3e5   : > { %v6103_v30 = vpop.eup %6102  ;;  %4407 = vst [vmem:[%s8511_s18 + $0x8] sm:$0xff] %v4375_v41  ;;  %v4380_v26 = vadd.f32 %v6197_v13, %v4348_v59  ;;  %v4346_v56 = vmul.f32 %v6101_v37, %v8361_v14  ;;  %6126 = vpow2.f32 %v4811_v10  ;;  %v4814_v21 = vmul.f32 -1.442695, %v8533_v19  ;;  %v3797_v10 = vpop.f32.mrf.mxu1 }
 0x3e6   : > { %v6105_v35 = vpop.eup %6104  ;;  %6128 = vrcp.f32 %v4260_v22  ;;  %v4258_v15 = vadd.f32 1.0, %v6103_v30  ;;  %v8542_v57 = vadd.f32 %v8278_v42, %v4102_v49  ;;  %v4100_v23 = vadd.f32 %v4035_v4, %v8441_v63  ;;  %v5618_v38 = vpop.f32.mrf.mxu0  ;;  %v6201_v30 = vld [vmem:[%s6736_s22 + $0x50] sm:$0xff] }
 0x3e7   : > { %v6107_v1 = vpop.eup %6106  ;;  %4412 = vst [vmem:[%s8511_s18 + $0x30] sm:$0xff] %v4380_v26  ;;  %v4378_v54 = vadd.f32 %v6198_v61, %v4346_v56  ;;  %v4349_v14 = vmul.f32 %v6105_v35, %v8374_v27  ;;  %6130 = vpow2.f32 %v4816_v48  ;;  %v4105_v39 = vadd.f32 %v5618_v38, %v8443_v7  ;;  %v6202_v38 = vld [vmem:[%s6736_s22 + $0x40] sm:$0xff] }
 0x3e8   : > { %v6109_v44 = vpop.eup %6108  ;;  %6132 = vrcp.f32 %v4258_v15  ;;  %v4261_v28 = vadd.f32 1.0, %v6107_v1  ;;  %v4817_v20 = vmul.f32 -1.442695, %v8542_v57  ;;  %v8551_v58 = vadd.f32 %v8278_v42, %v4100_v23  ;;  %v4048_v63 = vpop.f32.mrf.mxu0 }
 0x3e9   : > { %v6111_v24 = vpop.eup %6110  ;;  %4410 = vst [vmem:[%s8511_s18 + $0x20] sm:$0xff] %v4378_v54  ;;  %v4381_v8 = vadd.f32 %v6199_v36, %v4349_v14  ;;  %v4347_v27 = vmul.f32 %v6109_v44, %v8387_v11  ;;  %6134 = vpow2.f32 %v4814_v21  ;;  %v8557_v7 = vadd.f32 %v8278_v42, %v4105_v39 }
 0x3ea   : > { %6136 = vrcp.f32 %v4261_v28  ;;  %v4259_v18 = vadd.f32 1.0, %v6111_v24  ;;  %v4815_v51 = vmul.f32 -1.442695, %v8551_v58  ;;  %v4103_v53 = vadd.f32 %v4048_v63, %v8452_v34  ;;  %v5619_v52 = vpop.f32.mrf.mxu0  ;;  %v6203_v63 = vld [vmem:[%s6736_s22 + $0x58] sm:$0xff] }
 0x3eb   : > { %v6113_v31 = vpop.eup %6112  ;;  %4413 = vst [vmem:[%s8511_s18 + $0x38] sm:$0xff] %v4381_v8  ;;  %v4379_v62 = vadd.f32 %v6200_v29, %v4347_v27  ;;  %6138 = vpow2.f32 %v4817_v20  ;;  %v4820_v11 = vmul.f32 -1.442695, %v8557_v7  ;;  %v4106_v45 = vadd.f32 %v5619_v52, %v8470_v12 }
 0x3ec   : > { %v6115_v41 = vpop.eup %6114  ;;  %v4352_v59 = vmul.f32 %v6113_v31, %v8402_v0  ;;  %6140 = vrcp.f32 %v4259_v18  ;;  %v8567_v37 = vadd.f32 %v8278_v42, %v4103_v53  ;;  %v4051_v34 = vpop.f32.mrf.mxu0  ;;  %v8570_v22 = vadd.f32 %v3797_v10, %v8497_v33  ;;  %v6204_v53 = vld [vmem:[%s6736_s22 + $0x48] sm:$0xff] }
 0x3ed   : > { %v6117_v48 = vpop.eup %6116  ;;  %4411 = vst [vmem:[%s8511_s18 + $0x28] sm:$0xff] %v4379_v62  ;;  %v4264_v49 = vadd.f32 1.0, %v6115_v41  ;;  %6142 = vpow2.f32 %v4815_v51  ;;  %v8574_v4 = vadd.f32 %v8278_v42, %v4106_v45  ;;  %v4104_v12 = vadd.f32 %v4051_v34, %v8477_v5  ;;  %v6205_v41 = vld [vmem:[%s6736_s22 + $0x70] sm:$0xff] }
 0x3ee   : > { %v6119_v0 = vpop.eup %6118  ;;  %v4384_v13 = vadd.f32 %v6201_v30, %v4352_v59  ;;  %v4350_v26 = vmul.f32 %v6117_v48, %v8417_v17  ;;  %6144 = vpow2.f32 %v4820_v11  ;;  %v4818_v33 = vmul.f32 -1.442695, %v8567_v37  ;;  %v5622_v56 = vpop.f32.mrf.mxu0  ;;  %v6206_v30 = vld [vmem:[%s6736_s22 + $0x60] sm:$0xff] }
 0x3ef   : > { %v6121_v21 = vpop.eup %6120  ;;  %6146 = vrcp.f32 %v4264_v49  ;;  %v4262_v35 = vadd.f32 1.0, %v6119_v0  ;;  %v4821_v15 = vmul.f32 -1.442695, %v8574_v4  ;;  %v8582_v23 = vadd.f32 %v8278_v42, %v4104_v12 }
 0x3f0   : > { %v6123_v5 = vpop.eup %6122  ;;  %4416 = vst [vmem:[%s8511_s18 + $0x50] sm:$0xff] %v4384_v13  ;;  %v4382_v1 = vadd.f32 %v6202_v38, %v4350_v26  ;;  %v4353_v17 = vmul.f32 %v6121_v21, %v8430_v43  ;;  %6148 = vpow2.f32 %v4818_v33  ;;  %v4109_v61 = vadd.f32 %v5622_v56, %v8479_v47  ;;  %v4064_v54 = vpop.f32.mrf.mxu0  ;;  %v6207_v21 = vld [vmem:[%s6736_s22 + $0x78] sm:$0xff] }
 0x3f1   : > { %v6125_v14 = vpop.eup %6124  ;;  %6150 = vrcp.f32 %v4262_v35  ;;  %v4265_v39 = vadd.f32 1.0, %v6123_v5  ;;  %v4819_v44 = vmul.f32 -1.442695, %v8582_v23  ;;  %v4107_v28 = vadd.f32 %v4064_v54, %v8488_v2 }
 0x3f2   : > { %v6127_v20 = vpop.eup %6126  ;;  %4414 = vst [vmem:[%s8511_s18 + $0x40] sm:$0xff] %v4382_v1  ;;  %v4385_v24 = vadd.f32 %v6203_v63, %v4353_v17  ;;  %v4351_v36 = vmul.f32 %v6125_v14, %v8436_v3  ;;  %6152 = vpow2.f32 %v4821_v15  ;;  %v8594_v43 = vadd.f32 %v8278_v42, %v4109_v61  ;;  %v5623_v47 = vpop.f32.mrf.mxu0  ;;  %v6208_v1 = vld [vmem:[%s6736_s22 + $0x68] sm:$0xff] }
 0x3f3   : > { %v6129_v8 = vpop.eup %6128  ;;  %6154 = vrcp.f32 %v4265_v39  ;;  %v4263_v27 = vadd.f32 1.0, %v6127_v20  ;;  %v8597_v18 = vadd.f32 %v8278_v42, %v4107_v28  ;;  %v4110_v2 = vadd.f32 %v5623_v47, %v8507_v46  ;;  %v6209_v28 = vld [vmem:[%s6736_s22 + $0x90] sm:$0xff] }
 0x3f4   : > { %v6131_v51 = vpop.eup %6130  ;;  %4417 = vst [vmem:[%s8511_s18 + $0x58] sm:$0xff] %v4385_v24  ;;  %v4383_v52 = vadd.f32 %v6204_v53, %v4351_v36  ;;  %v4356_v3 = vmul.f32 %v6129_v8, %v8447_v50  ;;  %6156 = vpow2.f32 %v4819_v44  ;;  %v4824_v31 = vmul.f32 -1.442695, %v8594_v43  ;;  %v4067_v10 = vpop.f32.mrf.mxu0  ;;  %v6210_v8 = vld [vmem:[%s6736_s22 + $0x80] sm:$0xff] }
 0x3f5   : > { %v6133_v29 = vpop.eup %6132  ;;  %6158 = vrcp.f32 %v4263_v27  ;;  %v4268_v62 = vadd.f32 1.0, %v6131_v51  ;;  %v4822_v11 = vmul.f32 -1.442695, %v8597_v18  ;;  %v8606_v46 = vadd.f32 %v8278_v42, %v4110_v2 }
 0x3f6   : > { %v6135_v45 = vpop.eup %6134  ;;  %4415 = vst [vmem:[%s8511_s18 + $0x48] sm:$0xff] %v4383_v52  ;;  %v4388_v59 = vadd.f32 %v6205_v41, %v4356_v3  ;;  %v4354_v50 = vmul.f32 %v6133_v29, %v8461_v55  ;;  %6160 = vpow2.f32 %v4824_v31  ;;  %v4108_v34 = vadd.f32 %v4067_v10, %v8570_v22  ;;  %v6211_v52 = vld [vmem:[%s6736_s22 + $0x98] sm:$0xff] }
 0x3f7   : > { %v6137_v48 = vpop.eup %6136  ;;  %6162 = vrcp.f32 %v4268_v62  ;;  %v4266_v49 = vadd.f32 1.0, %v6135_v45  ;;  %v4825_v12 = vmul.f32 -1.442695, %v8606_v46  ;;  %v6212_v62 = vld [vmem:[%s6736_s22 + $0x88] sm:$0xff] }
 0x3f8   : > { %v6139_v0 = vpop.eup %6138  ;;  %4420 = vst [vmem:[%s8511_s18 + $0x70] sm:$0xff] %v4388_v59  ;;  %v4386_v13 = vadd.f32 %v6206_v30, %v4354_v50  ;;  %v4357_v26 = vmul.f32 %v6137_v48, %v8464_v32  ;;  %6164 = vpow2.f32 %v4822_v11  ;;  %v8617_v55 = vadd.f32 %v8278_v42, %v4108_v34  ;;  %v6213_v50 = vld [vmem:[%s6736_s22 + $0xb0] sm:$0xff] }
 0x3f9   : > { %v6141_v22 = vpop.eup %6140  ;;  %6166 = vrcp.f32 %v4266_v49  ;;  %v4269_v33 = vadd.f32 1.0, %v6139_v0  ;;  %v6214_v0 = vld [vmem:[%s6736_s22 + $0xa0] sm:$0xff] }
 0x3fa   : > { %v6143_v56 = vpop.eup %6142  ;;  %4418 = vst [vmem:[%s8511_s18 + $0x60] sm:$0xff] %v4386_v13  ;;  %v4389_v35 = vadd.f32 %v6207_v21, %v4357_v26  ;;  %v4355_v15 = vmul.f32 %v6141_v22, %v8474_v25  ;;  %6168 = vpow2.f32 %v4825_v12  ;;  %v4823_v5 = vmul.f32 -1.442695, %v8617_v55 }
 0x3fb   : > { %v6145_v32 = vpop.eup %6144  ;;  %6170 = vrcp.f32 %v4269_v33  ;;  %v4267_v38 = vadd.f32 1.0, %v6143_v56 }
 0x3fc   : > { %v6147_v42 = vpop.eup %6146  ;;  %4421 = vst [vmem:[%s8511_s18 + $0x78] sm:$0xff] %v4389_v35  ;;  %v4387_v17 = vadd.f32 %v6208_v1, %v4355_v15  ;;  %v4272_v61 = vadd.f32 1.0, %v6145_v32  ;;  %6172 = vpow2.f32 %v4823_v5  ;;  %v6217_v5 = vld [vmem:[%s6736_s22 + $0xd0] sm:$0xff] }
 0x3fd   : > { %v6149_v54 = vpop.eup %6148  ;;  %v4360_v14 = vmul.f32 %v6147_v42, %v8486_v9  ;;  %6174 = vrcp.f32 %v4267_v38 }
 0x3fe   : > { %v6151_v25 = vpop.eup %6150  ;;  %4419 = vst [vmem:[%s8511_s18 + $0x68] sm:$0xff] %v4387_v17  ;;  %6176 = vrcp.f32 %v4272_v61  ;;  %v4270_v39 = vadd.f32 1.0, %v6149_v54  ;;  %v6219_v61 = vld [vmem:[%s6736_s22 + $0xd8] sm:$0xff] }
 0x3ff   : > { %v6153_v44 = vpop.eup %6152  ;;  %v4392_v20 = vadd.f32 %v6209_v28, %v4360_v14  ;;  %v4358_v63 = vmul.f32 %v6151_v25, %v8492_v16 }
 0x400   : > { %v6155_v24 = vpop.eup %6154  ;;  %6178 = vrcp.f32 %v4270_v39  ;;  %v4273_v36 = vadd.f32 1.0, %v6153_v44 }
 0x401   : > { %v6157_v47 = vpop.eup %6156  ;;  %4424 = vst [vmem:[%s8511_s18 + $0x90] sm:$0xff] %v4392_v20  ;;  %v4390_v9 = vadd.f32 %v6210_v8, %v4358_v63  ;;  %v4361_v27 = vmul.f32 %v6155_v24, %v8504_v40 }
 0x402   : > { %v6159_v2 = vpop.eup %6158  ;;  %6180 = vrcp.f32 %v4273_v36  ;;  %v4271_v51 = vadd.f32 1.0, %v6157_v47 }
 0x403   : > { %v6161_v53 = vpop.eup %6160  ;;  %4422 = vst [vmem:[%s8511_s18 + $0x80] sm:$0xff] %v4390_v9  ;;  %v4393_v16 = vadd.f32 %v6211_v52, %v4361_v27  ;;  %v4359_v3 = vmul.f32 %v6159_v2, %v8518_v60  ;;  %v6223_v9 = vld [vmem:[%s6736_s22 + $0xf8] sm:$0xff]  ;;  %v6224_v2 = vld [vmem:[%s6736_s22 + $0xe8] sm:$0xff] }
 0x404   : > { %v6163_v31 = vpop.eup %6162  ;;  %6182 = vrcp.f32 %v4271_v51  ;;  %v4276_v10 = vadd.f32 1.0, %v6161_v53 }
 0x405   : > { %v6165_v29 = vpop.eup %6164  ;;  %4425 = vst [vmem:[%s8511_s18 + $0x98] sm:$0xff] %v4393_v16  ;;  %v4391_v40 = vadd.f32 %v6212_v62, %v4359_v3  ;;  %v4364_v11 = vmul.f32 %v6163_v31, %v8527_v6 }
 0x406   : > { %v6167_v45 = vpop.eup %6166  ;;  %6184 = vrcp.f32 %v4276_v10  ;;  %v4274_v41 = vadd.f32 1.0, %v6165_v29 }
 0x407   : > { %v6169_v59 = vpop.eup %6168  ;;  %4423 = vst [vmem:[%s8511_s18 + $0x88] sm:$0xff] %v4391_v40  ;;  %v4396_v60 = vadd.f32 %v6213_v50, %v4364_v11  ;;  %v4362_v34 = vmul.f32 %v6167_v45, %v8533_v19  ;;  %v6215_v19 = vld [vmem:[%s6736_s22 + $0xb8] sm:$0xff] }
 0x408   : > { %v6171_v48 = vpop.eup %6170  ;;  %6186 = vrcp.f32 %v4274_v41  ;;  %v4277_v49 = vadd.f32 1.0, %v6169_v59 }
 0x409   : > { %v6173_v12 = vpop.eup %6172  ;;  %4428 = vst [vmem:[%s8511_s18 + $0xb0] sm:$0xff] %v4396_v60  ;;  %v4394_v6 = vadd.f32 %v6214_v0, %v4362_v34  ;;  %v4365_v30 = vmul.f32 %v6171_v48, %v8542_v57  ;;  %v6216_v57 = vld [vmem:[%s6736_s22 + $0xa8] sm:$0xff] }
 0x40a   : > { %v6175_v13 = vpop.eup %6174  ;;  %6188 = vrcp.f32 %v4277_v49  ;;  %v4275_v26 = vadd.f32 1.0, %v6173_v12 }
 0x40b   : > { %v6177_v22 = vpop.eup %6176  ;;  %4426 = vst [vmem:[%s8511_s18 + $0xa0] sm:$0xff] %v4394_v6  ;;  %v4397_v33 = vadd.f32 %v6215_v19, %v4365_v30  ;;  %v4363_v56 = vmul.f32 %v6175_v13, %v8551_v58  ;;  %v6218_v58 = vld [vmem:[%s6736_s22 + $0xc0] sm:$0xff] }
 0x40c   : > { %v4368_v21 = vmul.f32 %v6177_v22, %v8557_v7  ;;  %6190 = vrcp.f32 %v4275_v26 }
 0x40d   : > { %v6179_v35 = vpop.eup %6178  ;;  %4429 = vst [vmem:[%s8511_s18 + $0xb8] sm:$0xff] %v4397_v33  ;;  %v4395_v15 = vadd.f32 %v6216_v57, %v4363_v56 }
 0x40e   : > { %v4400_v32 = vadd.f32 %v6217_v5, %v4368_v21  ;;  %v4366_v38 = vmul.f32 %v6179_v35, %v8567_v37  ;;  %v6220_v37 = vld [vmem:[%s6736_s22 + $0xc8] sm:$0xff] }
 0x40f   : > { %v6181_v42 = vpop.eup %6180  ;;  %4427 = vst [vmem:[%s8511_s18 + $0xa8] sm:$0xff] %v4395_v15 }
 0x410   : > { %4432 = vst [vmem:[%s8511_s18 + $0xd0] sm:$0xff] %v4400_v32  ;;  %v4398_v7 = vadd.f32 %v6218_v58, %v4366_v38  ;;  %v4369_v1 = vmul.f32 %v6181_v42, %v8574_v4  ;;  %v6221_v4 = vld [vmem:[%s6736_s22 + $0xf0] sm:$0xff] }
 0x411   : > { %v6183_v17 = vpop.eup %6182 }
 0x412   : > { %4430 = vst [vmem:[%s8511_s18 + $0xc0] sm:$0xff] %v4398_v7  ;;  %v4401_v54 = vadd.f32 %v6219_v61, %v4369_v1  ;;  %v4367_v14 = vmul.f32 %v6183_v17, %v8582_v23  ;;  %v6222_v23 = vld [vmem:[%s6736_s22 + $0xe0] sm:$0xff] }
 0x413   : > { %v6185_v25 = vpop.eup %6184 }
 0x414   : > { %4433 = vst [vmem:[%s8511_s18 + $0xd8] sm:$0xff] %v4401_v54  ;;  %v4399_v39 = vadd.f32 %v6220_v37, %v4367_v14  ;;  %v4372_v44 = vmul.f32 %v6185_v25, %v8594_v43 }
 0x415   : > { %v6187_v28 = vpop.eup %6186 }
 0x416   : > { %4431 = vst [vmem:[%s8511_s18 + $0xc8] sm:$0xff] %v4399_v39  ;;  %v4404_v20 = vadd.f32 %v6221_v4, %v4372_v44  ;;  %v4370_v63 = vmul.f32 %v6187_v28, %v8597_v18 }
 0x417   : > { %v6189_v24 = vpop.eup %6188 }
 0x418   : > { %4436 = vst [vmem:[%s8511_s18 + $0xf0] sm:$0xff] %v4404_v20  ;;  %v4402_v36 = vadd.f32 %v6222_v23, %v4370_v63  ;;  %v4373_v47 = vmul.f32 %v6189_v24, %v8606_v46 }
 0x419   : > { %v6191_v8 = vpop.eup %6190 }
 0x41a   : > { %4434 = vst [vmem:[%s8511_s18 + $0xe0] sm:$0xff] %v4402_v36  ;;  %v4405_v43 = vadd.f32 %v6223_v9, %v4373_v47  ;;  %v4371_v27 = vmul.f32 %v6191_v8, %v8617_v55 }
 0x41c   : > { %4437 = vst [vmem:[%s8511_s18 + $0xf8] sm:$0xff] %v4405_v43  ;;  %v4403_v51 = vadd.f32 %v6224_v2, %v4371_v27 }
 0x41e   : > { %4435 = vst [vmem:[%s8511_s18 + $0xe8] sm:$0xff] %v4403_v51 }
 0x41f   : > { %s8928_s11 = sld [smem:[#allocation37_spill]]  ;;  %s4843_s3 = sshll.u32 %s8804_s25, 11 }
 0x420   : > { %s4466_s24 = sshll.u32 %s8511_s18, 4  ;;  %s8929_s14 = sld [smem:[#allocation100_spill]]  ;;  %s4467_s24 = int_to_ptr.vmem [resolvable:$true] %s4466_s24 }
 0x421   : > { %s6415_s22 = smov 2048   ;;  %s6416_s17 = smov 4096  }
 0x422   : > { %s6417_s20 = smov 16   ;;  %s6418_s13 = smov 128  }
 0x423   : > { %s6419_s23 = smov 8   ;;  %s6420_s25 = smov 131072  }
 0x424   : > { %s6421_s16 = smov 0  }
 0x425   : > { %p8930_p13 = scmp.ne.s32.totalorder %s8928_s11, 0 }
 0x426   : > { %s4455_s19 = scalar_lea.hbm %s8929_s14, %s4843_s3 }
 0x427   : > { %5675 = sst [smem:[#allocation19]] (%p8930_p13), %s6415_s22 }
 0x428   : > { %5676 = sst [smem:[#allocation19 + $0x1]] (%p8930_p13), %s6416_s17 }
 0x429   : > { %5677 = sst [smem:[#allocation19 + $0x2]] (%p8930_p13), %s6417_s20 }
 0x42a   : > { %5678 = sst [smem:[#allocation19 + $0x3]] (%p8930_p13), %s6418_s13 }
 0x42b   : > { %5679 = sst [smem:[#allocation19 + $0x4]] (%p8930_p13), %s6418_s13 }
 0x42c   : > { %5680 = sst [smem:[#allocation19 + $0x5]] (%p8930_p13), %s6419_s23 }
 0x42d   : > { %5681 = dma.general (%p8930_p13), %s4467_s24, 4096, %s4455_s19, %s4439_s6, %s6420_s25, [#allocation19], %s6421_s16, 0  }
 0x42e PF: > { %s8931_s5 = sld [smem:[#allocation29_spill]] }
 0x42f   : > { %s8932_s9 = sld [smem:[#allocation39_spill]] }
 0x434   : > { %s4494_s30 = sand.u32 1, %s8931_s5  }
 0x435   : > { %p8933_p0 = scmp.ne.s32.totalorder %s8932_s9, 0  ;;  %s4495_s10 = scalar_lea.sflag [#allocation4], %s4494_s30 }
 0x437   : > { %p5691_p9 = pnand %p4645_p8, %p8933_p0 }
 0x439   : > { %p5692_p6 = pneg %p5691_p9 }
 0x43b   : > { %6342 = dma.done.wait (%p5692_p6), %s4495_s10, 4096  }
 0x43c   : > { %6344 = vsyncadd (%p5692_p6), %s4495_s10, 4294963200  ;;  %s27_s12 = sadd.s32 1, %s6391_s12   ;;  %s8934_s24 = sld [smem:[#allocation28_spill]] }
 0x43d   : > { %p24_p12 = scmp.ge.s32.totalorder %s27_s12, 4   ;;  %s8935_s7 = sld [smem:[#allocation38_spill]] }
 0x43e   : > { %s8936_s4 = sld [smem:[#allocation35_spill]]  ;;  %s8941_s25 = smov %s6355_s26 }
 0x43f   : > { %s8937_s18 = sld [smem:[#allocation30_spill]]  ;;  %s8943_s27 = smov %s6363_s28 }
 0x440   : > { %s8938_s9 = sld [smem:[#allocation34_spill]]  ;;  %s8944_s28 = smov %s6367_s29 }
 0x441   : > { %s8939_s10 = sld [smem:[#allocation32_spill]]  ;;  %s8946_s30 = smov %s6375_s8 }
 0x442   : > { %s8940_s11 = sld [smem:[#allocation33_spill]]  ;;  %26 = sbr.rel (!%p24_p12) target bundleno = 18 (0x12), region = 153 }
 0x443   : > { %s8942_s26 = smov %s8935_s7 }
 0x444   : > { %s8945_s29 = smov %s8936_s4 }
 0x445   : > { %s8947_s8 = smov %s8937_s18 }
 0x447   :  { %4500 = vsyncpa [#allocation3], 1 }
 0x448   :  { %4502 = vsyncpa [#allocation3 + $0x1], 1 }
 0x449   :  { %4503 = vsyncpa [#allocation6], 1 }
 0x44a   :  { %4505 = vsyncpa [#allocation6 + $0x1], 1 }
 0x44b   :  { %4506 = vsyncpa [#allocation9], 1 }
 0x44c   :  { %4507 = vsyncpa [#allocation4], 1 }
 0x44d   :  { %4509 = vsyncpa [#allocation4 + $0x1], 1 }

</bundles_post_ra>
